<compile_context>
chip_gen: v7x
topology: tpu7x:2x2x1
jax: 0.10.0
libtpu: 0.0.40
codegen_flags: <defaults>
</compile_context>

<pallas_src>
import functools

import numpy as np
import jax
import jax.numpy as jnp
from jax.experimental import pallas as pl
from jax.experimental.pallas import tpu as pltpu


_BOUND = 0.9
_SP_CONST = float(np.log1p(np.exp(np.log(1.0 - _BOUND) - np.log(_BOUND))))
# Per-image tiles keep the working set tiny; explicit limit per the review so
# v7x (64 MiB physical) is never exceeded even at larger Glow sizes.
_VMEM_LIMIT = 32 * 1024 * 1024


def _softplus(z):
    # numerically stable softplus, elementwise on the VPU/EUP
    return jnp.maximum(z, 0.0) + jnp.log(1.0 + jnp.exp(-jnp.abs(z)))


# ------------------------------ Pallas kernels -------------------------------


def _preprocess_kernel(x_ref, noise_ref, y_ref, sldj_ref, *, bound, sp_const):
    # x/noise/y: (H*W, C) f32 for one image (already in flow layout);
    # sldj: (1, 1) f32.  Grid = (batch,), "parallel".
    x = x_ref[...]
    u = noise_ref[...]
    y = (x * 255.0 + u) / 256.0
    y = (2.0 * y - 1.0) * bound
    y = (y + 1.0) / 2.0
    y = jnp.log(y) - jnp.log(1.0 - y)
    ldj = _softplus(y) + _softplus(-y) - sp_const
    y_ref[...] = y
    # lane-reduce first, then a cheap sublane reduce -> (1, 1)
    sldj_ref[...] = jnp.sum(jnp.sum(ldj, axis=1, keepdims=True),
                            axis=0, keepdims=True)


def _flow_level_kernel(x_ref, sldj_ref, masks_ref,
                       anb_ref, ans_ref, wca_ref, wcb_ref,
                       w1_ref, b1_ref, w2_ref, b2_ref,
                       w3s_ref, b3s_ref, w3t_ref, b3t_ref,
                       cps_ref, cldj_ref,
                       out_ref, sldjo_ref,
                       pad1_ref, op1_ref, pad2_ref, op2_ref,
                       *, ww, pad_off):
    """All flow steps of one Glow level; one image per 'parallel' grid row.

    grid = (batch, num_steps).  The activation and sldj are carried across the
    "arbitrary" step axis inside the revisited out_ref / sldjo_ref blocks, so
    they touch HBM only once per level.
    """
    step = pl.program_id(1)
    hw, c = out_ref.shape
    cc = c // 2

    @pl.when(step == 0)
    def _():
        out_ref[...] = x_ref[...]
        sldjo_ref[...] = sldj_ref[...]

    # ---- ActNorm (scale = exp(logs) precomputed at init) ---------------------
    x = (out_ref[...] + anb_ref[...]) * ans_ref[...]
    xb = x.astype(jnp.bfloat16)

    # ---- Invertible 1x1 conv: weight pre-split into change / id column halves
    #      (no sub-lane-width slicing of the GEMM result) ----------------------
    x_change = jnp.dot(xb, wca_ref[...], preferred_element_type=jnp.float32)
    x_id = jnp.dot(xb, wcb_ref[...], preferred_element_type=jnp.float32)

    not_left = masks_ref[:, 0:1]    # (hw, 1) bf16, 0 where w == 0
    not_right = masks_ref[:, 1:2]   # (hw, 1) bf16, 0 where w == W-1

    def build_conv_operand(src_bf16, pad_ref, op_ref):
        # Builds the K-stacked (hw, 9*cin) bf16 operand: one shifted (and
        # w-masked) copy of the source per 3x3 tap.  Vertical out-of-image
        # reads land in the zeroed halo rows of pad_ref.
        cin = src_bf16.shape[1]
        halo = jnp.zeros((pad_off, cin), jnp.bfloat16)
        pad_ref[:pad_off, :] = halo                  # top halo only
        pad_ref[pad_off + hw:, :] = halo             # bottom halo only
        pad_ref[pad_off:pad_off + hw, :] = src_bf16  # bf16 cast done once
        for ky in range(3):
            for kx in range(3):
                d = (ky - 1) * ww + (kx - 1)
                a = pad_ref[pad_off + d:pad_off + d + hw, :]
                if kx == 0:
                    a = a * not_left
                elif kx == 2:
                    a = a * not_right
                tap = ky * 3 + kx
                op_ref[:, tap * cin:(tap + 1) * cin] = a
        return op_ref[...]

    # ---- coupling network: 3x3 -> ReLU -> 1x1 -> ReLU -> 3x3 -----------------
    op1 = build_conv_operand(x_id.astype(jnp.bfloat16), pad1_ref, op1_ref)
    h1 = jnp.maximum(
        jnp.dot(op1, w1_ref[...], preferred_element_type=jnp.float32)
        + b1_ref[...], 0.0)
    h2 = jnp.maximum(
        jnp.dot(h1.astype(jnp.bfloat16), w2_ref[...],
                preferred_element_type=jnp.float32) + b2_ref[...], 0.0)
    op2 = build_conv_operand(h2.astype(jnp.bfloat16), pad2_ref, op2_ref)
    s_raw = (jnp.dot(op2, w3s_ref[...], preferred_element_type=jnp.float32)
             + b3s_ref[...])
    t = (jnp.dot(op2, w3t_ref[...], preferred_element_type=jnp.float32)
         + b3t_ref[...])

    # ---- affine coupling (s / t already come from separate GEMM halves) ------
    s = cps_ref[...] * jnp.tanh(s_raw)
    x_new = (x_change + t) * jnp.exp(s)
    out_ref[:, :cc] = x_new          # sliced stores, no concatenate temp
    out_ref[:, cc:] = x_id

    # ---- log-det-Jacobian: data-dependent coupling sum + precomputed
    #      actnorm/invconv constant, accumulated in the revisited block --------
    ssum = jnp.sum(jnp.sum(s, axis=1, keepdims=True), axis=0, keepdims=True)
    sldjo_ref[...] = sldjo_ref[...] + cldj_ref[...] + ssum


# ------------------------------ pallas_call glue ------------------------------


def pre_process(x_flow, noise_flow):
    # x_flow / noise_flow: (B, hw, C) already in flow layout.
    b, hw, c = x_flow.shape
    y, sldj = pl.pallas_call(
        functools.partial(_preprocess_kernel, bound=_BOUND, sp_const=_SP_CONST),
        grid=(b,),
        in_specs=[pl.BlockSpec((None, hw, c), lambda i: (i, 0, 0)),
                  pl.BlockSpec((None, hw, c), lambda i: (i, 0, 0))],
        out_specs=(pl.BlockSpec((None, hw, c), lambda i: (i, 0, 0)),
                   pl.BlockSpec((None, 1, 1), lambda i: (i, 0, 0))),
        out_shape=(jax.ShapeDtypeStruct((b, hw, c), jnp.float32),
                   jax.ShapeDtypeStruct((b, 1, 1), jnp.float32)),
        compiler_params=pltpu.CompilerParams(
            dimension_semantics=("parallel",),
            vmem_limit_bytes=_VMEM_LIMIT),
    )(x_flow, noise_flow)
    return y, sldj


def _flow_level_call(x, sldj, lp, ww):
    # x: (B, hw, C) flow layout; sldj: (B, 1, 1).
    b, hw, c = x.shape
    cc = c // 2
    num_steps, _, hid = lp["w1"].shape
    pad_off = max(16, ((ww + 1 + 15) // 16) * 16)     # >= W+1, bf16-tile aligned
    pad_rows = hw + 2 * pad_off

    def act_spec():
        return pl.BlockSpec((None, hw, c), lambda bb, ss: (bb, 0, 0))

    def step_spec(k, n):
        return pl.BlockSpec((None, k, n), lambda bb, ss: (ss, 0, 0))

    in_specs = [
        act_spec(),                                           # x
        pl.BlockSpec((None, 1, 1), lambda bb, ss: (bb, 0, 0)),  # sldj in
        pl.BlockSpec((hw, 2), lambda bb, ss: (0, 0)),         # masks (resident)
        step_spec(1, c),                                      # actnorm bias
        step_spec(1, c),                                      # actnorm scale
        step_spec(c, cc),                                     # inv conv (change)
        step_spec(c, cc),                                     # inv conv (id)
        step_spec(9 * cc, hid),                               # conv1 (K-stacked)
        step_spec(1, hid),                                    # b1
        step_spec(hid, hid),                                  # conv2 (1x1)
        step_spec(1, hid),                                    # b2
        step_spec(9 * hid, cc),                               # conv3 s-half
        step_spec(1, cc),                                     # b3 s-half
        step_spec(9 * hid, cc),                               # conv3 t-half
        step_spec(1, cc),                                     # b3 t-half
        step_spec(1, cc),                                     # coupling scale
        pl.BlockSpec((None, 1, 1), lambda bb, ss: (ss, 0, 0)),  # const ldj
    ]
    out_specs = (act_spec(),
                 pl.BlockSpec((None, 1, 1), lambda bb, ss: (bb, 0, 0)))
    out_shape = (jax.ShapeDtypeStruct((b, hw, c), jnp.float32),
                 jax.ShapeDtypeStruct((b, 1, 1), jnp.float32))
    scratch = [pltpu.VMEM((pad_rows, cc), jnp.bfloat16),     # conv1 halo buffer
               pltpu.VMEM((hw, 9 * cc), jnp.bfloat16),       # conv1 K-stacked op
               pltpu.VMEM((pad_rows, hid), jnp.bfloat16),    # conv3 halo buffer
               pltpu.VMEM((hw, 9 * hid), jnp.bfloat16)]      # conv3 K-stacked op

    out, sldj_new = pl.pallas_call(
        functools.partial(_flow_level_kernel, ww=ww, pad_off=pad_off),
        grid=(b, num_steps),
        in_specs=in_specs,
        out_specs=out_specs,
        out_shape=out_shape,
        scratch_shapes=scratch,
        compiler_params=pltpu.CompilerParams(
            dimension_semantics=("parallel", "arbitrary"),
            vmem_limit_bytes=_VMEM_LIMIT),
    )(x, sldj, lp["masks"], lp["an_bias"], lp["an_scale"],
      lp["inv_wa"], lp["inv_wb"], lp["w1"], lp["b1"], lp["w2"], lp["b2"],
      lp["w3s"], lp["b3s"], lp["w3t"], lp["b3t"], lp["cp_scale"],
      lp["const_ldj"])
    return out, sldj_new


# -------------------------------- Glow pieces ---------------------------------


def squeeze_flow(x, h, w, reverse=False):
    # flow layout: (B, h*w, C), rows (h, w) row-major, channels last.
    # TODO(synk): the inter-level squeeze / split / concat stay as cheap XLA
    # reshapes between level kernels rather than being folded into BlockSpecs.
    b, _, c = x.shape
    if not reverse:
        x = x.reshape(b, h // 2, 2, w // 2, 2, c)
        x = x.transpose(0, 1, 3, 2, 4, 5)
        return x.reshape(b, (h // 2) * (w // 2), 4 * c)
    x = x.reshape(b, h, w, 2, 2, c // 4)
    x = x.transpose(0, 1, 3, 2, 4, 5)
    return x.reshape(b, (2 * h) * (2 * w), c // 4)


def _glow_level(x, sldj, params, h, w):
    x, sldj = _flow_level_call(x, sldj, params, w)
    if params["next"] is not None:
        x = squeeze_flow(x, h, w)
        c = x.shape[-1]
        x1, x2 = x[..., :c // 2], x[..., c // 2:]
        x1, sldj = _glow_level(x1, sldj, params["next"], h // 2, w // 2)
        x = jnp.concatenate([x1, x2], axis=-1)
        x = squeeze_flow(x, h // 2, w // 2, reverse=True)
    return x, sldj


def glow_forward(x, noise, params):
    b, c, h, w = x.shape

    def to_flow(t):
        # NCHW -> channel-last -> first 2x2 squeeze, done once in JAX *before*
        # the elementwise preprocess kernel, so the preprocess already emits
        # flow layout and no relayout pass sits between it and the first level.
        t = jnp.transpose(t, (0, 2, 3, 1)).reshape(b, h * w, c)
        return squeeze_flow(t, h, w)

    y, sldj = pre_process(to_flow(x), to_flow(noise))
    z, sldj = _glow_level(y, sldj, params, h // 2, w // 2)
    z = squeeze_flow(z, h // 2, w // 2, reverse=True)   # undo the first squeeze
    z = jnp.transpose(z.reshape(b, h, w, c), (0, 3, 1, 2))
    return z, sldj[:, 0, 0]


# --------------------------- deterministic parameters -------------------------


def _init_level(key, c, hid, num_levels, num_steps, h, w):
    cc = c // 2
    hw = h * w
    keys = jax.random.split(key, num_steps + 1)

    anb, ans, wa, wb = [], [], [], []
    w1s, w2s, w3ss, w3ts, cldj = [], [], [], [], []
    for i in range(num_steps):
        ks = jax.random.split(keys[i], 6)
        # TODO(synk): QR / slogdet for the invertible 1x1-conv init have no
        # clean Pallas equivalent; they run once at init time on the host, so
        # the forward pass never calls any linalg.
        q = np.linalg.qr(np.asarray(
            jax.random.normal(ks[0], (c, c), jnp.float32)))[0].astype(np.float32)
        an_bias = 0.1 * jax.random.normal(ks[1], (c,), jnp.float32)
        an_logs = 0.05 * jax.random.normal(ks[2], (c,), jnp.float32)
        w1 = 0.05 * jax.random.normal(ks[3], (hid, cc, 3, 3), jnp.float32)
        w2 = 0.05 * jax.random.normal(ks[4], (hid, hid, 1, 1), jnp.float32)
        # real Glow zero-inits the output conv; small randoms so the coupling
        # math is actually exercised.
        w3 = 0.05 * jax.random.normal(ks[5], (2 * cc, hid, 3, 3), jnp.float32)

        wt = q.T                                   # y = x @ W.T
        wa.append(jnp.asarray(wt[:, :cc]))
        wb.append(jnp.asarray(wt[:, cc:]))
        anb.append(an_bias.reshape(1, c))
        ans.append(jnp.exp(an_logs).reshape(1, c))
        # K-stacked conv weights: (ky, kx)-major row blocks of (cin, cout).
        w1s.append(jnp.transpose(w1, (2, 3, 1, 0)).reshape(9 * cc, hid))
        w2s.append(w2[:, :, 0, 0].T)
        w3_k = jnp.transpose(w3, (2, 3, 1, 0)).reshape(9 * hid, 2 * cc)
        w3ss.append(w3_k[:, :cc])
        w3ts.append(w3_k[:, cc:])
        # data-independent actnorm + invconv log-det term, folded per step
        cldj.append((jnp.sum(an_logs)
                     + float(np.linalg.slogdet(q)[1])) * float(hw))

    # host-precomputed left/right boundary masks for the in-kernel 3x3 convs
    wcoord = np.arange(hw) % w
    masks = np.stack([(wcoord > 0), (wcoord < w - 1)], axis=1).astype(np.float32)

    params = {
        "masks": jnp.asarray(masks, jnp.bfloat16),
        "an_bias": jnp.stack(anb),
        "an_scale": jnp.stack(ans),
        "inv_wa": jnp.stack(wa).astype(jnp.bfloat16),
        "inv_wb": jnp.stack(wb).astype(jnp.bfloat16),
        "w1": jnp.stack(w1s).astype(jnp.bfloat16),
        "b1": jnp.zeros((num_steps, 1, hid), jnp.float32),
        "w2": jnp.stack(w2s).astype(jnp.bfloat16),
        "b2": jnp.zeros((num_steps, 1, hid), jnp.float32),
        "w3s": jnp.stack(w3ss).astype(jnp.bfloat16),
        "b3s": jnp.zeros((num_steps, 1, cc), jnp.float32),
        "w3t": jnp.stack(w3ts).astype(jnp.bfloat16),
        "b3t": jnp.zeros((num_steps, 1, cc), jnp.float32),
        "cp_scale": jnp.ones((num_steps, 1, cc), jnp.float32),
        "const_ldj": jnp.stack(cldj).reshape(num_steps, 1, 1).astype(jnp.float32),
        "next": None,
    }
    if num_levels > 1:
        params["next"] = _init_level(keys[-1], c * 2, hid, num_levels - 1,
                                     num_steps, h // 2, w // 2)
    return params


def init_glow_params(key, num_features, hid, num_levels, num_steps, img_h, img_w):
    # the top level operates on num_features*4 channels at (H/2, W/2) after the
    # first squeeze
    return _init_level(key, num_features * 4, hid, num_levels, num_steps,
                       img_h // 2, img_w // 2)


# ------------------------------------ main ------------------------------------

if __name__ == "__main__":
    B, C, H, W = 2, 4, 16, 16
    HID_LAYERS, NUM_LEVELS, NUM_STEPS = 32, 2, 2

    key = jax.random.PRNGKey(0)
    kx, kn, kp = jax.random.split(key, 3)
    x = jax.random.uniform(kx, (B, C, H, W), jnp.float32)        # in [0, 1)
    # dequantization noise (torch.rand_like in _pre_process), passed explicitly
    noise = jax.random.uniform(kn, (B, C, H, W), jnp.float32)
    params = init_glow_params(kp, C, HID_LAYERS, NUM_LEVELS, NUM_STEPS, H, W)

    # mirrors the PyTorch ValueError range check (host-side)
    xmin, xmax = float(x.min()), float(x.max())
    if xmin < 0 or xmax > 1:
        raise ValueError(f"Expected x in [0, 1], got min/max [{xmin}, {xmax}]")

    fwd = jax.jit(glow_forward)
    z, sldj = fwd(x, noise, params)
    jax.block_until_ready((z, sldj))

    assert z.shape == (B, C, H, W), z.shape
    assert sldj.shape == (B,), sldj.shape
    assert np.all(np.isfinite(np.asarray(z)))
    assert np.all(np.isfinite(np.asarray(sldj)))
    print("KERNEL_OK")
</pallas_src>

<mosaic_0001>
module attributes {stable_mosaic.version = 11 : i64} {
  func.func @_preprocess_kernel(%arg0: i32, %arg1: memref<1x64x16xf32, #tpu.memory_space<vmem>>, %arg2: memref<1x64x16xf32, #tpu.memory_space<vmem>>, %arg3: memref<1x64x16xf32, #tpu.memory_space<vmem>>, %arg4: memref<1x1x1xf32, #tpu.memory_space<vmem>>) attributes {dimension_semantics = [#tpu.dimension_semantics<parallel>], iteration_bounds = array<i64: 2>, scalar_prefetch = 0 : i64, scratch_operands = 0 : i64, tpu.core_type = #tpu.core_type<tc>, window_params = [{transform_indices = @transform_0, window_bounds = array<i64: 1, 64, 16>}, {transform_indices = @transform_1, window_bounds = array<i64: 1, 64, 16>}, {transform_indices = @transform_2, window_bounds = array<i64: 1, 64, 16>}, {transform_indices = @transform_3, window_bounds = array<i64: 1, 1, 1>}]} {
    %c0 = arith.constant 0 : index
    %c0_0 = arith.constant 0 : index
    %c0_1 = arith.constant 0 : index
    %0 = vector.load %arg1[%c0, %c0_0, %c0_1] : memref<1x64x16xf32, #tpu.memory_space<vmem>>, vector<1x64x16xf32>
    %1 = vector.shape_cast %0 : vector<1x64x16xf32> to vector<64x16xf32>
    %c0_2 = arith.constant 0 : index
    %c0_3 = arith.constant 0 : index
    %c0_4 = arith.constant 0 : index
    %2 = vector.load %arg2[%c0_2, %c0_3, %c0_4] : memref<1x64x16xf32, #tpu.memory_space<vmem>>, vector<1x64x16xf32>
    %3 = vector.shape_cast %2 : vector<1x64x16xf32> to vector<64x16xf32>
    %cst = arith.constant 2.550000e+02 : f32
    %4 = vector.broadcast %cst : f32 to vector<64x16xf32>
    %5 = arith.mulf %1, %4 : vector<64x16xf32>
    %6 = arith.addf %5, %3 : vector<64x16xf32>
    %cst_5 = arith.constant 2.560000e+02 : f32
    %7 = vector.broadcast %cst_5 : f32 to vector<64x16xf32>
    %8 = arith.divf %6, %7 : vector<64x16xf32>
    %cst_6 = arith.constant 2.000000e+00 : f32
    %9 = vector.broadcast %cst_6 : f32 to vector<64x16xf32>
    %10 = arith.mulf %9, %8 : vector<64x16xf32>
    %cst_7 = arith.constant 1.000000e+00 : f32
    %11 = vector.broadcast %cst_7 : f32 to vector<64x16xf32>
    %12 = arith.subf %10, %11 : vector<64x16xf32>
    %cst_8 = arith.constant 0.899999976 : f32
    %13 = vector.broadcast %cst_8 : f32 to vector<64x16xf32>
    %14 = arith.mulf %12, %13 : vector<64x16xf32>
    %cst_9 = arith.constant 1.000000e+00 : f32
    %15 = vector.broadcast %cst_9 : f32 to vector<64x16xf32>
    %16 = arith.addf %14, %15 : vector<64x16xf32>
    %cst_10 = arith.constant 2.000000e+00 : f32
    %17 = vector.broadcast %cst_10 : f32 to vector<64x16xf32>
    %18 = arith.divf %16, %17 : vector<64x16xf32>
    %19 = math.log %18 : vector<64x16xf32>
    %cst_11 = arith.constant 1.000000e+00 : f32
    %20 = vector.broadcast %cst_11 : f32 to vector<64x16xf32>
    %21 = arith.subf %20, %18 : vector<64x16xf32>
    %22 = math.log %21 : vector<64x16xf32>
    %23 = arith.subf %19, %22 : vector<64x16xf32>
    %cst_12 = arith.constant 0.000000e+00 : f32
    %24 = vector.broadcast %cst_12 : f32 to vector<64x16xf32>
    %25 = arith.maximumf %23, %24 : vector<64x16xf32>
    %26 = math.absf %23 : vector<64x16xf32>
    %cst_13 = arith.constant 0.000000e+00 : f32
    %27 = vector.broadcast %cst_13 : f32 to vector<64x16xf32>
    %28 = arith.subf %27, %26 : vector<64x16xf32>
    %29 = math.exp %28 : vector<64x16xf32>
    %cst_14 = arith.constant 1.000000e+00 : f32
    %30 = vector.broadcast %cst_14 : f32 to vector<64x16xf32>
    %31 = arith.addf %30, %29 : vector<64x16xf32>
    %32 = math.log %31 : vector<64x16xf32>
    %33 = arith.addf %25, %32 : vector<64x16xf32>
    %cst_15 = arith.constant 0.000000e+00 : f32
    %34 = vector.broadcast %cst_15 : f32 to vector<64x16xf32>
    %35 = arith.subf %34, %23 : vector<64x16xf32>
    %cst_16 = arith.constant 0.000000e+00 : f32
    %36 = vector.broadcast %cst_16 : f32 to vector<64x16xf32>
    %37 = arith.maximumf %35, %36 : vector<64x16xf32>
    %38 = math.absf %35 : vector<64x16xf32>
    %cst_17 = arith.constant 0.000000e+00 : f32
    %39 = vector.broadcast %cst_17 : f32 to vector<64x16xf32>
    %40 = arith.subf %39, %38 : vector<64x16xf32>
    %41 = math.exp %40 : vector<64x16xf32>
    %cst_18 = arith.constant 1.000000e+00 : f32
    %42 = vector.broadcast %cst_18 : f32 to vector<64x16xf32>
    %43 = arith.addf %42, %41 : vector<64x16xf32>
    %44 = math.log %43 : vector<64x16xf32>
    %45 = arith.addf %37, %44 : vector<64x16xf32>
    %46 = arith.addf %33, %45 : vector<64x16xf32>
    %cst_19 = arith.constant 0.105360515 : f32
    %47 = vector.broadcast %cst_19 : f32 to vector<64x16xf32>
    %48 = arith.subf %46, %47 : vector<64x16xf32>
    %c0_20 = arith.constant 0 : index
    %c0_21 = arith.constant 0 : index
    %c0_22 = arith.constant 0 : index
    %49 = vector.load %arg3[%c0_20, %c0_21, %c0_22] : memref<1x64x16xf32, #tpu.memory_space<vmem>>, vector<1x64x16xf32>
    %50 = vector.shape_cast %49 : vector<1x64x16xf32> to vector<64x16xf32>
    %51 = vector.shape_cast %23 : vector<64x16xf32> to vector<1x64x16xf32>
    tpu.vector_store %arg3[%c0_20, %c0_21, %c0_22], %51 {strides = array<i32>} : memref<1x64x16xf32, #tpu.memory_space<vmem>>, vector<1x64x16xf32>,
    %cst_23 = arith.constant dense<0.000000e+00> : vector<64xf32>
    %52 = vector.multi_reduction <add>, %48, %cst_23 [1] : vector<64x16xf32> to vector<64xf32>
    %53 = vector.shape_cast %52 : vector<64xf32> to vector<64x1xf32>
    %cst_24 = arith.constant dense<0.000000e+00> : vector<1xf32>
    %54 = vector.multi_reduction <add>, %53, %cst_24 [0] : vector<64x1xf32> to vector<1xf32>
    %55 = vector.shape_cast %54 : vector<1xf32> to vector<1x1xf32>
    %c0_25 = arith.constant 0 : index
    %c0_26 = arith.constant 0 : index
    %c0_27 = arith.constant 0 : index
    %56 = vector.load %arg4[%c0_25, %c0_26, %c0_27] : memref<1x1x1xf32, #tpu.memory_space<vmem>>, vector<1x1x1xf32>
    %57 = vector.shape_cast %56 : vector<1x1x1xf32> to vector<1x1xf32>
    %58 = vector.shape_cast %55 : vector<1x1xf32> to vector<1x1x1xf32>
    tpu.vector_store %arg4[%c0_25, %c0_26, %c0_27], %58 {strides = array<i32>} : memref<1x1x1xf32, #tpu.memory_space<vmem>>, vector<1x1x1xf32>,
    return
  }
  func.func @transform_0(%arg0: i32) -> (i32, i32, i32) {
    %c0_i32 = arith.constant 0 : i32
    %c0_i32_0 = arith.constant 0 : i32
    %c0_i32_1 = arith.constant 0 : i32
    return %arg0, %c0_i32, %c0_i32_0 : i32, i32, i32
  }
  func.func @transform_1(%arg0: i32) -> (i32, i32, i32) {
    %c0_i32 = arith.constant 0 : i32
    %c0_i32_0 = arith.constant 0 : i32
    %c0_i32_1 = arith.constant 0 : i32
    return %arg0, %c0_i32, %c0_i32_0 : i32, i32, i32
  }
  func.func @transform_2(%arg0: i32) -> (i32, i32, i32) {
    %c0_i32 = arith.constant 0 : i32
    %c0_i32_0 = arith.constant 0 : i32
    %c0_i32_1 = arith.constant 0 : i32
    return %arg0, %c0_i32, %c0_i32_0 : i32, i32, i32
  }
  func.func @transform_3(%arg0: i32) -> (i32, i32, i32) {
    %c0_i32 = arith.constant 0 : i32
    %c0_i32_0 = arith.constant 0 : i32
    %c0_i32_1 = arith.constant 0 : i32
    return %arg0, %c0_i32, %c0_i32_0 : i32, i32, i32
  }
}

module attributes {stable_mosaic.version = 11 : i64} {
  func.func @_flow_level_kernel(%arg0: i32, %arg1: i32, %arg2: memref<1x64x16xf32, #tpu.memory_space<vmem>>, %arg3: memref<1x1x1xf32, #tpu.memory_space<vmem>>, %arg4: memref<64x2xbf16, #tpu.memory_space<vmem>>, %arg5: memref<1x1x16xf32, #tpu.memory_space<vmem>>, %arg6: memref<1x1x16xf32, #tpu.memory_space<vmem>>, %arg7: memref<1x16x8xbf16, #tpu.memory_space<vmem>>, %arg8: memref<1x16x8xbf16, #tpu.memory_space<vmem>>, %arg9: memref<1x72x32xbf16, #tpu.memory_space<vmem>>, %arg10: memref<1x1x32xf32, #tpu.memory_space<vmem>>, %arg11: memref<1x32x32xbf16, #tpu.memory_space<vmem>>, %arg12: memref<1x1x32xf32, #tpu.memory_space<vmem>>, %arg13: memref<1x288x8xbf16, #tpu.memory_space<vmem>>, %arg14: memref<1x1x8xf32, #tpu.memory_space<vmem>>, %arg15: memref<1x288x8xbf16, #tpu.memory_space<vmem>>, %arg16: memref<1x1x8xf32, #tpu.memory_space<vmem>>, %arg17: memref<1x1x8xf32, #tpu.memory_space<vmem>>, %arg18: memref<1x1x1xf32, #tpu.memory_space<vmem>>, %arg19: memref<1x64x16xf32, #tpu.memory_space<vmem>>, %arg20: memref<1x1x1xf32, #tpu.memory_space<vmem>>, %arg21: memref<96x8xbf16, #tpu.memory_space<vmem>>, %arg22: memref<64x72xbf16, #tpu.memory_space<vmem>>, %arg23: memref<96x32xbf16, #tpu.memory_space<vmem>>, %arg24: memref<64x288xbf16, #tpu.memory_space<vmem>>) attributes {dimension_semantics = [#tpu.dimension_semantics<parallel>, #tpu.dimension_semantics<arbitrary>], iteration_bounds = array<i64: 2, 2>, scalar_prefetch = 0 : i64, scratch_operands = 4 : i64, tpu.core_type = #tpu.core_type<tc>, window_params = [{transform_indices = @transform_0, window_bounds = array<i64: 1, 64, 16>}, {transform_indices = @transform_1, window_bounds = array<i64: 1, 1, 1>}, {pipeline_mode = #tpu.pipeline_mode<synchronous>, transform_indices = @transform_2, window_bounds = array<i64: 64, 2>}, {transform_indices = @transform_3, window_bounds = array<i64: 1, 1, 16>}, {transform_indices = @transform_4, window_bounds = array<i64: 1, 1, 16>}, {transform_indices = @transform_5, window_bounds = array<i64: 1, 16, 8>}, {transform_indices = @transform_6, window_bounds = array<i64: 1, 16, 8>}, {transform_indices = @transform_7, window_bounds = array<i64: 1, 72, 32>}, {transform_indices = @transform_8, window_bounds = array<i64: 1, 1, 32>}, {transform_indices = @transform_9, window_bounds = array<i64: 1, 32, 32>}, {transform_indices = @transform_10, window_bounds = array<i64: 1, 1, 32>}, {transform_indices = @transform_11, window_bounds = array<i64: 1, 288, 8>}, {transform_indices = @transform_12, window_bounds = array<i64: 1, 1, 8>}, {transform_indices = @transform_13, window_bounds = array<i64: 1, 288, 8>}, {transform_indices = @transform_14, window_bounds = array<i64: 1, 1, 8>}, {transform_indices = @transform_15, window_bounds = array<i64: 1, 1, 8>}, {transform_indices = @transform_16, window_bounds = array<i64: 1, 1, 1>}, {transform_indices = @transform_17, window_bounds = array<i64: 1, 64, 16>}, {transform_indices = @transform_18, window_bounds = array<i64: 1, 1, 1>}]} {
    %c0_i32 = arith.constant 0 : i32
    %0 = arith.cmpi eq, %arg1, %c0_i32 : i32
    %1 = arith.extui %0 : i1 to i32
    %c0_i32_0 = arith.constant 0 : i32
    %2 = arith.cmpi ne, %1, %c0_i32_0 : i32
    scf.if %2 {
      %c0_138 = arith.constant 0 : index
      %c0_139 = arith.constant 0 : index
      %c0_140 = arith.constant 0 : index
      %154 = vector.load %arg2[%c0_138, %c0_139, %c0_140] : memref<1x64x16xf32, #tpu.memory_space<vmem>>, vector<1x64x16xf32>
      %155 = vector.shape_cast %154 : vector<1x64x16xf32> to vector<64x16xf32>
      %c0_141 = arith.constant 0 : index
      %c0_142 = arith.constant 0 : index
      %c0_143 = arith.constant 0 : index
      %156 = vector.load %arg19[%c0_141, %c0_142, %c0_143] : memref<1x64x16xf32, #tpu.memory_space<vmem>>, vector<1x64x16xf32>
      %157 = vector.shape_cast %156 : vector<1x64x16xf32> to vector<64x16xf32>
      %158 = vector.shape_cast %155 : vector<64x16xf32> to vector<1x64x16xf32>
      tpu.vector_store %arg19[%c0_141, %c0_142, %c0_143], %158 {strides = array<i32>} : memref<1x64x16xf32, #tpu.memory_space<vmem>>, vector<1x64x16xf32>,
      %c0_144 = arith.constant 0 : index
      %c0_145 = arith.constant 0 : index
      %c0_146 = arith.constant 0 : index
      %159 = vector.load %arg3[%c0_144, %c0_145, %c0_146] : memref<1x1x1xf32, #tpu.memory_space<vmem>>, vector<1x1x1xf32>
      %160 = vector.shape_cast %159 : vector<1x1x1xf32> to vector<1x1xf32>
      %c0_147 = arith.constant 0 : index
      %c0_148 = arith.constant 0 : index
      %c0_149 = arith.constant 0 : index
      %161 = vector.load %arg20[%c0_147, %c0_148, %c0_149] : memref<1x1x1xf32, #tpu.memory_space<vmem>>, vector<1x1x1xf32>
      %162 = vector.shape_cast %161 : vector<1x1x1xf32> to vector<1x1xf32>
      %163 = vector.shape_cast %160 : vector<1x1xf32> to vector<1x1x1xf32>
      tpu.vector_store %arg20[%c0_147, %c0_148, %c0_149], %163 {strides = array<i32>} : memref<1x1x1xf32, #tpu.memory_space<vmem>>, vector<1x1x1xf32>,
    } else {
    }
    %c0 = arith.constant 0 : index
    %c0_1 = arith.constant 0 : index
    %c0_2 = arith.constant 0 : index
    %3 = vector.load %arg19[%c0, %c0_1, %c0_2] : memref<1x64x16xf32, #tpu.memory_space<vmem>>, vector<1x64x16xf32>
    %4 = vector.shape_cast %3 : vector<1x64x16xf32> to vector<64x16xf32>
    %c0_3 = arith.constant 0 : index
    %c0_4 = arith.constant 0 : index
    %c0_5 = arith.constant 0 : index
    %5 = vector.load %arg5[%c0_3, %c0_4, %c0_5] : memref<1x1x16xf32, #tpu.memory_space<vmem>>, vector<1x1x16xf32>
    %6 = vector.shape_cast %5 : vector<1x1x16xf32> to vector<1x16xf32>
    %7 = vector.broadcast %6 : vector<1x16xf32> to vector<64x16xf32>
    %8 = arith.addf %4, %7 : vector<64x16xf32>
    %c0_6 = arith.constant 0 : index
    %c0_7 = arith.constant 0 : index
    %c0_8 = arith.constant 0 : index
    %9 = vector.load %arg6[%c0_6, %c0_7, %c0_8] : memref<1x1x16xf32, #tpu.memory_space<vmem>>, vector<1x1x16xf32>
    %10 = vector.shape_cast %9 : vector<1x1x16xf32> to vector<1x16xf32>
    %11 = vector.broadcast %10 : vector<1x16xf32> to vector<64x16xf32>
    %12 = arith.mulf %8, %11 : vector<64x16xf32>
    %13 = arith.truncf %12 : vector<64x16xf32> to vector<64x16xbf16>
    %c0_9 = arith.constant 0 : index
    %c0_10 = arith.constant 0 : index
    %c0_11 = arith.constant 0 : index
    %14 = vector.load %arg7[%c0_9, %c0_10, %c0_11] : memref<1x16x8xbf16, #tpu.memory_space<vmem>>, vector<1x16x8xbf16>
    %15 = vector.shape_cast %14 : vector<1x16x8xbf16> to vector<16x8xbf16>
    %cst = arith.constant dense<0.000000e+00> : vector<64x8xf32>
    %16 = tpu.matmul %13, %15, %cst {dimension_numbers = #tpu.dot_dimension_numbers<[1], [0], [0], [1], [0, 0, 1, 1], [], []>} : vector<64x16xbf16>, vector<16x8xbf16>, vector<64x8xf32> -> vector<64x8xf32>
    %c0_12 = arith.constant 0 : index
    %c0_13 = arith.constant 0 : index
    %c0_14 = arith.constant 0 : index
    %17 = vector.load %arg8[%c0_12, %c0_13, %c0_14] : memref<1x16x8xbf16, #tpu.memory_space<vmem>>, vector<1x16x8xbf16>
    %18 = vector.shape_cast %17 : vector<1x16x8xbf16> to vector<16x8xbf16>
    %cst_15 = arith.constant dense<0.000000e+00> : vector<64x8xf32>
    %19 = tpu.matmul %13, %18, %cst_15 {dimension_numbers = #tpu.dot_dimension_numbers<[1], [0], [0], [1], [0, 0, 1, 1], [], []>} : vector<64x16xbf16>, vector<16x8xbf16>, vector<64x8xf32> -> vector<64x8xf32>
    %c0_16 = arith.constant 0 : index
    %c0_17 = arith.constant 0 : index
    %20 = vector.load %arg4[%c0_16, %c0_17] : memref<64x2xbf16, #tpu.memory_space<vmem>>, vector<64x1xbf16>
    %c0_18 = arith.constant 0 : index
    %c1 = arith.constant 1 : index
    %21 = vector.load %arg4[%c0_18, %c1] : memref<64x2xbf16, #tpu.memory_space<vmem>>, vector<64x1xbf16>
    %22 = arith.truncf %19 : vector<64x8xf32> to vector<64x8xbf16>
    %cst_19 = arith.constant 0.000000e+00 : bf16
    %23 = vector.broadcast %cst_19 : bf16 to vector<16x8xbf16>
    %c0_20 = arith.constant 0 : index
    %c0_21 = arith.constant 0 : index
    %24 = vector.load %arg21[%c0_20, %c0_21] : memref<96x8xbf16, #tpu.memory_space<vmem>>, vector<16x8xbf16>
    tpu.vector_store %arg21[%c0_20, %c0_21], %23 {strides = array<i32>} : memref<96x8xbf16, #tpu.memory_space<vmem>>, vector<16x8xbf16>,
    %c80 = arith.constant 80 : index
    %c0_22 = arith.constant 0 : index
    %25 = vector.load %arg21[%c80, %c0_22] : memref<96x8xbf16, #tpu.memory_space<vmem>>, vector<16x8xbf16>
    tpu.vector_store %arg21[%c80, %c0_22], %23 {strides = array<i32>} : memref<96x8xbf16, #tpu.memory_space<vmem>>, vector<16x8xbf16>,
    %c16 = arith.constant 16 : index
    %c0_23 = arith.constant 0 : index
    %26 = vector.load %arg21[%c16, %c0_23] : memref<96x8xbf16, #tpu.memory_space<vmem>>, vector<64x8xbf16>
    tpu.vector_store %arg21[%c16, %c0_23], %22 {strides = array<i32>} : memref<96x8xbf16, #tpu.memory_space<vmem>>, vector<64x8xbf16>,
    %c7 = arith.constant 7 : index
    %c0_24 = arith.constant 0 : index
    %27 = vector.load %arg21[%c7, %c0_24] : memref<96x8xbf16, #tpu.memory_space<vmem>>, vector<64x8xbf16>
    %28 = vector.broadcast %20 : vector<64x1xbf16> to vector<64x8xbf16>
    %29 = arith.mulf %27, %28 : vector<64x8xbf16>
    %c0_25 = arith.constant 0 : index
    %c0_26 = arith.constant 0 : index
    %30 = vector.load %arg22[%c0_25, %c0_26] : memref<64x72xbf16, #tpu.memory_space<vmem>>, vector<64x8xbf16>
    tpu.vector_store %arg22[%c0_25, %c0_26], %29 {strides = array<i32>} : memref<64x72xbf16, #tpu.memory_space<vmem>>, vector<64x8xbf16>,
    %c8 = arith.constant 8 : index
    %c0_27 = arith.constant 0 : index
    %31 = vector.load %arg21[%c8, %c0_27] : memref<96x8xbf16, #tpu.memory_space<vmem>>, vector<64x8xbf16>
    %c0_28 = arith.constant 0 : index
    %c8_29 = arith.constant 8 : index
    %32 = vector.load %arg22[%c0_28, %c8_29] : memref<64x72xbf16, #tpu.memory_space<vmem>>, vector<64x8xbf16>
    tpu.vector_store %arg22[%c0_28, %c8_29], %31 {strides = array<i32>} : memref<64x72xbf16, #tpu.memory_space<vmem>>, vector<64x8xbf16>,
    %c9 = arith.constant 9 : index
    %c0_30 = arith.constant 0 : index
    %33 = vector.load %arg21[%c9, %c0_30] : memref<96x8xbf16, #tpu.memory_space<vmem>>, vector<64x8xbf16>
    %34 = vector.broadcast %21 : vector<64x1xbf16> to vector<64x8xbf16>
    %35 = arith.mulf %33, %34 : vector<64x8xbf16>
    %c0_31 = arith.constant 0 : index
    %c16_32 = arith.constant 16 : index
    %36 = vector.load %arg22[%c0_31, %c16_32] : memref<64x72xbf16, #tpu.memory_space<vmem>>, vector<64x8xbf16>
    tpu.vector_store %arg22[%c0_31, %c16_32], %35 {strides = array<i32>} : memref<64x72xbf16, #tpu.memory_space<vmem>>, vector<64x8xbf16>,
    %c15 = arith.constant 15 : index
    %c0_33 = arith.constant 0 : index
    %37 = vector.load %arg21[%c15, %c0_33] : memref<96x8xbf16, #tpu.memory_space<vmem>>, vector<64x8xbf16>
    %38 = vector.broadcast %20 : vector<64x1xbf16> to vector<64x8xbf16>
    %39 = arith.mulf %37, %38 : vector<64x8xbf16>
    %c0_34 = arith.constant 0 : index
    %c24 = arith.constant 24 : index
    %40 = vector.load %arg22[%c0_34, %c24] : memref<64x72xbf16, #tpu.memory_space<vmem>>, vector<64x8xbf16>
    tpu.vector_store %arg22[%c0_34, %c24], %39 {strides = array<i32>} : memref<64x72xbf16, #tpu.memory_space<vmem>>, vector<64x8xbf16>,
    %c16_35 = arith.constant 16 : index
    %c0_36 = arith.constant 0 : index
    %41 = vector.load %arg21[%c16_35, %c0_36] : memref<96x8xbf16, #tpu.memory_space<vmem>>, vector<64x8xbf16>
    %c0_37 = arith.constant 0 : index
    %c32 = arith.constant 32 : index
    %42 = vector.load %arg22[%c0_37, %c32] : memref<64x72xbf16, #tpu.memory_space<vmem>>, vector<64x8xbf16>
    tpu.vector_store %arg22[%c0_37, %c32], %41 {strides = array<i32>} : memref<64x72xbf16, #tpu.memory_space<vmem>>, vector<64x8xbf16>,
    %c17 = arith.constant 17 : index
    %c0_38 = arith.constant 0 : index
    %43 = vector.load %arg21[%c17, %c0_38] : memref<96x8xbf16, #tpu.memory_space<vmem>>, vector<64x8xbf16>
    %44 = vector.broadcast %21 : vector<64x1xbf16> to vector<64x8xbf16>
    %45 = arith.mulf %43, %44 : vector<64x8xbf16>
    %c0_39 = arith.constant 0 : index
    %c40 = arith.constant 40 : index
    %46 = vector.load %arg22[%c0_39, %c40] : memref<64x72xbf16, #tpu.memory_space<vmem>>, vector<64x8xbf16>
    tpu.vector_store %arg22[%c0_39, %c40], %45 {strides = array<i32>} : memref<64x72xbf16, #tpu.memory_space<vmem>>, vector<64x8xbf16>,
    %c23 = arith.constant 23 : index
    %c0_40 = arith.constant 0 : index
    %47 = vector.load %arg21[%c23, %c0_40] : memref<96x8xbf16, #tpu.memory_space<vmem>>, vector<64x8xbf16>
    %48 = vector.broadcast %20 : vector<64x1xbf16> to vector<64x8xbf16>
    %49 = arith.mulf %47, %48 : vector<64x8xbf16>
    %c0_41 = arith.constant 0 : index
    %c48 = arith.constant 48 : index
    %50 = vector.load %arg22[%c0_41, %c48] : memref<64x72xbf16, #tpu.memory_space<vmem>>, vector<64x8xbf16>
    tpu.vector_store %arg22[%c0_41, %c48], %49 {strides = array<i32>} : memref<64x72xbf16, #tpu.memory_space<vmem>>, vector<64x8xbf16>,
    %c24_42 = arith.constant 24 : index
    %c0_43 = arith.constant 0 : index
    %51 = vector.load %arg21[%c24_42, %c0_43] : memref<96x8xbf16, #tpu.memory_space<vmem>>, vector<64x8xbf16>
    %c0_44 = arith.constant 0 : index
    %c56 = arith.constant 56 : index
    %52 = vector.load %arg22[%c0_44, %c56] : memref<64x72xbf16, #tpu.memory_space<vmem>>, vector<64x8xbf16>
    tpu.vector_store %arg22[%c0_44, %c56], %51 {strides = array<i32>} : memref<64x72xbf16, #tpu.memory_space<vmem>>, vector<64x8xbf16>,
    %c25 = arith.constant 25 : index
    %c0_45 = arith.constant 0 : index
    %53 = vector.load %arg21[%c25, %c0_45] : memref<96x8xbf16, #tpu.memory_space<vmem>>, vector<64x8xbf16>
    %54 = vector.broadcast %21 : vector<64x1xbf16> to vector<64x8xbf16>
    %55 = arith.mulf %53, %54 : vector<64x8xbf16>
    %c0_46 = arith.constant 0 : index
    %c64 = arith.constant 64 : index
    %56 = vector.load %arg22[%c0_46, %c64] : memref<64x72xbf16, #tpu.memory_space<vmem>>, vector<64x8xbf16>
    tpu.vector_store %arg22[%c0_46, %c64], %55 {strides = array<i32>} : memref<64x72xbf16, #tpu.memory_space<vmem>>, vector<64x8xbf16>,
    %c0_47 = arith.constant 0 : index
    %c0_48 = arith.constant 0 : index
    %57 = vector.load %arg22[%c0_47, %c0_48] : memref<64x72xbf16, #tpu.memory_space<vmem>>, vector<64x72xbf16>
    %c0_49 = arith.constant 0 : index
    %c0_50 = arith.constant 0 : index
    %c0_51 = arith.constant 0 : index
    %58 = vector.load %arg9[%c0_49, %c0_50, %c0_51] : memref<1x72x32xbf16, #tpu.memory_space<vmem>>, vector<1x72x32xbf16>
    %59 = vector.shape_cast %58 : vector<1x72x32xbf16> to vector<72x32xbf16>
    %cst_52 = arith.constant dense<0.000000e+00> : vector<64x32xf32>
    %60 = tpu.matmul %57, %59, %cst_52 {dimension_numbers = #tpu.dot_dimension_numbers<[1], [0], [0], [1], [0, 0, 1, 1], [], []>} : vector<64x72xbf16>, vector<72x32xbf16>, vector<64x32xf32> -> vector<64x32xf32>
    %c0_53 = arith.constant 0 : index
    %c0_54 = arith.constant 0 : index
    %c0_55 = arith.constant 0 : index
    %61 = vector.load %arg10[%c0_53, %c0_54, %c0_55] : memref<1x1x32xf32, #tpu.memory_space<vmem>>, vector<1x1x32xf32>
    %62 = vector.shape_cast %61 : vector<1x1x32xf32> to vector<1x32xf32>
    %63 = vector.broadcast %62 : vector<1x32xf32> to vector<64x32xf32>
    %64 = arith.addf %60, %63 : vector<64x32xf32>
    %cst_56 = arith.constant 0.000000e+00 : f32
    %65 = vector.broadcast %cst_56 : f32 to vector<64x32xf32>
    %66 = arith.maximumf %64, %65 : vector<64x32xf32>
    %67 = arith.truncf %66 : vector<64x32xf32> to vector<64x32xbf16>
    %c0_57 = arith.constant 0 : index
    %c0_58 = arith.constant 0 : index
    %c0_59 = arith.constant 0 : index
    %68 = vector.load %arg11[%c0_57, %c0_58, %c0_59] : memref<1x32x32xbf16, #tpu.memory_space<vmem>>, vector<1x32x32xbf16>
    %69 = vector.shape_cast %68 : vector<1x32x32xbf16> to vector<32x32xbf16>
    %cst_60 = arith.constant dense<0.000000e+00> : vector<64x32xf32>
    %70 = tpu.matmul %67, %69, %cst_60 {dimension_numbers = #tpu.dot_dimension_numbers<[1], [0], [0], [1], [0, 0, 1, 1], [], []>} : vector<64x32xbf16>, vector<32x32xbf16>, vector<64x32xf32> -> vector<64x32xf32>
    %c0_61 = arith.constant 0 : index
    %c0_62 = arith.constant 0 : index
    %c0_63 = arith.constant 0 : index
    %71 = vector.load %arg12[%c0_61, %c0_62, %c0_63] : memref<1x1x32xf32, #tpu.memory_space<vmem>>, vector<1x1x32xf32>
    %72 = vector.shape_cast %71 : vector<1x1x32xf32> to vector<1x32xf32>
    %73 = vector.broadcast %72 : vector<1x32xf32> to vector<64x32xf32>
    %74 = arith.addf %70, %73 : vector<64x32xf32>
    %cst_64 = arith.constant 0.000000e+00 : f32
    %75 = vector.broadcast %cst_64 : f32 to vector<64x32xf32>
    %76 = arith.maximumf %74, %75 : vector<64x32xf32>
    %77 = arith.truncf %76 : vector<64x32xf32> to vector<64x32xbf16>
    %cst_65 = arith.constant 0.000000e+00 : bf16
    %78 = vector.broadcast %cst_65 : bf16 to vector<16x32xbf16>
    %c0_66 = arith.constant 0 : index
    %c0_67 = arith.constant 0 : index
    %79 = vector.load %arg23[%c0_66, %c0_67] : memref<96x32xbf16, #tpu.memory_space<vmem>>, vector<16x32xbf16>
    tpu.vector_store %arg23[%c0_66, %c0_67], %78 {strides = array<i32>} : memref<96x32xbf16, #tpu.memory_space<vmem>>, vector<16x32xbf16>,
    %c80_68 = arith.constant 80 : index
    %c0_69 = arith.constant 0 : index
    %80 = vector.load %arg23[%c80_68, %c0_69] : memref<96x32xbf16, #tpu.memory_space<vmem>>, vector<16x32xbf16>
    tpu.vector_store %arg23[%c80_68, %c0_69], %78 {strides = array<i32>} : memref<96x32xbf16, #tpu.memory_space<vmem>>, vector<16x32xbf16>,
    %c16_70 = arith.constant 16 : index
    %c0_71 = arith.constant 0 : index
    %81 = vector.load %arg23[%c16_70, %c0_71] : memref<96x32xbf16, #tpu.memory_space<vmem>>, vector<64x32xbf16>
    tpu.vector_store %arg23[%c16_70, %c0_71], %77 {strides = array<i32>} : memref<96x32xbf16, #tpu.memory_space<vmem>>, vector<64x32xbf16>,
    %c7_72 = arith.constant 7 : index
    %c0_73 = arith.constant 0 : index
    %82 = vector.load %arg23[%c7_72, %c0_73] : memref<96x32xbf16, #tpu.memory_space<vmem>>, vector<64x32xbf16>
    %83 = vector.broadcast %20 : vector<64x1xbf16> to vector<64x32xbf16>
    %84 = arith.mulf %82, %83 : vector<64x32xbf16>
    %c0_74 = arith.constant 0 : index
    %c0_75 = arith.constant 0 : index
    %85 = vector.load %arg24[%c0_74, %c0_75] : memref<64x288xbf16, #tpu.memory_space<vmem>>, vector<64x32xbf16>
    tpu.vector_store %arg24[%c0_74, %c0_75], %84 {strides = array<i32>} : memref<64x288xbf16, #tpu.memory_space<vmem>>, vector<64x32xbf16>,
    %c8_76 = arith.constant 8 : index
    %c0_77 = arith.constant 0 : index
    %86 = vector.load %arg23[%c8_76, %c0_77] : memref<96x32xbf16, #tpu.memory_space<vmem>>, vector<64x32xbf16>
    %c0_78 = arith.constant 0 : index
    %c32_79 = arith.constant 32 : index
    %87 = vector.load %arg24[%c0_78, %c32_79] : memref<64x288xbf16, #tpu.memory_space<vmem>>, vector<64x32xbf16>
    tpu.vector_store %arg24[%c0_78, %c32_79], %86 {strides = array<i32>} : memref<64x288xbf16, #tpu.memory_space<vmem>>, vector<64x32xbf16>,
    %c9_80 = arith.constant 9 : index
    %c0_81 = arith.constant 0 : index
    %88 = vector.load %arg23[%c9_80, %c0_81] : memref<96x32xbf16, #tpu.memory_space<vmem>>, vector<64x32xbf16>
    %89 = vector.broadcast %21 : vector<64x1xbf16> to vector<64x32xbf16>
    %90 = arith.mulf %88, %89 : vector<64x32xbf16>
    %c0_82 = arith.constant 0 : index
    %c64_83 = arith.constant 64 : index
    %91 = vector.load %arg24[%c0_82, %c64_83] : memref<64x288xbf16, #tpu.memory_space<vmem>>, vector<64x32xbf16>
    tpu.vector_store %arg24[%c0_82, %c64_83], %90 {strides = array<i32>} : memref<64x288xbf16, #tpu.memory_space<vmem>>, vector<64x32xbf16>,
    %c15_84 = arith.constant 15 : index
    %c0_85 = arith.constant 0 : index
    %92 = vector.load %arg23[%c15_84, %c0_85] : memref<96x32xbf16, #tpu.memory_space<vmem>>, vector<64x32xbf16>
    %93 = vector.broadcast %20 : vector<64x1xbf16> to vector<64x32xbf16>
    %94 = arith.mulf %92, %93 : vector<64x32xbf16>
    %c0_86 = arith.constant 0 : index
    %c96 = arith.constant 96 : index
    %95 = vector.load %arg24[%c0_86, %c96] : memref<64x288xbf16, #tpu.memory_space<vmem>>, vector<64x32xbf16>
    tpu.vector_store %arg24[%c0_86, %c96], %94 {strides = array<i32>} : memref<64x288xbf16, #tpu.memory_space<vmem>>, vector<64x32xbf16>,
    %c16_87 = arith.constant 16 : index
    %c0_88 = arith.constant 0 : index
    %96 = vector.load %arg23[%c16_87, %c0_88] : memref<96x32xbf16, #tpu.memory_space<vmem>>, vector<64x32xbf16>
    %c0_89 = arith.constant 0 : index
    %c128 = arith.constant 128 : index
    %97 = vector.load %arg24[%c0_89, %c128] : memref<64x288xbf16, #tpu.memory_space<vmem>>, vector<64x32xbf16>
    tpu.vector_store %arg24[%c0_89, %c128], %96 {strides = array<i32>} : memref<64x288xbf16, #tpu.memory_space<vmem>>, vector<64x32xbf16>,
    %c17_90 = arith.constant 17 : index
    %c0_91 = arith.constant 0 : index
    %98 = vector.load %arg23[%c17_90, %c0_91] : memref<96x32xbf16, #tpu.memory_space<vmem>>, vector<64x32xbf16>
    %99 = vector.broadcast %21 : vector<64x1xbf16> to vector<64x32xbf16>
    %100 = arith.mulf %98, %99 : vector<64x32xbf16>
    %c0_92 = arith.constant 0 : index
    %c160 = arith.constant 160 : index
    %101 = vector.load %arg24[%c0_92, %c160] : memref<64x288xbf16, #tpu.memory_space<vmem>>, vector<64x32xbf16>
    tpu.vector_store %arg24[%c0_92, %c160], %100 {strides = array<i32>} : memref<64x288xbf16, #tpu.memory_space<vmem>>, vector<64x32xbf16>,
    %c23_93 = arith.constant 23 : index
    %c0_94 = arith.constant 0 : index
    %102 = vector.load %arg23[%c23_93, %c0_94] : memref<96x32xbf16, #tpu.memory_space<vmem>>, vector<64x32xbf16>
    %103 = vector.broadcast %20 : vector<64x1xbf16> to vector<64x32xbf16>
    %104 = arith.mulf %102, %103 : vector<64x32xbf16>
    %c0_95 = arith.constant 0 : index
    %c192 = arith.constant 192 : index
    %105 = vector.load %arg24[%c0_95, %c192] : memref<64x288xbf16, #tpu.memory_space<vmem>>, vector<64x32xbf16>
    tpu.vector_store %arg24[%c0_95, %c192], %104 {strides = array<i32>} : memref<64x288xbf16, #tpu.memory_space<vmem>>, vector<64x32xbf16>,
    %c24_96 = arith.constant 24 : index
    %c0_97 = arith.constant 0 : index
    %106 = vector.load %arg23[%c24_96, %c0_97] : memref<96x32xbf16, #tpu.memory_space<vmem>>, vector<64x32xbf16>
    %c0_98 = arith.constant 0 : index
    %c224 = arith.constant 224 : index
    %107 = vector.load %arg24[%c0_98, %c224] : memref<64x288xbf16, #tpu.memory_space<vmem>>, vector<64x32xbf16>
    tpu.vector_store %arg24[%c0_98, %c224], %106 {strides = array<i32>} : memref<64x288xbf16, #tpu.memory_space<vmem>>, vector<64x32xbf16>,
    %c25_99 = arith.constant 25 : index
    %c0_100 = arith.constant 0 : index
    %108 = vector.load %arg23[%c25_99, %c0_100] : memref<96x32xbf16, #tpu.memory_space<vmem>>, vector<64x32xbf16>
    %109 = vector.broadcast %21 : vector<64x1xbf16> to vector<64x32xbf16>
    %110 = arith.mulf %108, %109 : vector<64x32xbf16>
    %c0_101 = arith.constant 0 : index
    %c256 = arith.constant 256 : index
    %111 = vector.load %arg24[%c0_101, %c256] : memref<64x288xbf16, #tpu.memory_space<vmem>>, vector<64x32xbf16>
    tpu.vector_store %arg24[%c0_101, %c256], %110 {strides = array<i32>} : memref<64x288xbf16, #tpu.memory_space<vmem>>, vector<64x32xbf16>,
    %c0_102 = arith.constant 0 : index
    %c0_103 = arith.constant 0 : index
    %112 = vector.load %arg24[%c0_102, %c0_103] : memref<64x288xbf16, #tpu.memory_space<vmem>>, vector<64x288xbf16>
    %c0_104 = arith.constant 0 : index
    %c0_105 = arith.constant 0 : index
    %c0_106 = arith.constant 0 : index
    %113 = vector.load %arg13[%c0_104, %c0_105, %c0_106] : memref<1x288x8xbf16, #tpu.memory_space<vmem>>, vector<1x288x8xbf16>
    %114 = vector.shape_cast %113 : vector<1x288x8xbf16> to vector<288x8xbf16>
    %cst_107 = arith.constant dense<0.000000e+00> : vector<64x8xf32>
    %115 = tpu.matmul %112, %114, %cst_107 {dimension_numbers = #tpu.dot_dimension_numbers<[1], [0], [0], [1], [0, 0, 1, 1], [], []>} : vector<64x288xbf16>, vector<288x8xbf16>, vector<64x8xf32> -> vector<64x8xf32>
    %c0_108 = arith.constant 0 : index
    %c0_109 = arith.constant 0 : index
    %c0_110 = arith.constant 0 : index
    %116 = vector.load %arg14[%c0_108, %c0_109, %c0_110] : memref<1x1x8xf32, #tpu.memory_space<vmem>>, vector<1x1x8xf32>
    %117 = vector.shape_cast %116 : vector<1x1x8xf32> to vector<1x8xf32>
    %118 = vector.broadcast %117 : vector<1x8xf32> to vector<64x8xf32>
    %119 = arith.addf %115, %118 : vector<64x8xf32>
    %c0_111 = arith.constant 0 : index
    %c0_112 = arith.constant 0 : index
    %c0_113 = arith.constant 0 : index
    %120 = vector.load %arg15[%c0_111, %c0_112, %c0_113] : memref<1x288x8xbf16, #tpu.memory_space<vmem>>, vector<1x288x8xbf16>
    %121 = vector.shape_cast %120 : vector<1x288x8xbf16> to vector<288x8xbf16>
    %cst_114 = arith.constant dense<0.000000e+00> : vector<64x8xf32>
    %122 = tpu.matmul %112, %121, %cst_114 {dimension_numbers = #tpu.dot_dimension_numbers<[1], [0], [0], [1], [0, 0, 1, 1], [], []>} : vector<64x288xbf16>, vector<288x8xbf16>, vector<64x8xf32> -> vector<64x8xf32>
    %c0_115 = arith.constant 0 : index
    %c0_116 = arith.constant 0 : index
    %c0_117 = arith.constant 0 : index
    %123 = vector.load %arg16[%c0_115, %c0_116, %c0_117] : memref<1x1x8xf32, #tpu.memory_space<vmem>>, vector<1x1x8xf32>
    %124 = vector.shape_cast %123 : vector<1x1x8xf32> to vector<1x8xf32>
    %125 = vector.broadcast %124 : vector<1x8xf32> to vector<64x8xf32>
    %126 = arith.addf %122, %125 : vector<64x8xf32>
    %c0_118 = arith.constant 0 : index
    %c0_119 = arith.constant 0 : index
    %c0_120 = arith.constant 0 : index
    %127 = vector.load %arg17[%c0_118, %c0_119, %c0_120] : memref<1x1x8xf32, #tpu.memory_space<vmem>>, vector<1x1x8xf32>
    %128 = vector.shape_cast %127 : vector<1x1x8xf32> to vector<1x8xf32>
    %129 = math.tanh %119 : vector<64x8xf32>
    %130 = vector.broadcast %128 : vector<1x8xf32> to vector<64x8xf32>
    %131 = arith.mulf %130, %129 : vector<64x8xf32>
    %132 = arith.addf %16, %126 : vector<64x8xf32>
    %133 = math.exp %131 : vector<64x8xf32>
    %134 = arith.mulf %132, %133 : vector<64x8xf32>
    %c0_121 = arith.constant 0 : index
    %c0_122 = arith.constant 0 : index
    %c0_123 = arith.constant 0 : index
    %135 = vector.load %arg19[%c0_121, %c0_122, %c0_123] : memref<1x64x16xf32, #tpu.memory_space<vmem>>, vector<1x64x8xf32>
    %136 = vector.shape_cast %135 : vector<1x64x8xf32> to vector<64x8xf32>
    %137 = vector.shape_cast %134 : vector<64x8xf32> to vector<1x64x8xf32>
    tpu.vector_store %arg19[%c0_121, %c0_122, %c0_123], %137 {strides = array<i32>} : memref<1x64x16xf32, #tpu.memory_space<vmem>>, vector<1x64x8xf32>,
    %c0_124 = arith.constant 0 : index
    %c0_125 = arith.constant 0 : index
    %c8_126 = arith.constant 8 : index
    %138 = vector.load %arg19[%c0_124, %c0_125, %c8_126] : memref<1x64x16xf32, #tpu.memory_space<vmem>>, vector<1x64x8xf32>
    %139 = vector.shape_cast %138 : vector<1x64x8xf32> to vector<64x8xf32>
    %140 = vector.shape_cast %19 : vector<64x8xf32> to vector<1x64x8xf32>
    tpu.vector_store %arg19[%c0_124, %c0_125, %c8_126], %140 {strides = array<i32>} : memref<1x64x16xf32, #tpu.memory_space<vmem>>, vector<1x64x8xf32>,
    %cst_127 = arith.constant dense<0.000000e+00> : vector<64xf32>
    %141 = vector.multi_reduction <add>, %131, %cst_127 [1] : vector<64x8xf32> to vector<64xf32>
    %142 = vector.shape_cast %141 : vector<64xf32> to vector<64x1xf32>
    %cst_128 = arith.constant dense<0.000000e+00> : vector<1xf32>
    %143 = vector.multi_reduction <add>, %142, %cst_128 [0] : vector<64x1xf32> to vector<1xf32>
    %144 = vector.shape_cast %143 : vector<1xf32> to vector<1x1xf32>
    %c0_129 = arith.constant 0 : index
    %c0_130 = arith.constant 0 : index
    %c0_131 = arith.constant 0 : index
    %145 = vector.load %arg20[%c0_129, %c0_130, %c0_131] : memref<1x1x1xf32, #tpu.memory_space<vmem>>, vector<1x1x1xf32>
    %146 = vector.shape_cast %145 : vector<1x1x1xf32> to vector<1x1xf32>
    %c0_132 = arith.constant 0 : index
    %c0_133 = arith.constant 0 : index
    %c0_134 = arith.constant 0 : index
    %147 = vector.load %arg18[%c0_132, %c0_133, %c0_134] : memref<1x1x1xf32, #tpu.memory_space<vmem>>, vector<1x1x1xf32>
    %148 = vector.shape_cast %147 : vector<1x1x1xf32> to vector<1x1xf32>
    %149 = arith.addf %146, %148 : vector<1x1xf32>
    %150 = arith.addf %149, %144 : vector<1x1xf32>
    %c0_135 = arith.constant 0 : index
    %c0_136 = arith.constant 0 : index
    %c0_137 = arith.constant 0 : index
    %151 = vector.load %arg20[%c0_135, %c0_136, %c0_137] : memref<1x1x1xf32, #tpu.memory_space<vmem>>, vector<1x1x1xf32>
    %152 = vector.shape_cast %151 : vector<1x1x1xf32> to vector<1x1xf32>
    %153 = vector.shape_cast %150 : vector<1x1xf32> to vector<1x1x1xf32>
    tpu.vector_store %arg20[%c0_135, %c0_136, %c0_137], %153 {strides = array<i32>} : memref<1x1x1xf32, #tpu.memory_space<vmem>>, vector<1x1x1xf32>,
    return
  }
  func.func @transform_0(%arg0: i32, %arg1: i32) -> (i32, i32, i32) {
    %c0_i32 = arith.constant 0 : i32
    %c0_i32_0 = arith.constant 0 : i32
    %c0_i32_1 = arith.constant 0 : i32
    return %arg0, %c0_i32, %c0_i32_0 : i32, i32, i32
  }
  func.func @transform_1(%arg0: i32, %arg1: i32) -> (i32, i32, i32) {
    %c0_i32 = arith.constant 0 : i32
    %c0_i32_0 = arith.constant 0 : i32
    %c0_i32_1 = arith.constant 0 : i32
    return %arg0, %c0_i32, %c0_i32_0 : i32, i32, i32
  }
  func.func @transform_2(%arg0: i32, %arg1: i32) -> (i32, i32) {
    %c0_i32 = arith.constant 0 : i32
    %c0_i32_0 = arith.constant 0 : i32
    %c0_i32_1 = arith.constant 0 : i32
    return %c0_i32, %c0_i32_0 : i32, i32
  }
  func.func @transform_3(%arg0: i32, %arg1: i32) -> (i32, i32, i32) {
    %c0_i32 = arith.constant 0 : i32
    %c0_i32_0 = arith.constant 0 : i32
    %c0_i32_1 = arith.constant 0 : i32
    return %arg1, %c0_i32, %c0_i32_0 : i32, i32, i32
  }
  func.func @transform_4(%arg0: i32, %arg1: i32) -> (i32, i32, i32) {
    %c0_i32 = arith.constant 0 : i32
    %c0_i32_0 = arith.constant 0 : i32
    %c0_i32_1 = arith.constant 0 : i32
    return %arg1, %c0_i32, %c0_i32_0 : i32, i32, i32
  }
  func.func @transform_5(%arg0: i32, %arg1: i32) -> (i32, i32, i32) {
    %c0_i32 = arith.constant 0 : i32
    %c0_i32_0 = arith.constant 0 : i32
    %c0_i32_1 = arith.constant 0 : i32
    return %arg1, %c0_i32, %c0_i32_0 : i32, i32, i32
  }
  func.func @transform_6(%arg0: i32, %arg1: i32) -> (i32, i32, i32) {
    %c0_i32 = arith.constant 0 : i32
    %c0_i32_0 = arith.constant 0 : i32
    %c0_i32_1 = arith.constant 0 : i32
    return %arg1, %c0_i32, %c0_i32_0 : i32, i32, i32
  }
  func.func @transform_7(%arg0: i32, %arg1: i32) -> (i32, i32, i32) {
    %c0_i32 = arith.constant 0 : i32
    %c0_i32_0 = arith.constant 0 : i32
    %c0_i32_1 = arith.constant 0 : i32
    return %arg1, %c0_i32, %c0_i32_0 : i32, i32, i32
  }
  func.func @transform_8(%arg0: i32, %arg1: i32) -> (i32, i32, i32) {
    %c0_i32 = arith.constant 0 : i32
    %c0_i32_0 = arith.constant 0 : i32
    %c0_i32_1 = arith.constant 0 : i32
    return %arg1, %c0_i32, %c0_i32_0 : i32, i32, i32
  }
  func.func @transform_9(%arg0: i32, %arg1: i32) -> (i32, i32, i32) {
    %c0_i32 = arith.constant 0 : i32
    %c0_i32_0 = arith.constant 0 : i32
    %c0_i32_1 = arith.constant 0 : i32
    return %arg1, %c0_i32, %c0_i32_0 : i32, i32, i32
  }
  func.func @transform_10(%arg0: i32, %arg1: i32) -> (i32, i32, i32) {
    %c0_i32 = arith.constant 0 : i32
    %c0_i32_0 = arith.constant 0 : i32
    %c0_i32_1 = arith.constant 0 : i32
    return %arg1, %c0_i32, %c0_i32_0 : i32, i32, i32
  }
  func.func @transform_11(%arg0: i32, %arg1: i32) -> (i32, i32, i32) {
    %c0_i32 = arith.constant 0 : i32
    %c0_i32_0 = arith.constant 0 : i32
    %c0_i32_1 = arith.constant 0 : i32
    return %arg1, %c0_i32, %c0_i32_0 : i32, i32, i32
  }
  func.func @transform_12(%arg0: i32, %arg1: i32) -> (i32, i32, i32) {
    %c0_i32 = arith.constant 0 : i32
    %c0_i32_0 = arith.constant 0 : i32
    %c0_i32_1 = arith.constant 0 : i32
    return %arg1, %c0_i32, %c0_i32_0 : i32, i32, i32
  }
  func.func @transform_13(%arg0: i32, %arg1: i32) -> (i32, i32, i32) {
    %c0_i32 = arith.constant 0 : i32
    %c0_i32_0 = arith.constant 0 : i32
    %c0_i32_1 = arith.constant 0 : i32
    return %arg1, %c0_i32, %c0_i32_0 : i32, i32, i32
  }
  func.func @transform_14(%arg0: i32, %arg1: i32) -> (i32, i32, i32) {
    %c0_i32 = arith.constant 0 : i32
    %c0_i32_0 = arith.constant 0 : i32
    %c0_i32_1 = arith.constant 0 : i32
    return %arg1, %c0_i32, %c0_i32_0 : i32, i32, i32
  }
  func.func @transform_15(%arg0: i32, %arg1: i32) -> (i32, i32, i32) {
    %c0_i32 = arith.constant 0 : i32
    %c0_i32_0 = arith.constant 0 : i32
    %c0_i32_1 = arith.constant 0 : i32
    return %arg1, %c0_i32, %c0_i32_0 : i32, i32, i32
  }
  func.func @transform_16(%arg0: i32, %arg1: i32) -> (i32, i32, i32) {
    %c0_i32 = arith.constant 0 : i32
    %c0_i32_0 = arith.constant 0 : i32
    %c0_i32_1 = arith.constant 0 : i32
    return %arg1, %c0_i32, %c0_i32_0 : i32, i32, i32
  }
  func.func @transform_17(%arg0: i32, %arg1: i32) -> (i32, i32, i32) {
    %c0_i32 = arith.constant 0 : i32
    %c0_i32_0 = arith.constant 0 : i32
    %c0_i32_1 = arith.constant 0 : i32
    return %arg0, %c0_i32, %c0_i32_0 : i32, i32, i32
  }
  func.func @transform_18(%arg0: i32, %arg1: i32) -> (i32, i32, i32) {
    %c0_i32 = arith.constant 0 : i32
    %c0_i32_0 = arith.constant 0 : i32
    %c0_i32_1 = arith.constant 0 : i32
    return %arg0, %c0_i32, %c0_i32_0 : i32, i32, i32
  }
}

module attributes {stable_mosaic.version = 11 : i64} {
  func.func @_flow_level_kernel(%arg0: i32, %arg1: i32, %arg2: memref<1x16x32xf32, #tpu.memory_space<vmem>>, %arg3: memref<1x1x1xf32, #tpu.memory_space<vmem>>, %arg4: memref<16x2xbf16, #tpu.memory_space<vmem>>, %arg5: memref<1x1x32xf32, #tpu.memory_space<vmem>>, %arg6: memref<1x1x32xf32, #tpu.memory_space<vmem>>, %arg7: memref<1x32x16xbf16, #tpu.memory_space<vmem>>, %arg8: memref<1x32x16xbf16, #tpu.memory_space<vmem>>, %arg9: memref<1x144x32xbf16, #tpu.memory_space<vmem>>, %arg10: memref<1x1x32xf32, #tpu.memory_space<vmem>>, %arg11: memref<1x32x32xbf16, #tpu.memory_space<vmem>>, %arg12: memref<1x1x32xf32, #tpu.memory_space<vmem>>, %arg13: memref<1x288x16xbf16, #tpu.memory_space<vmem>>, %arg14: memref<1x1x16xf32, #tpu.memory_space<vmem>>, %arg15: memref<1x288x16xbf16, #tpu.memory_space<vmem>>, %arg16: memref<1x1x16xf32, #tpu.memory_space<vmem>>, %arg17: memref<1x1x16xf32, #tpu.memory_space<vmem>>, %arg18: memref<1x1x1xf32, #tpu.memory_space<vmem>>, %arg19: memref<1x16x32xf32, #tpu.memory_space<vmem>>, %arg20: memref<1x1x1xf32, #tpu.memory_space<vmem>>, %arg21: memref<48x16xbf16, #tpu.memory_space<vmem>>, %arg22: memref<16x144xbf16, #tpu.memory_space<vmem>>, %arg23: memref<48x32xbf16, #tpu.memory_space<vmem>>, %arg24: memref<16x288xbf16, #tpu.memory_space<vmem>>) attributes {dimension_semantics = [#tpu.dimension_semantics<parallel>, #tpu.dimension_semantics<arbitrary>], iteration_bounds = array<i64: 2, 2>, scalar_prefetch = 0 : i64, scratch_operands = 4 : i64, tpu.core_type = #tpu.core_type<tc>, window_params = [{transform_indices = @transform_0, window_bounds = array<i64: 1, 16, 32>}, {transform_indices = @transform_1, window_bounds = array<i64: 1, 1, 1>}, {pipeline_mode = #tpu.pipeline_mode<synchronous>, transform_indices = @transform_2, window_bounds = array<i64: 16, 2>}, {transform_indices = @transform_3, window_bounds = array<i64: 1, 1, 32>}, {transform_indices = @transform_4, window_bounds = array<i64: 1, 1, 32>}, {transform_indices = @transform_5, window_bounds = array<i64: 1, 32, 16>}, {transform_indices = @transform_6, window_bounds = array<i64: 1, 32, 16>}, {transform_indices = @transform_7, window_bounds = array<i64: 1, 144, 32>}, {transform_indices = @transform_8, window_bounds = array<i64: 1, 1, 32>}, {transform_indices = @transform_9, window_bounds = array<i64: 1, 32, 32>}, {transform_indices = @transform_10, window_bounds = array<i64: 1, 1, 32>}, {transform_indices = @transform_11, window_bounds = array<i64: 1, 288, 16>}, {transform_indices = @transform_12, window_bounds = array<i64: 1, 1, 16>}, {transform_indices = @transform_13, window_bounds = array<i64: 1, 288, 16>}, {transform_indices = @transform_14, window_bounds = array<i64: 1, 1, 16>}, {transform_indices = @transform_15, window_bounds = array<i64: 1, 1, 16>}, {transform_indices = @transform_16, window_bounds = array<i64: 1, 1, 1>}, {transform_indices = @transform_17, window_bounds = array<i64: 1, 16, 32>}, {transform_indices = @transform_18, window_bounds = array<i64: 1, 1, 1>}]} {
    %c0_i32 = arith.constant 0 : i32
    %0 = arith.cmpi eq, %arg1, %c0_i32 : i32
    %1 = arith.extui %0 : i1 to i32
    %c0_i32_0 = arith.constant 0 : i32
    %2 = arith.cmpi ne, %1, %c0_i32_0 : i32
    scf.if %2 {
      %c0_139 = arith.constant 0 : index
      %c0_140 = arith.constant 0 : index
      %c0_141 = arith.constant 0 : index
      %154 = vector.load %arg2[%c0_139, %c0_140, %c0_141] : memref<1x16x32xf32, #tpu.memory_space<vmem>>, vector<1x16x32xf32>
      %155 = vector.shape_cast %154 : vector<1x16x32xf32> to vector<16x32xf32>
      %c0_142 = arith.constant 0 : index
      %c0_143 = arith.constant 0 : index
      %c0_144 = arith.constant 0 : index
      %156 = vector.load %arg19[%c0_142, %c0_143, %c0_144] : memref<1x16x32xf32, #tpu.memory_space<vmem>>, vector<1x16x32xf32>
      %157 = vector.shape_cast %156 : vector<1x16x32xf32> to vector<16x32xf32>
      %158 = vector.shape_cast %155 : vector<16x32xf32> to vector<1x16x32xf32>
      tpu.vector_store %arg19[%c0_142, %c0_143, %c0_144], %158 {strides = array<i32>} : memref<1x16x32xf32, #tpu.memory_space<vmem>>, vector<1x16x32xf32>,
      %c0_145 = arith.constant 0 : index
      %c0_146 = arith.constant 0 : index
      %c0_147 = arith.constant 0 : index
      %159 = vector.load %arg3[%c0_145, %c0_146, %c0_147] : memref<1x1x1xf32, #tpu.memory_space<vmem>>, vector<1x1x1xf32>
      %160 = vector.shape_cast %159 : vector<1x1x1xf32> to vector<1x1xf32>
      %c0_148 = arith.constant 0 : index
      %c0_149 = arith.constant 0 : index
      %c0_150 = arith.constant 0 : index
      %161 = vector.load %arg20[%c0_148, %c0_149, %c0_150] : memref<1x1x1xf32, #tpu.memory_space<vmem>>, vector<1x1x1xf32>
      %162 = vector.shape_cast %161 : vector<1x1x1xf32> to vector<1x1xf32>
      %163 = vector.shape_cast %160 : vector<1x1xf32> to vector<1x1x1xf32>
      tpu.vector_store %arg20[%c0_148, %c0_149, %c0_150], %163 {strides = array<i32>} : memref<1x1x1xf32, #tpu.memory_space<vmem>>, vector<1x1x1xf32>,
    } else {
    }
    %c0 = arith.constant 0 : index
    %c0_1 = arith.constant 0 : index
    %c0_2 = arith.constant 0 : index
    %3 = vector.load %arg19[%c0, %c0_1, %c0_2] : memref<1x16x32xf32, #tpu.memory_space<vmem>>, vector<1x16x32xf32>
    %4 = vector.shape_cast %3 : vector<1x16x32xf32> to vector<16x32xf32>
    %c0_3 = arith.constant 0 : index
    %c0_4 = arith.constant 0 : index
    %c0_5 = arith.constant 0 : index
    %5 = vector.load %arg5[%c0_3, %c0_4, %c0_5] : memref<1x1x32xf32, #tpu.memory_space<vmem>>, vector<1x1x32xf32>
    %6 = vector.shape_cast %5 : vector<1x1x32xf32> to vector<1x32xf32>
    %7 = vector.broadcast %6 : vector<1x32xf32> to vector<16x32xf32>
    %8 = arith.addf %4, %7 : vector<16x32xf32>
    %c0_6 = arith.constant 0 : index
    %c0_7 = arith.constant 0 : index
    %c0_8 = arith.constant 0 : index
    %9 = vector.load %arg6[%c0_6, %c0_7, %c0_8] : memref<1x1x32xf32, #tpu.memory_space<vmem>>, vector<1x1x32xf32>
    %10 = vector.shape_cast %9 : vector<1x1x32xf32> to vector<1x32xf32>
    %11 = vector.broadcast %10 : vector<1x32xf32> to vector<16x32xf32>
    %12 = arith.mulf %8, %11 : vector<16x32xf32>
    %13 = arith.truncf %12 : vector<16x32xf32> to vector<16x32xbf16>
    %c0_9 = arith.constant 0 : index
    %c0_10 = arith.constant 0 : index
    %c0_11 = arith.constant 0 : index
    %14 = vector.load %arg7[%c0_9, %c0_10, %c0_11] : memref<1x32x16xbf16, #tpu.memory_space<vmem>>, vector<1x32x16xbf16>
    %15 = vector.shape_cast %14 : vector<1x32x16xbf16> to vector<32x16xbf16>
    %cst = arith.constant dense<0.000000e+00> : vector<16x16xf32>
    %16 = tpu.matmul %13, %15, %cst {dimension_numbers = #tpu.dot_dimension_numbers<[1], [0], [0], [1], [0, 0, 1, 1], [], []>} : vector<16x32xbf16>, vector<32x16xbf16>, vector<16x16xf32> -> vector<16x16xf32>
    %c0_12 = arith.constant 0 : index
    %c0_13 = arith.constant 0 : index
    %c0_14 = arith.constant 0 : index
    %17 = vector.load %arg8[%c0_12, %c0_13, %c0_14] : memref<1x32x16xbf16, #tpu.memory_space<vmem>>, vector<1x32x16xbf16>
    %18 = vector.shape_cast %17 : vector<1x32x16xbf16> to vector<32x16xbf16>
    %cst_15 = arith.constant dense<0.000000e+00> : vector<16x16xf32>
    %19 = tpu.matmul %13, %18, %cst_15 {dimension_numbers = #tpu.dot_dimension_numbers<[1], [0], [0], [1], [0, 0, 1, 1], [], []>} : vector<16x32xbf16>, vector<32x16xbf16>, vector<16x16xf32> -> vector<16x16xf32>
    %c0_16 = arith.constant 0 : index
    %c0_17 = arith.constant 0 : index
    %20 = vector.load %arg4[%c0_16, %c0_17] : memref<16x2xbf16, #tpu.memory_space<vmem>>, vector<16x1xbf16>
    %c0_18 = arith.constant 0 : index
    %c1 = arith.constant 1 : index
    %21 = vector.load %arg4[%c0_18, %c1] : memref<16x2xbf16, #tpu.memory_space<vmem>>, vector<16x1xbf16>
    %22 = arith.truncf %19 : vector<16x16xf32> to vector<16x16xbf16>
    %cst_19 = arith.constant 0.000000e+00 : bf16
    %23 = vector.broadcast %cst_19 : bf16 to vector<16x16xbf16>
    %c0_20 = arith.constant 0 : index
    %c0_21 = arith.constant 0 : index
    %24 = vector.load %arg21[%c0_20, %c0_21] : memref<48x16xbf16, #tpu.memory_space<vmem>>, vector<16x16xbf16>
    tpu.vector_store %arg21[%c0_20, %c0_21], %23 {strides = array<i32>} : memref<48x16xbf16, #tpu.memory_space<vmem>>, vector<16x16xbf16>,
    %c32 = arith.constant 32 : index
    %c0_22 = arith.constant 0 : index
    %25 = vector.load %arg21[%c32, %c0_22] : memref<48x16xbf16, #tpu.memory_space<vmem>>, vector<16x16xbf16>
    tpu.vector_store %arg21[%c32, %c0_22], %23 {strides = array<i32>} : memref<48x16xbf16, #tpu.memory_space<vmem>>, vector<16x16xbf16>,
    %c16 = arith.constant 16 : index
    %c0_23 = arith.constant 0 : index
    %26 = vector.load %arg21[%c16, %c0_23] : memref<48x16xbf16, #tpu.memory_space<vmem>>, vector<16x16xbf16>
    tpu.vector_store %arg21[%c16, %c0_23], %22 {strides = array<i32>} : memref<48x16xbf16, #tpu.memory_space<vmem>>, vector<16x16xbf16>,
    %c11 = arith.constant 11 : index
    %c0_24 = arith.constant 0 : index
    %27 = vector.load %arg21[%c11, %c0_24] : memref<48x16xbf16, #tpu.memory_space<vmem>>, vector<16x16xbf16>
    %28 = vector.broadcast %20 : vector<16x1xbf16> to vector<16x16xbf16>
    %29 = arith.mulf %27, %28 : vector<16x16xbf16>
    %c0_25 = arith.constant 0 : index
    %c0_26 = arith.constant 0 : index
    %30 = vector.load %arg22[%c0_25, %c0_26] : memref<16x144xbf16, #tpu.memory_space<vmem>>, vector<16x16xbf16>
    tpu.vector_store %arg22[%c0_25, %c0_26], %29 {strides = array<i32>} : memref<16x144xbf16, #tpu.memory_space<vmem>>, vector<16x16xbf16>,
    %c12 = arith.constant 12 : index
    %c0_27 = arith.constant 0 : index
    %31 = vector.load %arg21[%c12, %c0_27] : memref<48x16xbf16, #tpu.memory_space<vmem>>, vector<16x16xbf16>
    %c0_28 = arith.constant 0 : index
    %c16_29 = arith.constant 16 : index
    %32 = vector.load %arg22[%c0_28, %c16_29] : memref<16x144xbf16, #tpu.memory_space<vmem>>, vector<16x16xbf16>
    tpu.vector_store %arg22[%c0_28, %c16_29], %31 {strides = array<i32>} : memref<16x144xbf16, #tpu.memory_space<vmem>>, vector<16x16xbf16>,
    %c13 = arith.constant 13 : index
    %c0_30 = arith.constant 0 : index
    %33 = vector.load %arg21[%c13, %c0_30] : memref<48x16xbf16, #tpu.memory_space<vmem>>, vector<16x16xbf16>
    %34 = vector.broadcast %21 : vector<16x1xbf16> to vector<16x16xbf16>
    %35 = arith.mulf %33, %34 : vector<16x16xbf16>
    %c0_31 = arith.constant 0 : index
    %c32_32 = arith.constant 32 : index
    %36 = vector.load %arg22[%c0_31, %c32_32] : memref<16x144xbf16, #tpu.memory_space<vmem>>, vector<16x16xbf16>
    tpu.vector_store %arg22[%c0_31, %c32_32], %35 {strides = array<i32>} : memref<16x144xbf16, #tpu.memory_space<vmem>>, vector<16x16xbf16>,
    %c15 = arith.constant 15 : index
    %c0_33 = arith.constant 0 : index
    %37 = vector.load %arg21[%c15, %c0_33] : memref<48x16xbf16, #tpu.memory_space<vmem>>, vector<16x16xbf16>
    %38 = vector.broadcast %20 : vector<16x1xbf16> to vector<16x16xbf16>
    %39 = arith.mulf %37, %38 : vector<16x16xbf16>
    %c0_34 = arith.constant 0 : index
    %c48 = arith.constant 48 : index
    %40 = vector.load %arg22[%c0_34, %c48] : memref<16x144xbf16, #tpu.memory_space<vmem>>, vector<16x16xbf16>
    tpu.vector_store %arg22[%c0_34, %c48], %39 {strides = array<i32>} : memref<16x144xbf16, #tpu.memory_space<vmem>>, vector<16x16xbf16>,
    %c16_35 = arith.constant 16 : index
    %c0_36 = arith.constant 0 : index
    %41 = vector.load %arg21[%c16_35, %c0_36] : memref<48x16xbf16, #tpu.memory_space<vmem>>, vector<16x16xbf16>
    %c0_37 = arith.constant 0 : index
    %c64 = arith.constant 64 : index
    %42 = vector.load %arg22[%c0_37, %c64] : memref<16x144xbf16, #tpu.memory_space<vmem>>, vector<16x16xbf16>
    tpu.vector_store %arg22[%c0_37, %c64], %41 {strides = array<i32>} : memref<16x144xbf16, #tpu.memory_space<vmem>>, vector<16x16xbf16>,
    %c17 = arith.constant 17 : index
    %c0_38 = arith.constant 0 : index
    %43 = vector.load %arg21[%c17, %c0_38] : memref<48x16xbf16, #tpu.memory_space<vmem>>, vector<16x16xbf16>
    %44 = vector.broadcast %21 : vector<16x1xbf16> to vector<16x16xbf16>
    %45 = arith.mulf %43, %44 : vector<16x16xbf16>
    %c0_39 = arith.constant 0 : index
    %c80 = arith.constant 80 : index
    %46 = vector.load %arg22[%c0_39, %c80] : memref<16x144xbf16, #tpu.memory_space<vmem>>, vector<16x16xbf16>
    tpu.vector_store %arg22[%c0_39, %c80], %45 {strides = array<i32>} : memref<16x144xbf16, #tpu.memory_space<vmem>>, vector<16x16xbf16>,
    %c19 = arith.constant 19 : index
    %c0_40 = arith.constant 0 : index
    %47 = vector.load %arg21[%c19, %c0_40] : memref<48x16xbf16, #tpu.memory_space<vmem>>, vector<16x16xbf16>
    %48 = vector.broadcast %20 : vector<16x1xbf16> to vector<16x16xbf16>
    %49 = arith.mulf %47, %48 : vector<16x16xbf16>
    %c0_41 = arith.constant 0 : index
    %c96 = arith.constant 96 : index
    %50 = vector.load %arg22[%c0_41, %c96] : memref<16x144xbf16, #tpu.memory_space<vmem>>, vector<16x16xbf16>
    tpu.vector_store %arg22[%c0_41, %c96], %49 {strides = array<i32>} : memref<16x144xbf16, #tpu.memory_space<vmem>>, vector<16x16xbf16>,
    %c20 = arith.constant 20 : index
    %c0_42 = arith.constant 0 : index
    %51 = vector.load %arg21[%c20, %c0_42] : memref<48x16xbf16, #tpu.memory_space<vmem>>, vector<16x16xbf16>
    %c0_43 = arith.constant 0 : index
    %c112 = arith.constant 112 : index
    %52 = vector.load %arg22[%c0_43, %c112] : memref<16x144xbf16, #tpu.memory_space<vmem>>, vector<16x16xbf16>
    tpu.vector_store %arg22[%c0_43, %c112], %51 {strides = array<i32>} : memref<16x144xbf16, #tpu.memory_space<vmem>>, vector<16x16xbf16>,
    %c21 = arith.constant 21 : index
    %c0_44 = arith.constant 0 : index
    %53 = vector.load %arg21[%c21, %c0_44] : memref<48x16xbf16, #tpu.memory_space<vmem>>, vector<16x16xbf16>
    %54 = vector.broadcast %21 : vector<16x1xbf16> to vector<16x16xbf16>
    %55 = arith.mulf %53, %54 : vector<16x16xbf16>
    %c0_45 = arith.constant 0 : index
    %c128 = arith.constant 128 : index
    %56 = vector.load %arg22[%c0_45, %c128] : memref<16x144xbf16, #tpu.memory_space<vmem>>, vector<16x16xbf16>
    tpu.vector_store %arg22[%c0_45, %c128], %55 {strides = array<i32>} : memref<16x144xbf16, #tpu.memory_space<vmem>>, vector<16x16xbf16>,
    %c0_46 = arith.constant 0 : index
    %c0_47 = arith.constant 0 : index
    %57 = vector.load %arg22[%c0_46, %c0_47] : memref<16x144xbf16, #tpu.memory_space<vmem>>, vector<16x144xbf16>
    %c0_48 = arith.constant 0 : index
    %c0_49 = arith.constant 0 : index
    %c0_50 = arith.constant 0 : index
    %58 = vector.load %arg9[%c0_48, %c0_49, %c0_50] : memref<1x144x32xbf16, #tpu.memory_space<vmem>>, vector<1x144x32xbf16>
    %59 = vector.shape_cast %58 : vector<1x144x32xbf16> to vector<144x32xbf16>
    %cst_51 = arith.constant dense<0.000000e+00> : vector<16x32xf32>
    %60 = tpu.matmul %57, %59, %cst_51 {dimension_numbers = #tpu.dot_dimension_numbers<[1], [0], [0], [1], [0, 0, 1, 1], [], []>} : vector<16x144xbf16>, vector<144x32xbf16>, vector<16x32xf32> -> vector<16x32xf32>
    %c0_52 = arith.constant 0 : index
    %c0_53 = arith.constant 0 : index
    %c0_54 = arith.constant 0 : index
    %61 = vector.load %arg10[%c0_52, %c0_53, %c0_54] : memref<1x1x32xf32, #tpu.memory_space<vmem>>, vector<1x1x32xf32>
    %62 = vector.shape_cast %61 : vector<1x1x32xf32> to vector<1x32xf32>
    %63 = vector.broadcast %62 : vector<1x32xf32> to vector<16x32xf32>
    %64 = arith.addf %60, %63 : vector<16x32xf32>
    %cst_55 = arith.constant 0.000000e+00 : f32
    %65 = vector.broadcast %cst_55 : f32 to vector<16x32xf32>
    %66 = arith.maximumf %64, %65 : vector<16x32xf32>
    %67 = arith.truncf %66 : vector<16x32xf32> to vector<16x32xbf16>
    %c0_56 = arith.constant 0 : index
    %c0_57 = arith.constant 0 : index
    %c0_58 = arith.constant 0 : index
    %68 = vector.load %arg11[%c0_56, %c0_57, %c0_58] : memref<1x32x32xbf16, #tpu.memory_space<vmem>>, vector<1x32x32xbf16>
    %69 = vector.shape_cast %68 : vector<1x32x32xbf16> to vector<32x32xbf16>
    %cst_59 = arith.constant dense<0.000000e+00> : vector<16x32xf32>
    %70 = tpu.matmul %67, %69, %cst_59 {dimension_numbers = #tpu.dot_dimension_numbers<[1], [0], [0], [1], [0, 0, 1, 1], [], []>} : vector<16x32xbf16>, vector<32x32xbf16>, vector<16x32xf32> -> vector<16x32xf32>
    %c0_60 = arith.constant 0 : index
    %c0_61 = arith.constant 0 : index
    %c0_62 = arith.constant 0 : index
    %71 = vector.load %arg12[%c0_60, %c0_61, %c0_62] : memref<1x1x32xf32, #tpu.memory_space<vmem>>, vector<1x1x32xf32>
    %72 = vector.shape_cast %71 : vector<1x1x32xf32> to vector<1x32xf32>
    %73 = vector.broadcast %72 : vector<1x32xf32> to vector<16x32xf32>
    %74 = arith.addf %70, %73 : vector<16x32xf32>
    %cst_63 = arith.constant 0.000000e+00 : f32
    %75 = vector.broadcast %cst_63 : f32 to vector<16x32xf32>
    %76 = arith.maximumf %74, %75 : vector<16x32xf32>
    %77 = arith.truncf %76 : vector<16x32xf32> to vector<16x32xbf16>
    %cst_64 = arith.constant 0.000000e+00 : bf16
    %78 = vector.broadcast %cst_64 : bf16 to vector<16x32xbf16>
    %c0_65 = arith.constant 0 : index
    %c0_66 = arith.constant 0 : index
    %79 = vector.load %arg23[%c0_65, %c0_66] : memref<48x32xbf16, #tpu.memory_space<vmem>>, vector<16x32xbf16>
    tpu.vector_store %arg23[%c0_65, %c0_66], %78 {strides = array<i32>} : memref<48x32xbf16, #tpu.memory_space<vmem>>, vector<16x32xbf16>,
    %c32_67 = arith.constant 32 : index
    %c0_68 = arith.constant 0 : index
    %80 = vector.load %arg23[%c32_67, %c0_68] : memref<48x32xbf16, #tpu.memory_space<vmem>>, vector<16x32xbf16>
    tpu.vector_store %arg23[%c32_67, %c0_68], %78 {strides = array<i32>} : memref<48x32xbf16, #tpu.memory_space<vmem>>, vector<16x32xbf16>,
    %c16_69 = arith.constant 16 : index
    %c0_70 = arith.constant 0 : index
    %81 = vector.load %arg23[%c16_69, %c0_70] : memref<48x32xbf16, #tpu.memory_space<vmem>>, vector<16x32xbf16>
    tpu.vector_store %arg23[%c16_69, %c0_70], %77 {strides = array<i32>} : memref<48x32xbf16, #tpu.memory_space<vmem>>, vector<16x32xbf16>,
    %c11_71 = arith.constant 11 : index
    %c0_72 = arith.constant 0 : index
    %82 = vector.load %arg23[%c11_71, %c0_72] : memref<48x32xbf16, #tpu.memory_space<vmem>>, vector<16x32xbf16>
    %83 = vector.broadcast %20 : vector<16x1xbf16> to vector<16x32xbf16>
    %84 = arith.mulf %82, %83 : vector<16x32xbf16>
    %c0_73 = arith.constant 0 : index
    %c0_74 = arith.constant 0 : index
    %85 = vector.load %arg24[%c0_73, %c0_74] : memref<16x288xbf16, #tpu.memory_space<vmem>>, vector<16x32xbf16>
    tpu.vector_store %arg24[%c0_73, %c0_74], %84 {strides = array<i32>} : memref<16x288xbf16, #tpu.memory_space<vmem>>, vector<16x32xbf16>,
    %c12_75 = arith.constant 12 : index
    %c0_76 = arith.constant 0 : index
    %86 = vector.load %arg23[%c12_75, %c0_76] : memref<48x32xbf16, #tpu.memory_space<vmem>>, vector<16x32xbf16>
    %c0_77 = arith.constant 0 : index
    %c32_78 = arith.constant 32 : index
    %87 = vector.load %arg24[%c0_77, %c32_78] : memref<16x288xbf16, #tpu.memory_space<vmem>>, vector<16x32xbf16>
    tpu.vector_store %arg24[%c0_77, %c32_78], %86 {strides = array<i32>} : memref<16x288xbf16, #tpu.memory_space<vmem>>, vector<16x32xbf16>,
    %c13_79 = arith.constant 13 : index
    %c0_80 = arith.constant 0 : index
    %88 = vector.load %arg23[%c13_79, %c0_80] : memref<48x32xbf16, #tpu.memory_space<vmem>>, vector<16x32xbf16>
    %89 = vector.broadcast %21 : vector<16x1xbf16> to vector<16x32xbf16>
    %90 = arith.mulf %88, %89 : vector<16x32xbf16>
    %c0_81 = arith.constant 0 : index
    %c64_82 = arith.constant 64 : index
    %91 = vector.load %arg24[%c0_81, %c64_82] : memref<16x288xbf16, #tpu.memory_space<vmem>>, vector<16x32xbf16>
    tpu.vector_store %arg24[%c0_81, %c64_82], %90 {strides = array<i32>} : memref<16x288xbf16, #tpu.memory_space<vmem>>, vector<16x32xbf16>,
    %c15_83 = arith.constant 15 : index
    %c0_84 = arith.constant 0 : index
    %92 = vector.load %arg23[%c15_83, %c0_84] : memref<48x32xbf16, #tpu.memory_space<vmem>>, vector<16x32xbf16>
    %93 = vector.broadcast %20 : vector<16x1xbf16> to vector<16x32xbf16>
    %94 = arith.mulf %92, %93 : vector<16x32xbf16>
    %c0_85 = arith.constant 0 : index
    %c96_86 = arith.constant 96 : index
    %95 = vector.load %arg24[%c0_85, %c96_86] : memref<16x288xbf16, #tpu.memory_space<vmem>>, vector<16x32xbf16>
    tpu.vector_store %arg24[%c0_85, %c96_86], %94 {strides = array<i32>} : memref<16x288xbf16, #tpu.memory_space<vmem>>, vector<16x32xbf16>,
    %c16_87 = arith.constant 16 : index
    %c0_88 = arith.constant 0 : index
    %96 = vector.load %arg23[%c16_87, %c0_88] : memref<48x32xbf16, #tpu.memory_space<vmem>>, vector<16x32xbf16>
    %c0_89 = arith.constant 0 : index
    %c128_90 = arith.constant 128 : index
    %97 = vector.load %arg24[%c0_89, %c128_90] : memref<16x288xbf16, #tpu.memory_space<vmem>>, vector<16x32xbf16>
    tpu.vector_store %arg24[%c0_89, %c128_90], %96 {strides = array<i32>} : memref<16x288xbf16, #tpu.memory_space<vmem>>, vector<16x32xbf16>,
    %c17_91 = arith.constant 17 : index
    %c0_92 = arith.constant 0 : index
    %98 = vector.load %arg23[%c17_91, %c0_92] : memref<48x32xbf16, #tpu.memory_space<vmem>>, vector<16x32xbf16>
    %99 = vector.broadcast %21 : vector<16x1xbf16> to vector<16x32xbf16>
    %100 = arith.mulf %98, %99 : vector<16x32xbf16>
    %c0_93 = arith.constant 0 : index
    %c160 = arith.constant 160 : index
    %101 = vector.load %arg24[%c0_93, %c160] : memref<16x288xbf16, #tpu.memory_space<vmem>>, vector<16x32xbf16>
    tpu.vector_store %arg24[%c0_93, %c160], %100 {strides = array<i32>} : memref<16x288xbf16, #tpu.memory_space<vmem>>, vector<16x32xbf16>,
    %c19_94 = arith.constant 19 : index
    %c0_95 = arith.constant 0 : index
    %102 = vector.load %arg23[%c19_94, %c0_95] : memref<48x32xbf16, #tpu.memory_space<vmem>>, vector<16x32xbf16>
    %103 = vector.broadcast %20 : vector<16x1xbf16> to vector<16x32xbf16>
    %104 = arith.mulf %102, %103 : vector<16x32xbf16>
    %c0_96 = arith.constant 0 : index
    %c192 = arith.constant 192 : index
    %105 = vector.load %arg24[%c0_96, %c192] : memref<16x288xbf16, #tpu.memory_space<vmem>>, vector<16x32xbf16>
    tpu.vector_store %arg24[%c0_96, %c192], %104 {strides = array<i32>} : memref<16x288xbf16, #tpu.memory_space<vmem>>, vector<16x32xbf16>,
    %c20_97 = arith.constant 20 : index
    %c0_98 = arith.constant 0 : index
    %106 = vector.load %arg23[%c20_97, %c0_98] : memref<48x32xbf16, #tpu.memory_space<vmem>>, vector<16x32xbf16>
    %c0_99 = arith.constant 0 : index
    %c224 = arith.constant 224 : index
    %107 = vector.load %arg24[%c0_99, %c224] : memref<16x288xbf16, #tpu.memory_space<vmem>>, vector<16x32xbf16>
    tpu.vector_store %arg24[%c0_99, %c224], %106 {strides = array<i32>} : memref<16x288xbf16, #tpu.memory_space<vmem>>, vector<16x32xbf16>,
    %c21_100 = arith.constant 21 : index
    %c0_101 = arith.constant 0 : index
    %108 = vector.load %arg23[%c21_100, %c0_101] : memref<48x32xbf16, #tpu.memory_space<vmem>>, vector<16x32xbf16>
    %109 = vector.broadcast %21 : vector<16x1xbf16> to vector<16x32xbf16>
    %110 = arith.mulf %108, %109 : vector<16x32xbf16>
    %c0_102 = arith.constant 0 : index
    %c256 = arith.constant 256 : index
    %111 = vector.load %arg24[%c0_102, %c256] : memref<16x288xbf16, #tpu.memory_space<vmem>>, vector<16x32xbf16>
    tpu.vector_store %arg24[%c0_102, %c256], %110 {strides = array<i32>} : memref<16x288xbf16, #tpu.memory_space<vmem>>, vector<16x32xbf16>,
    %c0_103 = arith.constant 0 : index
    %c0_104 = arith.constant 0 : index
    %112 = vector.load %arg24[%c0_103, %c0_104] : memref<16x288xbf16, #tpu.memory_space<vmem>>, vector<16x288xbf16>
    %c0_105 = arith.constant 0 : index
    %c0_106 = arith.constant 0 : index
    %c0_107 = arith.constant 0 : index
    %113 = vector.load %arg13[%c0_105, %c0_106, %c0_107] : memref<1x288x16xbf16, #tpu.memory_space<vmem>>, vector<1x288x16xbf16>
    %114 = vector.shape_cast %113 : vector<1x288x16xbf16> to vector<288x16xbf16>
    %cst_108 = arith.constant dense<0.000000e+00> : vector<16x16xf32>
    %115 = tpu.matmul %112, %114, %cst_108 {dimension_numbers = #tpu.dot_dimension_numbers<[1], [0], [0], [1], [0, 0, 1, 1], [], []>} : vector<16x288xbf16>, vector<288x16xbf16>, vector<16x16xf32> -> vector<16x16xf32>
    %c0_109 = arith.constant 0 : index
    %c0_110 = arith.constant 0 : index
    %c0_111 = arith.constant 0 : index
    %116 = vector.load %arg14[%c0_109, %c0_110, %c0_111] : memref<1x1x16xf32, #tpu.memory_space<vmem>>, vector<1x1x16xf32>
    %117 = vector.shape_cast %116 : vector<1x1x16xf32> to vector<1x16xf32>
    %118 = vector.broadcast %117 : vector<1x16xf32> to vector<16x16xf32>
    %119 = arith.addf %115, %118 : vector<16x16xf32>
    %c0_112 = arith.constant 0 : index
    %c0_113 = arith.constant 0 : index
    %c0_114 = arith.constant 0 : index
    %120 = vector.load %arg15[%c0_112, %c0_113, %c0_114] : memref<1x288x16xbf16, #tpu.memory_space<vmem>>, vector<1x288x16xbf16>
    %121 = vector.shape_cast %120 : vector<1x288x16xbf16> to vector<288x16xbf16>
    %cst_115 = arith.constant dense<0.000000e+00> : vector<16x16xf32>
    %122 = tpu.matmul %112, %121, %cst_115 {dimension_numbers = #tpu.dot_dimension_numbers<[1], [0], [0], [1], [0, 0, 1, 1], [], []>} : vector<16x288xbf16>, vector<288x16xbf16>, vector<16x16xf32> -> vector<16x16xf32>
    %c0_116 = arith.constant 0 : index
    %c0_117 = arith.constant 0 : index
    %c0_118 = arith.constant 0 : index
    %123 = vector.load %arg16[%c0_116, %c0_117, %c0_118] : memref<1x1x16xf32, #tpu.memory_space<vmem>>, vector<1x1x16xf32>
    %124 = vector.shape_cast %123 : vector<1x1x16xf32> to vector<1x16xf32>
    %125 = vector.broadcast %124 : vector<1x16xf32> to vector<16x16xf32>
    %126 = arith.addf %122, %125 : vector<16x16xf32>
    %c0_119 = arith.constant 0 : index
    %c0_120 = arith.constant 0 : index
    %c0_121 = arith.constant 0 : index
    %127 = vector.load %arg17[%c0_119, %c0_120, %c0_121] : memref<1x1x16xf32, #tpu.memory_space<vmem>>, vector<1x1x16xf32>
    %128 = vector.shape_cast %127 : vector<1x1x16xf32> to vector<1x16xf32>
    %129 = math.tanh %119 : vector<16x16xf32>
    %130 = vector.broadcast %128 : vector<1x16xf32> to vector<16x16xf32>
    %131 = arith.mulf %130, %129 : vector<16x16xf32>
    %132 = arith.addf %16, %126 : vector<16x16xf32>
    %133 = math.exp %131 : vector<16x16xf32>
    %134 = arith.mulf %132, %133 : vector<16x16xf32>
    %c0_122 = arith.constant 0 : index
    %c0_123 = arith.constant 0 : index
    %c0_124 = arith.constant 0 : index
    %135 = vector.load %arg19[%c0_122, %c0_123, %c0_124] : memref<1x16x32xf32, #tpu.memory_space<vmem>>, vector<1x16x16xf32>
    %136 = vector.shape_cast %135 : vector<1x16x16xf32> to vector<16x16xf32>
    %137 = vector.shape_cast %134 : vector<16x16xf32> to vector<1x16x16xf32>
    tpu.vector_store %arg19[%c0_122, %c0_123, %c0_124], %137 {strides = array<i32>} : memref<1x16x32xf32, #tpu.memory_space<vmem>>, vector<1x16x16xf32>,
    %c0_125 = arith.constant 0 : index
    %c0_126 = arith.constant 0 : index
    %c16_127 = arith.constant 16 : index
    %138 = vector.load %arg19[%c0_125, %c0_126, %c16_127] : memref<1x16x32xf32, #tpu.memory_space<vmem>>, vector<1x16x16xf32>
    %139 = vector.shape_cast %138 : vector<1x16x16xf32> to vector<16x16xf32>
    %140 = vector.shape_cast %19 : vector<16x16xf32> to vector<1x16x16xf32>
    tpu.vector_store %arg19[%c0_125, %c0_126, %c16_127], %140 {strides = array<i32>} : memref<1x16x32xf32, #tpu.memory_space<vmem>>, vector<1x16x16xf32>,
    %cst_128 = arith.constant dense<0.000000e+00> : vector<16xf32>
    %141 = vector.multi_reduction <add>, %131, %cst_128 [1] : vector<16x16xf32> to vector<16xf32>
    %142 = vector.shape_cast %141 : vector<16xf32> to vector<16x1xf32>
    %cst_129 = arith.constant dense<0.000000e+00> : vector<1xf32>
    %143 = vector.multi_reduction <add>, %142, %cst_129 [0] : vector<16x1xf32> to vector<1xf32>
    %144 = vector.shape_cast %143 : vector<1xf32> to vector<1x1xf32>
    %c0_130 = arith.constant 0 : index
    %c0_131 = arith.constant 0 : index
    %c0_132 = arith.constant 0 : index
    %145 = vector.load %arg20[%c0_130, %c0_131, %c0_132] : memref<1x1x1xf32, #tpu.memory_space<vmem>>, vector<1x1x1xf32>
    %146 = vector.shape_cast %145 : vector<1x1x1xf32> to vector<1x1xf32>
    %c0_133 = arith.constant 0 : index
    %c0_134 = arith.constant 0 : index
    %c0_135 = arith.constant 0 : index
    %147 = vector.load %arg18[%c0_133, %c0_134, %c0_135] : memref<1x1x1xf32, #tpu.memory_space<vmem>>, vector<1x1x1xf32>
    %148 = vector.shape_cast %147 : vector<1x1x1xf32> to vector<1x1xf32>
    %149 = arith.addf %146, %148 : vector<1x1xf32>
    %150 = arith.addf %149, %144 : vector<1x1xf32>
    %c0_136 = arith.constant 0 : index
    %c0_137 = arith.constant 0 : index
    %c0_138 = arith.constant 0 : index
    %151 = vector.load %arg20[%c0_136, %c0_137, %c0_138] : memref<1x1x1xf32, #tpu.memory_space<vmem>>, vector<1x1x1xf32>
    %152 = vector.shape_cast %151 : vector<1x1x1xf32> to vector<1x1xf32>
    %153 = vector.shape_cast %150 : vector<1x1xf32> to vector<1x1x1xf32>
    tpu.vector_store %arg20[%c0_136, %c0_137, %c0_138], %153 {strides = array<i32>} : memref<1x1x1xf32, #tpu.memory_space<vmem>>, vector<1x1x1xf32>,
    return
  }
  func.func @transform_0(%arg0: i32, %arg1: i32) -> (i32, i32, i32) {
    %c0_i32 = arith.constant 0 : i32
    %c0_i32_0 = arith.constant 0 : i32
    %c0_i32_1 = arith.constant 0 : i32
    return %arg0, %c0_i32, %c0_i32_0 : i32, i32, i32
  }
  func.func @transform_1(%arg0: i32, %arg1: i32) -> (i32, i32, i32) {
    %c0_i32 = arith.constant 0 : i32
    %c0_i32_0 = arith.constant 0 : i32
    %c0_i32_1 = arith.constant 0 : i32
    return %arg0, %c0_i32, %c0_i32_0 : i32, i32, i32
  }
  func.func @transform_2(%arg0: i32, %arg1: i32) -> (i32, i32) {
    %c0_i32 = arith.constant 0 : i32
    %c0_i32_0 = arith.constant 0 : i32
    %c0_i32_1 = arith.constant 0 : i32
    return %c0_i32, %c0_i32_0 : i32, i32
  }
  func.func @transform_3(%arg0: i32, %arg1: i32) -> (i32, i32, i32) {
    %c0_i32 = arith.constant 0 : i32
    %c0_i32_0 = arith.constant 0 : i32
    %c0_i32_1 = arith.constant 0 : i32
    return %arg1, %c0_i32, %c0_i32_0 : i32, i32, i32
  }
  func.func @transform_4(%arg0: i32, %arg1: i32) -> (i32, i32, i32) {
    %c0_i32 = arith.constant 0 : i32
    %c0_i32_0 = arith.constant 0 : i32
    %c0_i32_1 = arith.constant 0 : i32
    return %arg1, %c0_i32, %c0_i32_0 : i32, i32, i32
  }
  func.func @transform_5(%arg0: i32, %arg1: i32) -> (i32, i32, i32) {
    %c0_i32 = arith.constant 0 : i32
    %c0_i32_0 = arith.constant 0 : i32
    %c0_i32_1 = arith.constant 0 : i32
    return %arg1, %c0_i32, %c0_i32_0 : i32, i32, i32
  }
  func.func @transform_6(%arg0: i32, %arg1: i32) -> (i32, i32, i32) {
    %c0_i32 = arith.constant 0 : i32
    %c0_i32_0 = arith.constant 0 : i32
    %c0_i32_1 = arith.constant 0 : i32
    return %arg1, %c0_i32, %c0_i32_0 : i32, i32, i32
  }
  func.func @transform_7(%arg0: i32, %arg1: i32) -> (i32, i32, i32) {
    %c0_i32 = arith.constant 0 : i32
    %c0_i32_0 = arith.constant 0 : i32
    %c0_i32_1 = arith.constant 0 : i32
    return %arg1, %c0_i32, %c0_i32_0 : i32, i32, i32
  }
  func.func @transform_8(%arg0: i32, %arg1: i32) -> (i32, i32, i32) {
    %c0_i32 = arith.constant 0 : i32
    %c0_i32_0 = arith.constant 0 : i32
    %c0_i32_1 = arith.constant 0 : i32
    return %arg1, %c0_i32, %c0_i32_0 : i32, i32, i32
  }
  func.func @transform_9(%arg0: i32, %arg1: i32) -> (i32, i32, i32) {
    %c0_i32 = arith.constant 0 : i32
    %c0_i32_0 = arith.constant 0 : i32
    %c0_i32_1 = arith.constant 0 : i32
    return %arg1, %c0_i32, %c0_i32_0 : i32, i32, i32
  }
  func.func @transform_10(%arg0: i32, %arg1: i32) -> (i32, i32, i32) {
    %c0_i32 = arith.constant 0 : i32
    %c0_i32_0 = arith.constant 0 : i32
    %c0_i32_1 = arith.constant 0 : i32
    return %arg1, %c0_i32, %c0_i32_0 : i32, i32, i32
  }
  func.func @transform_11(%arg0: i32, %arg1: i32) -> (i32, i32, i32) {
    %c0_i32 = arith.constant 0 : i32
    %c0_i32_0 = arith.constant 0 : i32
    %c0_i32_1 = arith.constant 0 : i32
    return %arg1, %c0_i32, %c0_i32_0 : i32, i32, i32
  }
  func.func @transform_12(%arg0: i32, %arg1: i32) -> (i32, i32, i32) {
    %c0_i32 = arith.constant 0 : i32
    %c0_i32_0 = arith.constant 0 : i32
    %c0_i32_1 = arith.constant 0 : i32
    return %arg1, %c0_i32, %c0_i32_0 : i32, i32, i32
  }
  func.func @transform_13(%arg0: i32, %arg1: i32) -> (i32, i32, i32) {
    %c0_i32 = arith.constant 0 : i32
    %c0_i32_0 = arith.constant 0 : i32
    %c0_i32_1 = arith.constant 0 : i32
    return %arg1, %c0_i32, %c0_i32_0 : i32, i32, i32
  }
  func.func @transform_14(%arg0: i32, %arg1: i32) -> (i32, i32, i32) {
    %c0_i32 = arith.constant 0 : i32
    %c0_i32_0 = arith.constant 0 : i32
    %c0_i32_1 = arith.constant 0 : i32
    return %arg1, %c0_i32, %c0_i32_0 : i32, i32, i32
  }
  func.func @transform_15(%arg0: i32, %arg1: i32) -> (i32, i32, i32) {
    %c0_i32 = arith.constant 0 : i32
    %c0_i32_0 = arith.constant 0 : i32
    %c0_i32_1 = arith.constant 0 : i32
    return %arg1, %c0_i32, %c0_i32_0 : i32, i32, i32
  }
  func.func @transform_16(%arg0: i32, %arg1: i32) -> (i32, i32, i32) {
    %c0_i32 = arith.constant 0 : i32
    %c0_i32_0 = arith.constant 0 : i32
    %c0_i32_1 = arith.constant 0 : i32
    return %arg1, %c0_i32, %c0_i32_0 : i32, i32, i32
  }
  func.func @transform_17(%arg0: i32, %arg1: i32) -> (i32, i32, i32) {
    %c0_i32 = arith.constant 0 : i32
    %c0_i32_0 = arith.constant 0 : i32
    %c0_i32_1 = arith.constant 0 : i32
    return %arg0, %c0_i32, %c0_i32_0 : i32, i32, i32
  }
  func.func @transform_18(%arg0: i32, %arg1: i32) -> (i32, i32, i32) {
    %c0_i32 = arith.constant 0 : i32
    %c0_i32_0 = arith.constant 0 : i32
    %c0_i32_1 = arith.constant 0 : i32
    return %arg0, %c0_i32, %c0_i32_0 : i32, i32, i32
  }
}

</mosaic_0001>

<bundles_post_ra>
// kernel: glow_forward.3
= control target key start
LH: loop header
LB: loop body
LE: loop exit
PB: predicated region body
PF: predicated region fallthrough
CT: control target
= control target key end

     0   :  { %s802_s12 = smov 0   ;;  %s940_s0 = inlined_call_operand.vmem [shape: f32[2,64,16], index: 0, kind: input, shape index: {}]   ;;  %s941_s1 = inlined_call_operand.vmem [shape: f32[2,64,16], index: 1, kind: input, shape index: {}]   ;;  %s942_s2 = inlined_call_operand.vmem [shape: f32[2,64,16], index: 2, kind: output, shape index: {0}]   ;;  %s943_s3 = inlined_call_operand.vmem [shape: f32[2,1,1], index: 3, kind: output, shape index: {1}]  }
   0x1 LB: > { %s638_s13 = sadd.s32 4294967295, %s780_s12   ;;  %p642_p0 = scmp.ge.s32.totalorder %s780_s12, 1  ;;  %s780_s12 = sphi %s802_s12, %s14_s12  }
   0x2   : > { %p150_p1 = scmp.lt.s32.totalorder %s780_s12, 3 }
   0x4   : > { %p151_p2 = pnand %p642_p0, %p150_p1 }
   0x5   : > { %p182_p3 = scmp.lt.s32.totalorder (!%p151_p2), %s638_s13, 1  ;;  %vm498_vm0 = vcmask (!%p151_p2), 130048   ;;  %vm544_vm1 = vcmask (!%p151_p2), 0  }
   0x6   : > { %154 = sbr.rel (%p151_p2) target bundleno = 274 (0x112), region = 28 }
   0xd   : > { %s945_s13 = smov (!%p182_p3, %s638_s13), 1 }
   0xe   : > { %s813_s14 = sshll.u32 %s945_s13, 6  ;;  %s199_s26 = scalar_lea.vmem %s943_s3, %s945_s13 }
   0xf   : > { %s186_s17 = scalar_lea.vmem %s940_s0, %s813_s14  ;;  %s191_s20 = scalar_lea.vmem %s941_s1, %s813_s14 }
  0x10   : > { %v200_v0 = vld [vmem:[%s186_s17] sm:$0xff]  ;;  %v202_v2 = vld [vmem:[%s186_s17 + $0x10] sm:$0xff]  ;;  %v201_v6 = vld [vmem:[%s186_s17 + $0x8] sm:$0xff]  ;;  %s827_s23 = scalar_lea.vmem %s942_s2, %s813_s14 }
  0x11   : > { %v208_v1 = vld [vmem:[%s191_s20] sm:$0xff]  ;;  %v216_v3 = vmul.f32 255.0, %v200_v0  ;;  %v210_v4 = vld [vmem:[%s191_s20 + $0x10] sm:$0xff]  ;;  %v218_v5 = vmul.f32 255.0, %v202_v2  ;;  %v209_v7 = vld [vmem:[%s191_s20 + $0x8] sm:$0xff]  ;;  %v217_v8 = vmul.f32 255.0, %v201_v6 }
  0x12   : > { %v203_v9 = vld [vmem:[%s186_s17 + $0x18] sm:$0xff]  ;;  %v204_v11 = vld [vmem:[%s186_s17 + $0x20] sm:$0xff]  ;;  %v205_v17 = vld [vmem:[%s186_s17 + $0x28] sm:$0xff] }
  0x13   : > { %v211_v10 = vld [vmem:[%s191_s20 + $0x18] sm:$0xff]  ;;  %v224_v12 = vadd.f32 %v216_v3, %v208_v1  ;;  %v226_v13 = vadd.f32 %v218_v5, %v210_v4  ;;  %v219_v14 = vmul.f32 255.0, %v203_v9  ;;  %v212_v15 = vld [vmem:[%s191_s20 + $0x20] sm:$0xff]  ;;  %v220_v16 = vmul.f32 255.0, %v204_v11  ;;  %v213_v18 = vld [vmem:[%s191_s20 + $0x28] sm:$0xff] }
  0x14   : > { %v225_v19 = vadd.f32 %v217_v8, %v209_v7  ;;  %v221_v20 = vmul.f32 255.0, %v205_v17  ;;  %v206_v21 = vld [vmem:[%s186_s17 + $0x30] sm:$0xff]  ;;  %v207_v22 = vld [vmem:[%s186_s17 + $0x38] sm:$0xff] }
  0x15   : > { %v233_v23 = vmul.f32 0.00390625, %v224_v12  ;;  %v235_v24 = vmul.f32 0.00390625, %v226_v13  ;;  %v227_v25 = vadd.f32 %v219_v14, %v211_v10  ;;  %v228_v26 = vadd.f32 %v220_v16, %v212_v15  ;;  %v214_v27 = vld [vmem:[%s191_s20 + $0x30] sm:$0xff]  ;;  %v215_v28 = vld [vmem:[%s191_s20 + $0x38] sm:$0xff] }
  0x16   : > { %v234_v29 = vmul.f32 0.00390625, %v225_v19  ;;  %v229_v30 = vadd.f32 %v221_v20, %v213_v18  ;;  %v222_v31 = vmul.f32 255.0, %v206_v21  ;;  %v223_v32 = vmul.f32 255.0, %v207_v22 }
  0x17   : > { %v241_v33 = vmul.f32 2.0, %v233_v23  ;;  %v243_v34 = vmul.f32 2.0, %v235_v24  ;;  %v236_v35 = vmul.f32 0.00390625, %v227_v25  ;;  %v237_v36 = vmul.f32 0.00390625, %v228_v26 }
  0x18   : > { %v242_v37 = vmul.f32 2.0, %v234_v29  ;;  %v238_v38 = vmul.f32 0.00390625, %v229_v30  ;;  %v230_v39 = vadd.f32 %v222_v31, %v214_v27  ;;  %v231_v40 = vadd.f32 %v223_v32, %v215_v28 }
  0x19   : > { %v649_v41 = vadd.f32 -1.0, %v241_v33  ;;  %v651_v42 = vadd.f32 -1.0, %v243_v34  ;;  %v244_v43 = vmul.f32 2.0, %v236_v35  ;;  %v245_v44 = vmul.f32 2.0, %v237_v36 }
  0x1a   : > { %v650_v45 = vadd.f32 -1.0, %v242_v37  ;;  %v246_v46 = vmul.f32 2.0, %v238_v38  ;;  %v239_v47 = vmul.f32 0.00390625, %v230_v39  ;;  %v240_v48 = vmul.f32 0.00390625, %v231_v40 }
  0x1b   : > { %v257_v49 = vmul.f32 0.9, %v649_v41  ;;  %v259_v50 = vmul.f32 0.9, %v651_v42  ;;  %v652_v51 = vadd.f32 -1.0, %v244_v43  ;;  %v653_v52 = vadd.f32 -1.0, %v245_v44 }
  0x1c   : > { %v258_v53 = vmul.f32 0.9, %v650_v45  ;;  %v654_v54 = vadd.f32 -1.0, %v246_v46  ;;  %v247_v55 = vmul.f32 2.0, %v239_v47  ;;  %v248_v62 = vmul.f32 2.0, %v240_v48 }
  0x1d   : > { %v265_v56 = vadd.f32 1.0, %v257_v49  ;;  %v267_v57 = vadd.f32 1.0, %v259_v50  ;;  %v260_v58 = vmul.f32 0.9, %v652_v51  ;;  %v261_v59 = vmul.f32 0.9, %v653_v52 }
  0x1e   : > { %v266_v60 = vadd.f32 1.0, %v258_v53  ;;  %v655_v61 = vadd.f32 -1.0, %v247_v55  ;;  %v262_v2 = vmul.f32 0.9, %v654_v54  ;;  %v656_v10 = vadd.f32 -1.0, %v248_v62 }
  0x1f   : > { %v274_v63 = vmul.f32 0.5, %v265_v56  ;;  %v276_v0 = vmul.f32 0.5, %v267_v57  ;;  %v268_v1 = vadd.f32 1.0, %v260_v58  ;;  %v269_v4 = vadd.f32 1.0, %v261_v59 }
  0x20   : > { %v275_v3 = vmul.f32 0.5, %v266_v60  ;;  %v263_v5 = vmul.f32 0.9, %v655_v61  ;;  %v270_v11 = vadd.f32 1.0, %v262_v2  ;;  %v264_v15 = vmul.f32 0.9, %v656_v10 }
  0x21   : > { %678 = vlog2.f32 %v274_v63  ;;  %v298_v6 = vsub.f32 1.0, %v274_v63  ;;  %v300_v7 = vsub.f32 1.0, %v276_v0  ;;  %v277_v8 = vmul.f32 0.5, %v268_v1 }
  0x22   : > { %680 = vlog2.f32 %v276_v0  ;;  %v299_v9 = vsub.f32 1.0, %v275_v3  ;;  %v278_v13 = vmul.f32 0.5, %v269_v4  ;;  %v271_v14 = vadd.f32 1.0, %v263_v5 }
  0x23   : > { %682 = vlog2.f32 %v298_v6  ;;  %v301_v12 = vsub.f32 1.0, %v277_v8  ;;  %v279_v16 = vmul.f32 0.5, %v270_v11  ;;  %v272_v19 = vadd.f32 1.0, %v264_v15 }
  0x24   : > { %684 = vlog2.f32 %v300_v7  ;;  %v302_v17 = vsub.f32 1.0, %v278_v13  ;;  %v280_v18 = vmul.f32 0.5, %v271_v14 }
  0x25   : > { %686 = vlog2.f32 %v275_v3  ;;  %v303_v21 = vsub.f32 1.0, %v279_v16  ;;  %v281_v29 = vmul.f32 0.5, %v272_v19 }
  0x26   : > { %688 = vlog2.f32 %v299_v9  ;;  %v304_v26 = vsub.f32 1.0, %v280_v18 }
  0x27   : > { %690 = vlog2.f32 %v277_v8  ;;  %v305_v41 = vsub.f32 1.0, %v281_v29 }
  0x28   : > { %692 = vlog2.f32 %v301_v12 }
  0x29   : > { %694 = vlog2.f32 %v278_v13 }
  0x2a   : > { %696 = vlog2.f32 %v302_v17 }
  0x2b   : > { %v679_v20 = vpop.eup %678  ;;  %698 = vlog2.f32 %v279_v16 }
  0x2c   : > { %v681_v22 = vpop.eup %680  ;;  %v283_v23 = vmul.f32 0.6931472, %v679_v20  ;;  %700 = vlog2.f32 %v303_v21 }
  0x2d   : > { %v683_v24 = vpop.eup %682  ;;  %v287_v25 = vmul.f32 0.6931472, %v681_v22  ;;  %702 = vlog2.f32 %v280_v18 }
  0x2e   : > { %v685_v27 = vpop.eup %684  ;;  %v307_v28 = vmul.f32 0.6931472, %v683_v24  ;;  %704 = vlog2.f32 %v304_v26 }
  0x2f   : > { %v687_v30 = vpop.eup %686  ;;  %v311_v31 = vmul.f32 0.6931472, %v685_v27  ;;  %706 = vlog2.f32 %v281_v29 }
  0x30   : > { %v689_v32 = vpop.eup %688  ;;  %v829_v33 = vsub.f32 %v283_v23, %v307_v28  ;;  %v285_v34 = vmul.f32 0.6931472, %v687_v30  ;;  %708 = vlog2.f32 %v305_v41 }
  0x31   : > { %v691_v35 = vpop.eup %690  ;;  %v831_v36 = vsub.f32 %v287_v25, %v311_v31  ;;  %v309_v37 = vmul.f32 0.6931472, %v689_v32 }
  0x32   : > { %v693_v38 = vpop.eup %692  ;;  %v338_v39 = vand.u32 2147483647, %v829_v33  ;;  %v402_v40 = vsub.f32 0.0, %v829_v33  ;;  %499 = vst.msk [vmem:[%s827_s23] sm:$0xff] %vm498_vm0, %v829_v33  ;;  %v289_v45 = vmul.f32 0.6931472, %v691_v35 }
  0x33   : > { %v340_v42 = vand.u32 2147483647, %v831_v36  ;;  %v404_v43 = vsub.f32 0.0, %v831_v36  ;;  %501 = vst.msk [vmem:[%s827_s23 + $0x10] sm:$0xff] %vm498_vm0, %v831_v36  ;;  %v843_v44 = vsub.f32 %v285_v34, %v309_v37  ;;  %v313_v48 = vmul.f32 0.6931472, %v693_v38  ;;  %v695_v51 = vpop.eup %694 }
  0x34   : > { %v346_v46 = vsub.f32 0.0, %v338_v39  ;;  %v418_v47 = vand.u32 2147483647, %v402_v40  ;;  %v697_v56 = vpop.eup %696  ;;  %v291_v2 = vmul.f32 0.6931472, %v695_v51 }
  0x35   : > { %v348_v49 = vsub.f32 0.0, %v340_v42  ;;  %v420_v50 = vand.u32 2147483647, %v404_v43  ;;  %500 = vst.msk [vmem:[%s827_s23 + $0x8] sm:$0xff] %vm498_vm0, %v843_v44  ;;  %v339_v54 = vand.u32 2147483647, %v843_v44  ;;  %v854_v59 = vsub.f32 %v289_v45, %v313_v48  ;;  %v699_v60 = vpop.eup %698 }
  0x36   : > { %v354_v52 = vmul.f32 1.442695, %v346_v46  ;;  %v426_v53 = vsub.f32 0.0, %v418_v47  ;;  %v403_v55 = vsub.f32 0.0, %v843_v44  ;;  %v701_v63 = vpop.eup %700  ;;  %v315_v9 = vmul.f32 0.6931472, %v697_v56 }
  0x37   : > { %v358_v57 = vmul.f32 1.442695, %v348_v49  ;;  %v428_v58 = vsub.f32 0.0, %v420_v50  ;;  %v347_v62 = vsub.f32 0.0, %v339_v54  ;;  %502 = vst.msk [vmem:[%s827_s23 + $0x18] sm:$0xff] %vm498_vm0, %v854_v59  ;;  %v703_v3 = vpop.eup %702  ;;  %v405_v6 = vsub.f32 0.0, %v854_v59 }
  0x38   : > { %710 = vpow2.f32 %v354_v52  ;;  %v434_v61 = vmul.f32 1.442695, %v426_v53  ;;  %v419_v1 = vand.u32 2147483647, %v403_v55  ;;  %v341_v5 = vand.u32 2147483647, %v854_v59  ;;  %v705_v7 = vpop.eup %704 }
  0x39   : > { %712 = vpow2.f32 %v358_v57  ;;  %v438_v0 = vmul.f32 1.442695, %v428_v58  ;;  %v356_v4 = vmul.f32 1.442695, %v347_v62  ;;  %v421_v11 = vand.u32 2147483647, %v405_v6  ;;  %v707_v20 = vpop.eup %706 }
  0x3a   : > { %714 = vpow2.f32 %v434_v61  ;;  %v427_v8 = vsub.f32 0.0, %v419_v1  ;;  %v349_v10 = vsub.f32 0.0, %v341_v5  ;;  %v293_v12 = vmul.f32 0.6931472, %v699_v60  ;;  %v709_v26 = vpop.eup %708 }
  0x3b   : > { %716 = vpow2.f32 %v438_v0  ;;  %v865_v14 = vsub.f32 %v291_v2, %v315_v9  ;;  %v317_v15 = vmul.f32 0.6931472, %v701_v63  ;;  %v295_v16 = vmul.f32 0.6931472, %v703_v3 }
  0x3c   : > { %718 = vpow2.f32 %v356_v4  ;;  %v436_v13 = vmul.f32 1.442695, %v427_v8  ;;  %v360_v17 = vmul.f32 1.442695, %v349_v10  ;;  %v429_v18 = vsub.f32 0.0, %v421_v11 }
  0x3d   : > { %v319_v19 = vmul.f32 0.6931472, %v705_v7  ;;  %v342_v21 = vand.u32 2147483647, %v865_v14  ;;  %v406_v22 = vsub.f32 0.0, %v865_v14  ;;  %503 = vst.msk [vmem:[%s827_s23 + $0x20] sm:$0xff] %vm498_vm0, %v865_v14  ;;  %v872_v24 = vsub.f32 %v293_v12, %v317_v15 }
  0x3e   : > { %720 = vpow2.f32 %v436_v13  ;;  %v440_v23 = vmul.f32 1.442695, %v429_v18  ;;  %v297_v46 = vmul.f32 0.6931472, %v707_v20  ;;  %v321_v56 = vmul.f32 0.6931472, %v709_v26 }
  0x3f   : > { %722 = vpow2.f32 %v360_v17  ;;  %v874_v25 = vsub.f32 %v295_v16, %v319_v19  ;;  %v422_v27 = vand.u32 2147483647, %v406_v22  ;;  %v350_v29 = vsub.f32 0.0, %v342_v21  ;;  %504 = vst.msk [vmem:[%s827_s23 + $0x28] sm:$0xff] %vm498_vm0, %v872_v24 }
  0x40   : > { %724 = vpow2.f32 %v440_v23  ;;  %v343_v30 = vand.u32 2147483647, %v872_v24  ;;  %v407_v31 = vsub.f32 0.0, %v872_v24  ;;  %v892_v0 = vsub.f32 %v297_v46, %v321_v56 }
  0x41   : > { %505 = vst.msk [vmem:[%s827_s23 + $0x30] sm:$0xff] %vm498_vm0, %v874_v25  ;;  %v430_v35 = vsub.f32 0.0, %v422_v27  ;;  %v344_v45 = vand.u32 2147483647, %v874_v25  ;;  %v362_v49 = vmul.f32 1.442695, %v350_v29 }
  0x42   : > { %v711_v28 = vpop.eup %710  ;;  %v423_v39 = vand.u32 2147483647, %v407_v31  ;;  %v351_v50 = vsub.f32 0.0, %v343_v30  ;;  %v408_v53 = vsub.f32 0.0, %v874_v25  ;;  %v345_v5 = vand.u32 2147483647, %v892_v0 }
  0x43   : > { %v713_v32 = vpop.eup %712  ;;  %v370_v34 = vadd.f32 1.0, %v711_v28  ;;  %v442_v52 = vmul.f32 1.442695, %v430_v35  ;;  %v352_v58 = vsub.f32 0.0, %v344_v45  ;;  %v409_v7 = vsub.f32 0.0, %v892_v0  ;;  %506 = vst.msk [vmem:[%s827_s23 + $0x38] sm:$0xff] %vm498_vm0, %v892_v0 }
  0x44   : > { %v715_v37 = vpop.eup %714  ;;  %v372_v38 = vadd.f32 1.0, %v713_v32  ;;  %v431_v54 = vsub.f32 0.0, %v423_v39  ;;  %v424_v60 = vand.u32 2147483647, %v408_v53  ;;  %v364_v63 = vmul.f32 1.442695, %v351_v50 }
  0x45   : > { %v717_v41 = vpop.eup %716  ;;  %726 = vlog2.f32 %v370_v34  ;;  %v450_v42 = vadd.f32 1.0, %v715_v37  ;;  %v330_v8 = vmax.f32 %v829_v33, 0.0  ;;  %v366_v10 = vmul.f32 1.442695, %v352_v58 }
  0x46   : > { %v719_v47 = vpop.eup %718  ;;  %728 = vlog2.f32 %v372_v38  ;;  %v452_v48 = vadd.f32 1.0, %v717_v41  ;;  %v432_v2 = vsub.f32 0.0, %v424_v60  ;;  %v444_v4 = vmul.f32 1.442695, %v431_v54 }
  0x47   : > { %730 = vlog2.f32 %v450_v42  ;;  %v371_v51 = vadd.f32 1.0, %v719_v47  ;;  %v353_v12 = vsub.f32 0.0, %v345_v5  ;;  %v425_v13 = vand.u32 2147483647, %v409_v7 }
  0x48   : > { %732 = vlog2.f32 %v452_v48  ;;  %v721_v57 = vpop.eup %720  ;;  %v446_v11 = vmul.f32 1.442695, %v432_v2  ;;  %v410_v16 = vmax.f32 %v402_v40, 0.0  ;;  %v332_v17 = vmax.f32 %v831_v36, 0.0 }
  0x49   : > { %734 = vlog2.f32 %v371_v51  ;;  %v723_v61 = vpop.eup %722  ;;  %v451_v62 = vadd.f32 1.0, %v721_v57  ;;  %v368_v20 = vmul.f32 1.442695, %v353_v12  ;;  %v433_v21 = vsub.f32 0.0, %v425_v13 }
  0x4a   : > { %736 = vpow2.f32 %v362_v49  ;;  %v373_v1 = vadd.f32 1.0, %v723_v61  ;;  %v725_v3 = vpop.eup %724  ;;  %v412_v27 = vmax.f32 %v404_v43, 0.0  ;;  %v331_v35 = vmax.f32 %v843_v44, 0.0 }
  0x4b   : > { %738 = vpow2.f32 %v442_v52  ;;  %v453_v9 = vadd.f32 1.0, %v725_v3  ;;  %v448_v33 = vmul.f32 1.442695, %v433_v21  ;;  %v411_v36 = vmax.f32 %v403_v55, 0.0 }
  0x4c   : > { %740 = vlog2.f32 %v451_v62  ;;  %v333_v47 = vmax.f32 %v854_v59, 0.0  ;;  %v413_v58 = vmax.f32 %v405_v6, 0.0 }
  0x4d   : > { %742 = vlog2.f32 %v373_v1 }
  0x4e   : > { %744 = vpow2.f32 %v364_v63 }
  0x4f   : > { %v727_v15 = vpop.eup %726  ;;  %746 = vlog2.f32 %v453_v9 }
  0x50   : > { %v729_v18 = vpop.eup %728  ;;  %v379_v19 = vmul.f32 0.6931472, %v727_v15  ;;  %748 = vpow2.f32 %v444_v4 }
  0x51   : > { %v731_v23 = vpop.eup %730  ;;  %v383_v26 = vmul.f32 0.6931472, %v729_v18  ;;  %750 = vpow2.f32 %v366_v10 }
  0x52   : > { %v733_v28 = vpop.eup %732  ;;  %v394_v29 = vadd.f32 %v379_v19, %v330_v8  ;;  %v459_v30 = vmul.f32 0.6931472, %v731_v23  ;;  %752 = vpow2.f32 %v446_v11  ;;  %v414_v23 = vmax.f32 %v406_v22, 0.0 }
  0x53   : > { %v735_v40 = vpop.eup %734  ;;  %v396_v32 = vadd.f32 %v383_v26, %v332_v17  ;;  %v463_v34 = vmul.f32 0.6931472, %v733_v28  ;;  %754 = vpow2.f32 %v368_v20  ;;  %v334_v20 = vmax.f32 %v865_v14, 0.0 }
  0x54   : > { %v737_v37 = vpop.eup %736  ;;  %v474_v38 = vadd.f32 %v459_v30, %v410_v16  ;;  %v381_v39 = vmul.f32 0.6931472, %v735_v40  ;;  %756 = vpow2.f32 %v448_v33  ;;  %v335_v33 = vmax.f32 %v872_v24, 0.0 }
  0x55   : > { %v739_v41 = vpop.eup %738  ;;  %v476_v42 = vadd.f32 %v463_v34, %v412_v27  ;;  %v374_v43 = vadd.f32 1.0, %v737_v37  ;;  %v336_v14 = vmax.f32 %v874_v25, 0.0  ;;  %v417_v24 = vmax.f32 %v409_v7, 0.0 }
  0x56   : > { %v741_v45 = vpop.eup %740  ;;  %v482_v46 = vadd.f32 %v474_v38, %v394_v29  ;;  %v454_v48 = vadd.f32 1.0, %v739_v41  ;;  %v395_v51 = vadd.f32 %v381_v39, %v331_v35  ;;  %v415_v35 = vmax.f32 %v407_v31, 0.0 }
  0x57   : > { %v743_v49 = vpop.eup %742  ;;  %v484_v50 = vadd.f32 %v476_v42, %v396_v32  ;;  %v461_v52 = vmul.f32 0.6931472, %v741_v45  ;;  %758 = vlog2.f32 %v374_v43  ;;  %v416_v42 = vmax.f32 %v408_v53, 0.0 }
  0x58   : > { %v745_v54 = vpop.eup %744  ;;  %v657_v56 = vadd.f32 -0.105360515, %v482_v46  ;;  %v385_v57 = vmul.f32 0.6931472, %v743_v49  ;;  %760 = vlog2.f32 %v454_v48  ;;  %v337_v46 = vmax.f32 %v892_v0, 0.0 }
  0x59   : > { %v747_v44 = vpop.eup %746  ;;  %v659_v55 = vadd.f32 -0.105360515, %v484_v50  ;;  %v475_v60 = vadd.f32 %v461_v52, %v411_v36  ;;  %v375_v61 = vadd.f32 1.0, %v745_v54 }
  0x5a   : > { %v749_v62 = vpop.eup %748  ;;  %v507_v63 = vsel %vm498_vm0, %v657_v56, 0.0  ;;  %v397_v1 = vadd.f32 %v385_v57, %v333_v47  ;;  %v465_v2 = vmul.f32 0.6931472, %v747_v44 }
  0x5b   : > { %v751_v3 = vpop.eup %750  ;;  %508 = vadd.xlane.f32.xlu0 %v507_v63  ;;  %v513_v4 = vsel %vm498_vm0, %v659_v55, 0.0  ;;  %v483_v5 = vadd.f32 %v475_v60, %v395_v51  ;;  %762 = vlog2.f32 %v375_v61  ;;  %v455_v8 = vadd.f32 1.0, %v749_v62 }
  0x5c   : > { %v753_v9 = vpop.eup %752  ;;  %514 = vadd.xlane.f32.xlu1 %v513_v4  ;;  %v477_v59 = vadd.f32 %v465_v2, %v413_v58  ;;  %v376_v6 = vadd.f32 1.0, %v751_v3 }
  0x5d   : > { %v755_v10 = vpop.eup %754  ;;  %v658_v11 = vadd.f32 -0.105360515, %v483_v5  ;;  %764 = vlog2.f32 %v455_v8  ;;  %v456_v12 = vadd.f32 1.0, %v753_v9 }
  0x5e   : > { %v757_v13 = vpop.eup %756  ;;  %v485_v15 = vadd.f32 %v477_v59, %v397_v1  ;;  %766 = vlog2.f32 %v376_v6  ;;  %v377_v16 = vadd.f32 1.0, %v755_v10 }
  0x5f   : > { %v510_v17 = vsel %vm498_vm0, %v658_v11, 0.0  ;;  %768 = vlog2.f32 %v456_v12  ;;  %v457_v18 = vadd.f32 1.0, %v757_v13 }
  0x60   : > { %511 = vadd.xlane.f32.xlu0 %v510_v17  ;;  %v660_v19 = vadd.f32 -0.105360515, %v485_v15  ;;  %770 = vlog2.f32 %v377_v16 }
  0x61   : > { %v759_v21 = vpop.eup %758  ;;  %772 = vlog2.f32 %v457_v18 }
  0x62   : > { %v761_v26 = vpop.eup %760  ;;  %v516_v27 = vsel %vm498_vm0, %v660_v19, 0.0  ;;  %v387_v28 = vmul.f32 0.6931472, %v759_v21 }
  0x63   : > { %517 = vadd.xlane.f32.xlu1 %v516_v27  ;;  %v467_v29 = vmul.f32 0.6931472, %v761_v26 }
  0x64   : > { %v398_v30 = vadd.f32 %v387_v28, %v334_v20 }
  0x65   : > { %v763_v40 = vpop.eup %762  ;;  %v478_v32 = vadd.f32 %v467_v29, %v414_v23 }
  0x66   : > { %v389_v34 = vmul.f32 0.6931472, %v763_v40 }
  0x67   : > { %v765_v37 = vpop.eup %764  ;;  %v486_v38 = vadd.f32 %v478_v32, %v398_v30 }
  0x68   : > { %v767_v22 = vpop.eup %766  ;;  %v399_v39 = vadd.f32 %v389_v34, %v335_v33  ;;  %v469_v41 = vmul.f32 0.6931472, %v765_v37 }
  0x69   : > { %v769_v36 = vpop.eup %768  ;;  %v661_v43 = vadd.f32 -0.105360515, %v486_v38  ;;  %v391_v45 = vmul.f32 0.6931472, %v767_v22 }
  0x6a   : > { %v771_v47 = vpop.eup %770  ;;  %v479_v48 = vadd.f32 %v469_v41, %v415_v35  ;;  %v471_v49 = vmul.f32 0.6931472, %v769_v36 }
  0x6b   : > { %v773_v31 = vpop.eup %772  ;;  %v519_v50 = vsel %vm498_vm0, %v661_v43, 0.0  ;;  %v400_v51 = vadd.f32 %v391_v45, %v336_v14  ;;  %v393_v52 = vmul.f32 0.6931472, %v771_v47 }
  0x6c   : > { %520 = vadd.xlane.f32.xlu0 %v519_v50  ;;  %v487_v54 = vadd.f32 %v479_v48, %v399_v39  ;;  %v480_v25 = vadd.f32 %v471_v49, %v416_v42  ;;  %v473_v53 = vmul.f32 0.6931472, %v773_v31 }
  0x6d   : > { %v401_v56 = vadd.f32 %v393_v52, %v337_v46 }
  0x6e   : > { %v662_v57 = vadd.f32 -0.105360515, %v487_v54  ;;  %v488_v58 = vadd.f32 %v480_v25, %v400_v51  ;;  %v481_v44 = vadd.f32 %v473_v53, %v417_v24 }
  0x70   : > { %v522_v55 = vsel %vm498_vm0, %v662_v57, 0.0  ;;  %v663_v60 = vadd.f32 -0.105360515, %v488_v58  ;;  %v489_v61 = vadd.f32 %v481_v44, %v401_v56 }
  0x71   : > { %523 = vadd.xlane.f32.xlu1 %v522_v55 }
  0x72   : > { %v525_v0 = vsel %vm498_vm0, %v663_v60, 0.0  ;;  %v664_v7 = vadd.f32 -0.105360515, %v489_v61 }
  0x73   : > { %526 = vadd.xlane.f32.xlu0 %v525_v0 }
  0x74   : > { %v528_v62 = vsel %vm498_vm0, %v664_v7, 0.0 }
  0x75   : > { %529 = vadd.xlane.f32.xlu1 %v528_v62 }
  0xe8   : > { %v509_v63 = vpop.xlane.xlu0 %508 }
  0xe9   : > { %v515_v2 = vpop.xlane.xlu1 %514 }
  0xed   : > { %v512_v1 = vpop.xlane.xlu0 %511 }
  0xee   : > { %v531_v3 = vadd.f32 %v512_v1, %v509_v63 }
  0xf0   : > { %v532_v4 = vadd.f32 %v531_v3, %v515_v2  ;;  %v518_v5 = vpop.xlane.xlu1 %517 }
  0xf2   : > { %v533_v8 = vadd.f32 %v532_v4, %v518_v5 }
  0xf9   : > { %v521_v9 = vpop.xlane.xlu0 %520 }
  0xfa   : > { %v534_v59 = vadd.f32 %v533_v8, %v521_v9 }
  0xfe   : > { %v524_v6 = vpop.xlane.xlu1 %523 }
  0xff   : > { %v535_v10 = vadd.f32 %v534_v59, %v524_v6 }
 0x100   : > { %v527_v11 = vpop.xlane.xlu0 %526 }
 0x101   : > { %v536_v12 = vadd.f32 %v535_v10, %v527_v11 }
 0x102   : > { %v530_v13 = vpop.xlane.xlu1 %529 }
 0x103   : > { %v537_v15 = vadd.f32 %v536_v12, %v530_v13 }
 0x105   : > { %v538_v16 = vrot.slane %v537_v15, 4 }
 0x107   : > { %v539_v17 = vadd.f32 %v538_v16, %v537_v15 }
 0x109   : > { %v540_v18 = vrot.slane %v539_v17, 2 }
 0x10b   : > { %v541_v19 = vadd.f32 %v540_v18, %v539_v17 }
 0x10d   : > { %v542_v20 = vrot.slane %v541_v19, 1 }
 0x10f   : > { %v543_v21 = vadd.f32 %v542_v20, %v541_v19 }
 0x111   : > { %545 = vst.msk [vmem:[%s199_s26] sm:$0x1] %vm544_vm1, %v543_v21 }
 0x112 PF: > { %s14_s12 = sadd.s32 1, %s780_s12  }
 0x113   : > { %p11_p4 = scmp.ge.s32.totalorder %s14_s12, 4  }
 0x115   :  { %13 = sbr.rel (!%p11_p4) target bundleno = 1 (0x1), region = 73 }

// kernel: glow_forward.5
= control target key start
LH: loop header
LB: loop body
LE: loop exit
PB: predicated region body
PF: predicated region fallthrough
CT: control target
= control target key end

     0   :  { %s2858_s27 = smov 0   ;;  %s2860_s28 = smov 0   ;;  %s3312_s0 = inlined_call_operand.vmem [shape: f32[2,16,32], index: 0, kind: input, shape index: {}]   ;;  %s3313_s1 = inlined_call_operand.vmem [shape: f32[2,1,1], index: 1, kind: input, shape index: {}]   ;;  %s3314_s2 = inlined_call_operand.vmem [shape: bf16[16,2], index: 2, kind: input, shape index: {}]   ;;  %s3315_s3 = inlined_call_operand.vmem [shape: f32[2,1,32], index: 3, kind: input, shape index: {}]   ;;  %s3316_s4 = inlined_call_operand.vmem [shape: f32[2,1,32], index: 4, kind: input, shape index: {}]   ;;  %s3317_s5 = inlined_call_operand.vmem [shape: bf16[2,32,16], index: 5, kind: input, shape index: {}]   ;;  %s3318_s6 = inlined_call_operand.vmem [shape: bf16[2,32,16], index: 6, kind: input, shape index: {}]   ;;  %s3319_s7 = inlined_call_operand.vmem [shape: bf16[2,144,32], index: 7, kind: input, shape index: {}]   ;;  %s3320_s8 = inlined_call_operand.vmem [shape: f32[2,1,32], index: 8, kind: input, shape index: {}]   ;;  %s3321_s9 = inlined_call_operand.vmem [shape: bf16[2,32,32], index: 9, kind: input, shape index: {}]   ;;  %s3322_s10 = inlined_call_operand.vmem [shape: f32[2,1,32], index: 10, kind: input, shape index: {}]   ;;  %s3323_s11 = inlined_call_operand.vmem [shape: bf16[2,288,16], index: 11, kind: input, shape index: {}]   ;;  %s3324_s12 = inlined_call_operand.vmem [shape: f32[2,1,16], index: 12, kind: input, shape index: {}]   ;;  %s3325_s13 = inlined_call_operand.vmem [shape: bf16[2,288,16], index: 13, kind: input, shape index: {}]   ;;  %s3326_s14 = inlined_call_operand.vmem [shape: f32[2,1,16], index: 14, kind: input, shape index: {}]   ;;  %s3327_s15 = inlined_call_operand.vmem [shape: f32[2,1,16], index: 15, kind: input, shape index: {}]   ;;  %s3328_s16 = inlined_call_operand.vmem [shape: f32[2,1,1], index: 16, kind: input, shape index: {}]   ;;  %s3329_s17 = inlined_call_operand.vmem [shape: f32[2,16,32], index: 17, kind: output, shape index: {0}]   ;;  %s3330_s18 = inlined_call_operand.vmem [shape: f32[2,1,1], index: 18, kind: output, shape index: {1}]  }
   0x1   :  { %3340 = sst [smem:[#allocation13_spill]] %s3312_s0  ;;  %s2862_s29 = smov 0  }
   0x2   :  { %3341 = sst [smem:[#allocation14_spill]] %s3313_s1  ;;  %s2864_s30 = smov 0  }
   0x3   :  { %3342 = sst [smem:[#allocation15_spill]] %s3314_s2  ;;  %s2866_s0 = smov 0  }
   0x4   :  { %3343 = sst [smem:[#allocation16_spill]] %s3316_s4 }
   0x5   :  { %3344 = sst [smem:[#allocation17_spill]] %s3317_s5 }
   0x6   :  { %3345 = sst [smem:[#allocation18_spill]] %s3318_s6 }
   0x7   :  { %3346 = sst [smem:[#allocation19_spill]] %s3319_s7 }
   0x8   :  { %3347 = sst [smem:[#allocation20_spill]] %s3320_s8 }
   0x9   :  { %3348 = sst [smem:[#allocation21_spill]] %s3321_s9 }
   0xa   :  { %3349 = sst [smem:[#allocation22_spill]] %s3322_s10 }
   0xb   :  { %3350 = sst [smem:[#allocation23_spill]] %s3323_s11 }
   0xc   :  { %3351 = sst [smem:[#allocation24_spill]] %s3324_s12 }
   0xd   :  { %3352 = sst [smem:[#allocation25_spill]] %s3325_s13 }
   0xe   :  { %3353 = sst [smem:[#allocation26_spill]] %s3326_s14 }
   0xf   :  { %3354 = sst [smem:[#allocation27_spill]] %s3327_s15 }
  0x10   :  { %3355 = sst [smem:[#allocation28_spill]] %s3328_s16 }
  0x11   :  { %3356 = sst [smem:[#allocation29_spill]] %s3329_s17 }
  0x12   :  { %3357 = sst [smem:[#allocation30_spill]] %s3330_s18 }
  0x13 LB: > { %3358 = sst [smem:[#allocation6_spill]] %s2733_s27  ;;  %s38_s19 = sadd.s32 1, %s2741_s29  ;;  %s2749_s0 = sphi %s2866_s0, %s29_s0   ;;  %s2745_s30 = sphi %s2864_s30, %s3408_s30   ;;  %s2741_s29 = sphi %s2862_s29, %s3407_s29   ;;  %s2737_s28 = sphi %s2860_s28, %s3406_s28   ;;  %s2733_s27 = sphi %s2858_s27, %s3405_s27  }
  0x14   : > { %3359 = sst [smem:[#allocation7_spill]] %s2741_s29  ;;  %s41_s1 = sadd.s32 1, %s2745_s30 }
  0x15   : > { %3360 = sst [smem:[#allocation8_spill]] %s2745_s30  ;;  %p39_p0 = scmp.ge.s32.totalorder %s38_s19, 2 }
  0x16   : > { %3361 = sst [smem:[#allocation9_spill]] %s2749_s0  ;;  %p2403_p1 = scmp.ge.s32.totalorder %s2749_s0, 1 }
  0x17   : > { %p659_p2 = scmp.lt.s32.totalorder %s2749_s0, 5  ;;  %s3410_s19 = smov (%p39_p0, %s38_s19), 0 }
  0x18   : > { %3362 = sst [smem:[#allocation10_spill]] %s3410_s19  ;;  %s3412_s1 = smov (!%p39_p0, %s41_s1), %s2745_s30 }
  0x19   : > { %p660_p3 = pnand %p2403_p1, %p659_p2  ;;  %p43_p4 = scmp.ge.s32.totalorder %s3412_s1, 2 }
  0x1b   : > { %s3414_s1 = smov (%p43_p4, %s3412_s1), 0  ;;  %663 = sbr.rel (%p660_p3) target bundleno = 1430 (0x596), region = 88 }
  0x1c   : > { %3363 = sst [smem:[#allocation11_spill]] %s3414_s1 }
  0x22   : > { %p773_p5 = scmp.lt.s32.totalorder %s2737_s28, 1  ;;  %p781_p6 = scmp.lt.s32.totalorder %s2733_s27, 1 }
  0x23   : > { %s3364_s23 = sld [smem:[#allocation14_spill]]  ;;  %s3365_s1 = sld [smem:[#allocation13_spill]] }
  0x24   : > { %s3416_s28 = smov (!%p773_p5, %s2737_s28), 1  ;;  %s3367_s5 = sld [smem:[#allocation17_spill]] }
  0x25   : > { %s2894_s20 = scalar_select %p781_p6, %s2733_s27, 1 }
  0x26   : > { %s2486_s21 = sshll.u32 %s3416_s28, 4  ;;  %s3369_s6 = sld [smem:[#allocation18_spill]] }
  0x27   : > { %s2487_s16 = sshll.u32 %s2894_s20, 4  ;;  %s2596_s25 = smul.u32 72, %s2894_s20 }
  0x28   : > { %s3371_s9 = sld [smem:[#allocation21_spill]]  ;;  %s3373_s7 = sld [smem:[#allocation19_spill]] }
  0x29   : > { %s780_s24 = scalar_lea.vmem %s3364_s23, %s3416_s28  ;;  %s777_s19 = scalar_lea.vmem %s3365_s1, %s2486_s21 }
  0x2a   : > { %s2916_s22 = scalar_lea.vmem %s3367_s5, %s2487_s16  ;;  %s2597_s2 = smul.u32 144, %s2894_s20 }
  0x2b   : > { %3368 = sst [smem:[#allocation12_spill]] %s2916_s22  ;;  %s3376_s11 = sld [smem:[#allocation23_spill]] }
  0x2c   : > { %s796_s1 = scalar_lea.vmem %s3369_s6, %s2487_s16  ;;  %s3377_s13 = sld [smem:[#allocation25_spill]] }
  0x2d   : > { %s3379_s29 = sld [smem:[#allocation28_spill]]  ;;  %s3380_s0 = sld [smem:[#allocation29_spill]] }
  0x2e   : > { %s2929_s27 = scalar_lea.vmem %s3371_s9, %s2487_s16  ;;  %s2938_s22 = scalar_lea.vmem %s3373_s7, %s2596_s25 }
  0x2f   : > { %s3378_s7 = sld [smem:[#allocation27_spill]] }
  0x31   : > { %s2952_s9 = scalar_lea.vmem %s3376_s11, %s2597_s2  ;;  %s3381_s11 = sld [smem:[#allocation30_spill]] }
  0x32   : > { %s2957_s5 = scalar_lea.vmem %s3377_s13, %s2597_s2  ;;  %s3382_s13 = sld [smem:[#allocation6_spill]] }
  0x33   : > { %s834_s12 = scalar_lea.vmem %s3379_s29, %s2894_s20  ;;  %s2970_s14 = scalar_lea.vmem %s3380_s0, %s2486_s21 }
  0x35   : > { %s831_s10 = scalar_lea.vmem %s3378_s7, %s2894_s20 }
  0x37   : > { %s2976_s8 = scalar_lea.vmem %s3381_s11, %s3416_s28 }
  0x38   : > { %p2417_p7 = scmp.ne.s32.totalorder %s3382_s13, 0 }
  0x39   : > { %v848_v0 = vld [vmem:[%s777_s19] sm:$0xff] (!%p2417_p7)  ;;  %vm850_vm0 = vcmask (!%p2417_p7), 261120   ;;  %v849_v1 = vld [vmem:[%s777_s19 + $0x8] sm:$0xff] (!%p2417_p7)  ;;  %vm854_vm1 = vcmask (!%p2417_p7), 0  }
  0x3a   : > { %847 = sbr.rel (%p2417_p7) target bundleno = 65 (0x41), region = 92  ;;  %v853_v2 = vld [vmem:[%s780_s24] sm:$0x1] (!%p2417_p7)  ;;  %851 = vst.msk [vmem:[%s2970_s14] sm:$0xff] (!%p2417_p7), %vm850_vm0, %v848_v0  ;;  %852 = vst.msk [vmem:[%s2970_s14 + $0x8] sm:$0xff] (!%p2417_p7), %vm850_vm0, %v849_v1 }
  0x3b   : > { %855 = vst.msk [vmem:[%s2976_s8] sm:$0x1] (!%p2417_p7), %vm854_vm1, %v853_v2 }
  0x41 PF: > { %v2652_v3 = vld [vmem:[%s796_s1] sm:$0xff]   ;;  %v2751_v4 = vmov 0.0   ;;  %v2653_v5 = vld [vmem:[%s796_s1 + $0x8] sm:$0xff]   ;;  %vm3337_vm2 = vmmov 0   ;;  %s3383_s28 = scalar_lea.vmem %s3315_s3, %s2894_s20  ;;  %vm897_vm3 = vcmask 261120   ;;  %s3384_s24 = sld [smem:[#allocation16_spill]]  ;;  %v959_v24 = vlaneseq }
  0x42   : > { %2550 = vmatprep.subr.bf16.mxu0 %v2751_v4  ;;  %2554 = vmatprep.mubr.msk.bf16.mxu0 %vm3337_vm2, %v2751_v4  ;;  %v856_v6 = vld [vmem:[%s2970_s14] sm:$0xff]  ;;  %v857_v7 = vld [vmem:[%s2970_s14 + $0x8] sm:$0xff]  ;;  %v2753_v12 = vmov 0   ;;  %s3386_s0 = sld [smem:[#allocation15_spill]]  ;;  %v2754_v14 = vmov 1   ;;  %vm3339_vm4 = vcmask 130048  }
  0x43   : > { %2551 = vmatpush3.bf16.msra.mxu0 %v2652_v3  ;;  %v2418_v8 = vld [vmem:[%s3383_s28] ss:$0 sm:$0xff]  ;;  %2651 = vset.pattern.permute.xlu1 %v2753_v12  ;;  %1416 = vst.msk [vmem:[#allocation4] sm:$0xff] %vm897_vm3, %v2753_v12  ;;  %1417 = vst.msk [vmem:[#allocation4 + $0x10] sm:$0xff] %vm897_vm3, %v2753_v12  ;;  %v2655_v20 = vld [vmem:[%s2938_s22 + $0x8] sm:$0xff]   ;;  %v960_v27 = vshrl.u32 %v959_v24, 7 }
  0x44   : > { %2552 = vmatprep.subr.bf16.mxu0 %v2751_v4  ;;  %v865_v9 = vadd.f32 %v2418_v8, %v856_v6  ;;  %v866_v10 = vadd.f32 %v2418_v8, %v857_v7  ;;  %2650 = vset.pattern.permute.xlu0 %v2754_v14  ;;  %947 = vst.msk [vmem:[#allocation2 + $0x10] sm:$0xff] %vm3339_vm4, %v2753_v12  ;;  %946 = vst.msk [vmem:[#allocation2] sm:$0xff] %vm3339_vm4, %v2753_v12  ;;  %v2654_v19 = vld [vmem:[%s2938_s22] sm:$0xff]   ;;  %v2656_v21 = vld [vmem:[%s2938_s22 + $0x10] sm:$0xff]   ;;  %v2755_v22 = vmov 839922192  }
  0x45   : > { %1302 = vmatprep.subr.bf16.mxu1 %v2753_v12  ;;  %v957_v23 = vunpack.c.l.s4 %v2755_v22  ;;  %v2657_v55 = vld [vmem:[%s2938_s22 + $0x18] sm:$0xff]   ;;  %v2658_v6 = vld [vmem:[%s2938_s22 + $0x20] sm:$0xff]   ;;  %vm1015_vm5 = vcmask 1041408   ;;  %vm1095_vm6 = vsmask.f32 256  ;;  %s2756_s15 = smov 64  }
  0x46   : > { %1303 = vmatpush1.bf16.msra.mxu1 %v2654_v19  ;;  %vm1198_vm7 = vsmask.f32 5376  ;;  %vm1064_vm8 = vsmask.f32 1280  ;;  %vm1128_vm9 = vsmask.f32 7424 }
  0x47   : > { %s3385_s1 = scalar_lea.vmem %s3384_s24, %s2894_s20  ;;  %2553 = vmatpush3.bf16.msra.mxu0 %v2653_v5  ;;  %1304 = vmatprep.subr.bf16.mxu1 %v2753_v12  ;;  %v958_v26 = vunpack.c.0.s8 %v957_v23  ;;  %s2757_s6 = smov 16   ;;  %vm1154_vm10 = vsmask.f32 6400  ;;  %vm991_vm11 = vsmask.f32 2304  ;;  %vm1181_vm12 = vcmask 1045504  }
  0x48   : > { %v2419_v11 = vld [vmem:[%s3385_s1] ss:$0 sm:$0xff]  ;;  %s3387_s4 = smov %s3386_s0  ;;  %2558 = vmatprep.subr.bf16.mxu0 %v2751_v4  ;;  %s2758_s23 = smov 48   ;;  %vm1022_vm13 = vcmask 261248   ;;  %vm1085_vm14 = vcmask 392448   ;;  %vm1111_vm15 = vcmask 523648  }
  0x49   : > { %v942_v13 = vld [vmem:[%s3386_s0] sm:$0xf]  ;;  %v943_v15 = vld [vmem:[%s3387_s4 + $0x4] sm:$0xf]  ;;  %v874_v16 = vmul.f32 %v2419_v11, %v865_v9  ;;  %v875_v17 = vmul.f32 %v2419_v11, %v866_v10  ;;  %v961_v30 = vsub.s32 %v958_v26, %v960_v27  ;;  %s2759_s26 = smov 32   ;;  %s2761_s30 = smov 96  }
  0x4a   : > { %953 = vperm.xlu1 %2651, %v942_v13   ;;  %1027 = vperm.xlu0 %2650, %v942_v13   ;;  %s2762_s16 = smov 112   ;;  %vm1118_vm0 = vcmask 654848   ;;  %vm1144_vm1 = vcmask 786048   ;;  %s3388_s7 = sld [smem:[#allocation20_spill]] }
  0x4b   : > { %v3010_v18 = vpack.c.bf16 %v875_v17, %v874_v16  ;;  %1305 = vmatpush1.bf16.msra.mxu1 %v2655_v20  ;;  %v1024_v50 = vld [vmem:[#allocation2] sm:$0xc0]  ;;  %v1191_v51 = vld [vmem:[#allocation2 + $0x10] sm:$0x7]  ;;  %s3390_s19 = sld [smem:[#allocation22_spill]]  ;;  %s3392_s24 = sld [smem:[#allocation12_spill]] }
  0x4c   : > { %1306 = vmatprep.subr.bf16.mxu1 %v2753_v12  ;;  %v1087_v58 = vld [vmem:[#allocation2] sm:$0x80]  ;;  %v1147_v59 = vld [vmem:[#allocation2 + $0x10] sm:$0x3]  ;;  %s3394_s1 = sld [smem:[#allocation24_spill]] }
  0x4d   : > { %2555 = vmatmul.mubr.msk.bf16.vlgmr.msra.gmra.mrb[0].mxu0 %vm897_vm3, %v3010_v18  ;;  %v1121_v9 = vld [vmem:[#allocation2 + $0x10] sm:$0x1]  ;;  %v949_v10 = vld [vmem:[#allocation2] sm:$0xe0] }
  0x4e   : > { %965 = vperm.xlu1 %2651, %v943_v15   ;;  %1038 = vperm.xlu0 %2650, %v943_v15   ;;  %v1011_v15 = vld [vmem:[#allocation2] sm:$0xc0] }
  0x4f   : > { %2562 = vmatprep.mubr.msk.bf16.mxu0 %vm3337_vm2, %v2751_v4  ;;  %1307 = vmatpush1.bf16.msra.mxu1 %v2656_v21  ;;  %vm1175_vm2 = vcmask 917248  }
  0x50   : > { %1308 = vmatprep.subr.bf16.mxu1 %v2753_v12  ;;  %s3389_s11 = scalar_lea.vmem %s3388_s7, %s2894_s20 }
  0x51   : > { %s3391_s21 = scalar_lea.vmem %s3390_s19, %s2894_s20 }
  0x52   : > { %s3395_s2 = scalar_lea.vmem %s3394_s1, %s2894_s20 }
  0x53   : > { %1309 = vmatpush1.bf16.msra.mxu1 %v2657_v55 }
  0x54   : > { %1310 = vmatprep.subr.bf16.mxu1 %v2753_v12 }
  0x57   : > { %1311 = vmatpush1.bf16.msra.mxu1 %v2658_v6  ;;  %v2661_v6 = vld [vmem:[%s2938_s22 + $0x38] sm:$0xff]  }
  0x58   : > { %1312 = vmatprep.subr.bf16.mxu1 %v2753_v12 }
  0xc9   : > { %v1028_v25 = vpop.permute.xlu0 %1027  ;;  %v954_v28 = vpop.permute.xlu1 %953 }
  0xca   : > { %v1036_v31 = vrot.slane %v1028_v25, %v961_v30  ;;  %v962_v34 = vrot.slane %v954_v28, %v961_v30  ;;  %v1016_v25 = vrot.slane %v1011_v15, 6 }
  0xcd   : > { %v1039_v29 = vpop.permute.xlu0 %1038  ;;  %v966_v32 = vpop.permute.xlu1 %965 }
  0xce   : > { %v1047_v33 = vrot.slane %v1039_v29, %v961_v30  ;;  %v974_v35 = vrot.slane %v966_v32, %v961_v30 }
  0xd0   : > { %v2424_v36 = vcombine.low %v1036_v31, %v1047_v33  ;;  %v2423_v38 = vcombine.low %v962_v34, %v974_v35  ;;  %v2659_v31 = vld [vmem:[%s2938_s22 + $0x28] sm:$0xff]  }
  0xd1   : > { %1313 = vmatpush1.bf16.msra.mxu1 %v2659_v31  ;;  %v2662_v31 = vld [vmem:[%s2938_s22 + $0x40] sm:$0xff]  }
  0xd2   : > { %v3027_v37 = vshll.u32 %v2424_v36, 16  ;;  %v1054_v39 = vshrl.u32 %v2424_v36, 16  ;;  %v981_v40 = vshrl.u32 %v2423_v38, 16  ;;  %v984_v43 = vshll.u32 %v2423_v38, 16  ;;  %1314 = vmatprep.subr.bf16.mxu1 %v2753_v12 }
  0xd4   : > { %v1056_v41 = vrot.slane %v1054_v39, 1  ;;  %v1059_v42 = vrot.slane %v3027_v37, 2  ;;  %v1192_v44 = vrot.slane %v1054_v39, 5  ;;  %v1193_v45 = vrot.slane %v3027_v37, 6 }
  0xd5   : > { %v1148_v46 = vrot.slane %v981_v40, 6  ;;  %v1149_v47 = vrot.slane %v984_v43, 7  ;;  %v983_v52 = vrot.slane %v981_v40, 2  ;;  %v986_v53 = vrot.slane %v984_v43, 3 }
  0xd6   : > { %v3031_v48 = vor.u32 %v1059_v42, %v1056_v41  ;;  %v3033_v49 = vor.u32 %v1193_v45, %v1192_v44  ;;  %v3041_v60 = vrot.slane %v984_v43, 1  ;;  %v3056_v11 = vrot.slane %v1054_v39, 7  ;;  %v2660_v44 = vld [vmem:[%s2938_s22 + $0x30] sm:$0xff]   ;;  %s2760_s22 = smov 80  }
  0xd7   : > { %v3035_v54 = vor.u32 %v1149_v47, %v1148_v46  ;;  %v3047_v0 = vor.u32 %v986_v53, %v983_v52  ;;  %1315 = vmatpush1.bf16.msra.mxu1 %v2660_v44 }
  0xd8   : > { %v1062_v57 = vmul.bf16 %v3031_v48, %v1024_v50  ;;  %v1197_v61 = vmul.bf16 %v3033_v49, %v1191_v51  ;;  %v1093_v3 = vmul.bf16 %v3041_v60, %v1087_v58  ;;  %v1127_v19 = vmul.bf16 %v3056_v11, %v1121_v9  ;;  %1316 = vmatprep.subr.bf16.mxu1 %v2753_v12 }
  0xd9   : > { %v3053_v5 = vmul.bf16 %v3035_v54, %v1147_v59  ;;  %v3065_v20 = vmul.bf16 %v3047_v0, %v949_v10  ;;  %v3076_v26 = vor.u32 %v3041_v60, %v981_v40  ;;  %v3087_v32 = vor.u32 %v3056_v11, %v3027_v37 }
  0xda   : > { %v1066_v7 = vshrl.u32 %v1062_v57, 16  ;;  %v1069_v8 = vshll.u32 %v1062_v57, 16  ;;  %v1208_v13 = vshrl.u32 %v1197_v61, 16  ;;  %v1211_v14 = vshll.u32 %v1197_v61, 16 }
  0xdb   : > { %v3060_v16 = vshrl.u32 %v1093_v3, 16  ;;  %v1164_v17 = vshrl.u32 %v3053_v5, 16  ;;  %v3081_v29 = vshll.u32 %v1127_v19, 16  ;;  %v993_v30 = vshrl.u32 %v3065_v20, 16  ;;  %1317 = vmatpush1.bf16.msra.mxu1 %v2661_v6 }
  0xdc   : > { %v3067_v21 = vrot.slane %v1066_v7, 6  ;;  %v3069_v22 = vrot.slane %v1069_v8, 7  ;;  %v3071_v23 = vrot.slane %v1208_v13, 2  ;;  %v3073_v24 = vrot.slane %v1211_v14, 3  ;;  %1318 = vmatprep.subr.bf16.mxu1 %v2753_v12 }
  0xdd   : > { %v1099_v27 = vrot.slane %v3060_v16, 7  ;;  %v3079_v28 = vrot.slane %v1164_v17, 1  ;;  %v1167_v38 = vshll.u32 %v3053_v5, 16  ;;  %v996_v50 = vshll.u32 %v3065_v20, 16 }
  0xde   : > { %v1072_v36 = vor.u32 %v3069_v22, %v3067_v21  ;;  %v1214_v39 = vor.u32 %v3073_v24, %v3071_v23  ;;  %v995_v19 = vrot.slane %v993_v30, 5  ;;  %v1178_v30 = vld [vmem:[#allocation2 + $0x10] sm:$0x3] }
  0xdf   : > { %v1169_v10 = vrot.slane %v1167_v38, 2  ;;  %v998_v20 = vrot.slane %v996_v50, 6  ;;  %v1183_v44 = vrot.slane %v1178_v30, 2  ;;  %1319 = vmatpush1.bf16.msra.mxu1 %v2662_v31  ;;  %v2436_v31 = vld [vmem:[%s3391_s21] ss:$0 sm:$0xff] }
  0xe1   : > { %v999_v12 = vor.u32 %v998_v20, %v995_v19  ;;  %v2669_v19 = vld [vmem:[%s2952_s9 + $0x48] sm:$0xff]  }
  0xe2   : > { %v2671_v20 = vld [vmem:[%s2957_s5 + $0x48] sm:$0xff]  }
 0x120   : > { %v3038_v56 = vpop.f32.mrb[0].mxu0 }
 0x121   : > { %v2556_v62 = vpop.f32.mrb[1].mxu0 }
 0x122   : > { %v3044_v63 = vpop.f32.mrb[2].mxu0 }
 0x123   : > { %v944_v1 = vpack.c.bf16 %v3044_v63, %v3038_v56  ;;  %v2557_v2 = vpop.f32.mrb[3].mxu0 }
 0x125   : > { %948 = vst.msk [vmem:[#allocation2 + $0x8] sm:$0xff] %vm3339_vm4, %v944_v1 }
 0x12c   : > { %v1190_v33 = vld [vmem:[#allocation2 + $0x8] sm:$0xfc] }
 0x12d   : > { %v1113_v34 = vld [vmem:[#allocation2 + $0x8] sm:$0xff]  ;;  %v1196_v40 = vmul.bf16 %v3033_v49, %v1190_v33 }
 0x12e   : > { %v1012_v35 = vld [vmem:[#allocation2 + $0x8] sm:$0x3f]  ;;  %1115 = vrot.lane.b32.xlu1 %v1113_v34, %s2756_s15  ;;  %v1094_v37 = vmul.bf16 %v1113_v34, %v3076_v26  ;;  %v1126_v47 = vmul.bf16 %v3087_v32, %v1113_v34 }
 0x12f   : > { %v1017_v41 = vrot.slane %v1012_v35, 6  ;;  %v1025_v42 = vld [vmem:[#allocation2 + $0x8] sm:$0x7f]  ;;  %v1200_v51 = vshrl.u32 %v1196_v40, 16  ;;  %v1203_v52 = vshll.u32 %v1196_v40, 16 }
 0x130   : > { %v1146_v43 = vld [vmem:[#allocation2 + $0x8] sm:$0xfe]  ;;  %v1063_v45 = vmul.bf16 %v3031_v48, %v1025_v42  ;;  %v1101_v55 = vshrl.u32 %v1094_v37, 16  ;;  %v1104_v59 = vshll.u32 %v1094_v37, 16  ;;  %v1132_v15 = vshll.u32 %v1126_v47, 16 }
 0x131   : > { %v1152_v46 = vmul.bf16 %v3035_v54, %v1146_v43  ;;  %v1018_v53 = vsel %vm1015_vm5, %v1016_v25, %v1017_v41  ;;  %v950_v62 = vld [vmem:[#allocation2 + $0x8] sm:$0x3f]  ;;  %v1202_v1 = vrot.slane %v1200_v51, 2  ;;  %v1205_v2 = vrot.slane %v1203_v52, 3 }
 0x132   : > { %1019 = vrot.lane.b32.xlu0 %v1018_v53, %s2757_s6  ;;  %v1074_v57 = vshrl.u32 %v1063_v45, 16  ;;  %v1077_v58 = vshll.u32 %v1063_v45, 16  ;;  %v1103_v3 = vrot.slane %v1101_v55, 7  ;;  %v990_v21 = vmul.bf16 %v3047_v0, %v950_v62  ;;  %v1177_v35 = vld [vmem:[#allocation2 + $0x8] sm:$0xfc] }
 0x133   : > { %v1156_v61 = vshrl.u32 %v1152_v46, 16  ;;  %v1159_v5 = vshll.u32 %v1152_v46, 16  ;;  %v1206_v16 = vor.u32 %v1205_v2, %v1202_v1  ;;  %v1130_v23 = vshrl.u32 %v1126_v47, 16  ;;  %v2664_v62 = vld [vmem:[%s2929_s27 + $0x8] sm:$0xff]   ;;  %v2425_v1 = vld [vmem:[%s3389_s11] ss:$0 sm:$0xff] }
 0x134   : > { %v1076_v7 = vrot.slane %v1074_v57, 6  ;;  %v1079_v8 = vrot.slane %v1077_v58, 7  ;;  %v1106_v13 = vor.u32 %v1104_v59, %v1103_v3  ;;  %v1134_v24 = vrot.slane %v1132_v15, 1  ;;  %v2666_v15 = vld [vmem:[%s2952_s9] sm:$0xff]  }
 0x135   : > { %v1158_v9 = vrot.slane %v1156_v61, 1  ;;  %v1161_v14 = vrot.slane %v1159_v5, 2  ;;  %v1215_v25 = vsel %vm1198_vm7, %v1206_v16, %v1214_v39  ;;  %v1001_v38 = vshrl.u32 %v990_v21, 16  ;;  %v2663_v61 = vld [vmem:[%s2929_s27] sm:$0xff]  }
 0x136   : > { %v1080_v17 = vor.u32 %v1079_v8, %v1076_v7  ;;  %v1107_v22 = vsel %vm1095_vm6, %v1099_v27, %v1106_v13  ;;  %1217 = vst.msk [vmem:[#allocation3 + $0x8] sm:$0xff] %vm3339_vm4, %v1215_v25  ;;  %v1004_v40 = vshll.u32 %v990_v21, 16  ;;  %v1135_v27 = vor.u32 %v1134_v24, %v1130_v23  ;;  %2559 = vmatpush3.bf16.msra.mxu0 %v2663_v61  ;;  %v2667_v16 = vld [vmem:[%s2957_s5 + $0x40] sm:$0xff]   ;;  %v2670_v21 = vld [vmem:[%s2952_s9 + $0x8] sm:$0xff]   ;;  %v2673_v23 = vld [vmem:[%s2952_s9 + $0x50] sm:$0xff]  }
 0x137   : > { %1108 = vrot.lane.b32.xlu0 %v1107_v22, %s2758_s23  ;;  %v1162_v34 = vor.u32 %v1161_v14, %v1158_v9  ;;  %v1139_v39 = vrot.slane %v3081_v29, 1  ;;  %v1003_v41 = vrot.slane %v1001_v38, 5  ;;  %v1182_v43 = vrot.slane %v1177_v35, 2  ;;  %2560 = vmatprep.subr.bf16.mxu0 %v2751_v4  ;;  %v2665_v14 = vld [vmem:[%s2952_s9 + $0x40] sm:$0xff]   ;;  %v2672_v22 = vld [vmem:[%s2957_s5 + $0x8] sm:$0xff]   ;;  %v2675_v24 = vld [vmem:[%s2957_s5 + $0x50] sm:$0xff]  }
 0x138   : > { %v1081_v33 = vsel %vm1064_vm8, %v1072_v36, %v1080_v17  ;;  %v1170_v36 = vor.u32 %v1169_v10, %v3079_v28  ;;  %v1006_v42 = vrot.slane %v1004_v40, 6  ;;  %v2668_v17 = vld [vmem:[%s2957_s5] sm:$0xff]   ;;  %2522 = vmatprep.subr.bf16.mxu1 %v2667_v16  ;;  %v2674_v25 = vld [vmem:[%s2952_s9 + $0x10] sm:$0xff]   ;;  %v1504_v40 = vld [vmem:[#allocation4 + $0x10] sm:$0x1]  ;;  %s3398_s23 = sld [smem:[#allocation26_spill]] }
 0x139   : > { %1082 = vrot.lane.b32.xlu1 %v1081_v33, %s2759_s26  ;;  %v1140_v37 = vsel %vm1128_vm9, %v1135_v27, %v1139_v39  ;;  %v1184_v47 = vsel %vm1181_vm12, %v1182_v43, %v1183_v44  ;;  %v1506_v43 = vmul.bf16 %v1504_v40, %v3056_v11  ;;  %v2680_v11 = vld [vmem:[%s2957_s5 + $0x18] sm:$0xff]  }
 0x13a   : > { %v1171_v45 = vsel %vm1154_vm10, %v1162_v34, %v1170_v36  ;;  %v1007_v46 = vor.u32 %v1006_v42, %v1003_v41  ;;  %2561 = vmatpush3.bf16.msra.mxu0 %v2664_v62  ;;  %v1560_v34 = vld [vmem:[#allocation4 + $0x10] sm:$0x7]  ;;  %v1454_v36 = vld [vmem:[#allocation4] sm:$0xc0] }
 0x13b   : > { %1141 = vrot.lane.b32.xlu0 %v1140_v37, %s2760_s22  ;;  %2497 = vmatprep.subr.bf16.mxu0 %v2665_v14  ;;  %v1562_v41 = vmul.bf16 %v1560_v34, %v3033_v49  ;;  %v1456_v44 = vmul.bf16 %v1454_v36, %v3031_v48 }
 0x13c   : > { %v1008_v28 = vsel %vm991_vm11, %v999_v12, %v1007_v46  ;;  %v1480_v12 = vld [vmem:[#allocation4] sm:$0x80] }
 0x13d   : > { %1172 = vrot.lane.b32.xlu1 %v1171_v45, %s2761_s30  ;;  %v1219_v29 = vld [vmem:[#allocation3 + $0x8] sm:$0xff]  ;;  %1010 = vst.msk [vmem:[#allocation3] sm:$0xff] %vm3339_vm4, %v1008_v28  ;;  %v1524_v45 = vld [vmem:[#allocation4 + $0x10] sm:$0x3]  ;;  %v2676_v28 = vld [vmem:[%s2957_s5 + $0x10] sm:$0xff]   ;;  %v1482_v61 = vmul.bf16 %v1480_v12, %v3041_v60 }
 0x13e   : > { %2435 = vmatprep.mubr.msk.bf16.mxu1 %vm3339_vm4, %v1219_v29  ;;  %vm1188_vm4 = vcmask 1048448   ;;  %v2677_v29 = vld [vmem:[%s2952_s9 + $0x58] sm:$0xff]   ;;  %v2682_v60 = vld [vmem:[%s2952_s9 + $0x20] sm:$0xff]  }
 0x13f   : > { %1185 = vrot.lane.b32.xlu0 %v1184_v47, %s2762_s16  ;;  %v2678_v47 = vld [vmem:[%s2952_s9 + $0x18] sm:$0xff]  }
 0x1a0   : > { %v1116_v51 = vpop.permute.xlu1 %1115 }
 0x1a4   : > { %v1020_v50 = vpop.permute.xlu0 %1019 }
 0x1a5   : > { %1023 = vst.msk [vmem:[#allocation3] sm:$0xff] %vm1022_vm13, %v1020_v50  ;;  %v1572_v50 = vshrl.u32 %v1562_v41, 16 }
 0x1a9   : > { %v1109_v52 = vpop.permute.xlu0 %1108 }
 0x1ab   : > { %v1083_v53 = vpop.permute.xlu1 %1082 }
 0x1ac   : > { %1086 = vst.msk [vmem:[#allocation3] sm:$0xff] %vm1085_vm14, %v1083_v53  ;;  %v2679_v53 = vld [vmem:[%s2957_s5 + $0x58] sm:$0xff]  }
 0x1ad   : > { %1112 = vst.msk [vmem:[#allocation3] sm:$0xff] %vm1111_vm15, %v1109_v52  ;;  %v1142_v55 = vpop.permute.xlu0 %1141  ;;  %v1419_v52 = vld [vmem:[#allocation4] sm:$0xe0] }
 0x1ae   : > { %1119 = vst.msk [vmem:[#allocation3] sm:$0xff] %vm1118_vm0, %v1116_v51  ;;  %v1575_v51 = vshll.u32 %v1562_v41, 16  ;;  %v3166_v62 = vmul.bf16 %v1419_v52, %v3047_v0 }
 0x1af   : > { %v1173_v57 = vpop.permute.xlu1 %1172  ;;  %1145 = vst.msk [vmem:[#allocation3] sm:$0xff] %vm1144_vm1, %v1142_v55  ;;  %v3158_v55 = vshll.u32 %v1506_v43, 16 }
 0x1b0   : > { %1176 = vst.msk [vmem:[#allocation3] sm:$0xff] %vm1175_vm2, %v1173_v57  ;;  %v1459_v57 = vshrl.u32 %v1456_v44, 16  ;;  %v1424_v16 = vshrl.u32 %v3166_v62, 16  ;;  %vm1452_vm2 = vcmask 523520  }
 0x1b1   : > { %v1186_v58 = vpop.permute.xlu0 %1185 }
 0x1b2   : > { %1189 = vst.msk [vmem:[#allocation3] sm:$0xff] %vm1188_vm4, %v1186_v58  ;;  %v1462_v58 = vshll.u32 %v1456_v44, 16  ;;  %vm1478_vm4 = vcmask 785920  }
 0x1b9   : > { %v1218_v59 = vld [vmem:[#allocation3] sm:$0xff] }
 0x1ba   : > { %1335 = vmatmul.mubr.bf16.vlgmr.msra.gmra.mrb[0].mxu1 %v1218_v59  ;;  %v3162_v59 = vmul.bf16 %v1524_v45, %v3035_v54 }
 0x1bb   : > { %2523 = vmatpush3.bf16.msra.mxu1 %v2668_v17  ;;  %v2684_v17 = vld [vmem:[%s2957_s5 + $0x20] sm:$0xff]  }
 0x1bc   : > { %2524 = vmatprep.subr.bf16.mxu1 %v2671_v20  ;;  %v1539_v14 = vshll.u32 %v3162_v59, 16 }
 0x1bf   : > { %2525 = vmatpush3.bf16.msra.mxu1 %v2672_v22 }
 0x1c0   : > { %2526 = vmatprep.subr.bf16.mxu1 %v2675_v24 }
 0x1c3   : > { %2527 = vmatpush3.bf16.msra.mxu1 %v2676_v28 }
 0x1c4   : > { %2528 = vmatprep.subr.bf16.mxu1 %v2679_v53  ;;  %v2689_v53 = vld [vmem:[%s2952_s9 + $0x70] sm:$0xff]  }
 0x1c7   : > { %2529 = vmatpush3.bf16.msra.mxu1 %v2680_v11  ;;  %v2690_v11 = vld [vmem:[%s2952_s9 + $0x30] sm:$0xff]  }
 0x28d   : > { %v1336_v2 = vpop.f32.mrb[0].mxu1 }
 0x28e   : > { %v1337_v3 = vadd.f32 %v2425_v1, %v1336_v2  ;;  %v1338_v5 = vpop.f32.mrb[1].mxu1  ;;  %v3170_v2 = vrot.slane %v1575_v51, 3 }
 0x28f   : > { %v1339_v6 = vpop.f32.mrb[2].mxu1  ;;  %v1517_v5 = vrot.slane %v3158_v55, 1 }
 0x290   : > { %v1340_v7 = vadd.f32 %v2425_v1, %v1339_v6  ;;  %v1341_v8 = vpop.f32.mrb[3].mxu1  ;;  %v1343_v9 = vmax.f32 %v1337_v3, 0.0  ;;  %v3168_v1 = vrot.slane %v1572_v50, 2  ;;  %v1442_v3 = vld [vmem:[#allocation4] sm:$0xc0]  ;;  %v3173_v6 = vrot.slane %v1459_v57, 6 }
 0x291   : > { %v1536_v8 = vshrl.u32 %v3162_v59, 16  ;;  %v1541_v59 = vrot.slane %v1539_v14, 2 }
 0x292   : > { %v1344_v10 = vmax.f32 %v1340_v7, 0.0  ;;  %v3175_v7 = vrot.slane %v1462_v58, 7 }
 0x293   : > { %v3197_v40 = vrot.slane %v1536_v8, 1 }
 0x294   : > { %v1345_v13 = vpack.c.bf16 %v1344_v10, %v1343_v9  ;;  %v2681_v9 = vld [vmem:[%s2952_s9 + $0x60] sm:$0xff]  }
 0x295   : > { %v2683_v10 = vld [vmem:[%s2957_s5 + $0x60] sm:$0xff]  }
 0x296   : > { %2563 = vmatmul.mubr.msk.bf16.vlgmr.msra.gmra.mrb[4].mxu0 %vm897_vm3, %v1345_v13  ;;  %v1446_v13 = vrot.slane %v1442_v3, 6  ;;  %2530 = vmatprep.subr.bf16.mxu1 %v2683_v10  ;;  %v2691_v3 = vld [vmem:[%s2957_s5 + $0x70] sm:$0xff]  }
 0x297   : > { %2498 = vmatpush3.bf16.msra.mxu0 %v2666_v15  ;;  %v3182_v15 = vshrl.u32 %v1482_v61, 16  ;;  %2531 = vmatpush3.bf16.msra.mxu1 %v2684_v17 }
 0x298   : > { %2499 = vmatprep.subr.bf16.mxu0 %v2669_v19  ;;  %v1578_v19 = vor.u32 %v3170_v2, %v3168_v1  ;;  %v1549_v2 = vld [vmem:[#allocation4 + $0x10] sm:$0x3] }
 0x29b   : > { %2500 = vmatpush3.bf16.msra.mxu0 %v2670_v21 }
 0x29c   : > { %2501 = vmatprep.subr.bf16.mxu0 %v2673_v23  ;;  %v1427_v23 = vshll.u32 %v3166_v62, 16 }
 0x29e   : > { %v1429_v55 = vrot.slane %v1427_v23, 6 }
 0x29f   : > { %2502 = vmatpush3.bf16.msra.mxu0 %v2674_v25 }
 0x2a0   : > { %2503 = vmatprep.subr.bf16.mxu0 %v2677_v29 }
 0x2a3   : > { %2504 = vmatpush3.bf16.msra.mxu0 %v2678_v47 }
 0x2a4   : > { %2505 = vmatprep.subr.bf16.mxu0 %v2681_v9 }
 0x2a7   : > { %2506 = vmatpush3.bf16.msra.mxu0 %v2682_v60 }
 0x369   : > { %v1406_v33 = vpop.f32.mrb[4].mxu0 }
 0x36a   : > { %v1407_v35 = vadd.f32 %v2436_v31, %v1406_v33  ;;  %v2564_v30 = vpop.f32.mrb[5].mxu0 }
 0x36b   : > { %v1409_v38 = vpop.f32.mrb[6].mxu0 }
 0x36c   : > { %v1410_v27 = vadd.f32 %v2436_v31, %v1409_v38  ;;  %v2565_v39 = vpop.f32.mrb[7].mxu0  ;;  %v1413_v42 = vmax.f32 %v1407_v35, 0.0  ;;  %v1465_v38 = vor.u32 %v3175_v7, %v3173_v6  ;;  %v2692_v6 = vld [vmem:[%s2957_s5 + $0x30] sm:$0xff]   ;;  %v2693_v7 = vld [vmem:[%s2952_s9 + $0x78] sm:$0xff]  }
 0x36e   : > { %v1414_v37 = vmax.f32 %v1410_v27, 0.0 }
 0x370   : > { %v1415_v46 = vpack.c.bf16 %v1414_v37, %v1413_v42  ;;  %v2687_v42 = vld [vmem:[%s2957_s5 + $0x68] sm:$0xff]  }
 0x371   : > { %v2688_v37 = vld [vmem:[%s2957_s5 + $0x28] sm:$0xff]   ;;  %2532 = vmatprep.subr.bf16.mxu1 %v2687_v42  ;;  %v2697_v42 = vld [vmem:[%s2952_s9 + $0x80] sm:$0xff]  }
 0x372   : > { %1418 = vst.msk [vmem:[#allocation4 + $0x8] sm:$0xff] %vm897_vm3, %v1415_v46  ;;  %2533 = vmatpush3.bf16.msra.mxu1 %v2688_v37 }
 0x373   : > { %2534 = vmatprep.subr.bf16.mxu1 %v2691_v3 }
 0x376   : > { %2535 = vmatpush3.bf16.msra.mxu1 %v2692_v6 }
 0x379   : > { %v1559_v20 = vld [vmem:[#allocation4 + $0x8] sm:$0xfc] }
 0x37a   : > { %v1443_v21 = vld [vmem:[#allocation4 + $0x8] sm:$0x3f]  ;;  %v1561_v24 = vmul.bf16 %v1559_v20, %v3033_v49  ;;  %v1426_v20 = vrot.slane %v1424_v16, 5 }
 0x37b   : > { %v1503_v22 = vld [vmem:[#allocation4 + $0x8] sm:$0xff]  ;;  %v1447_v25 = vrot.slane %v1443_v21, 6  ;;  %v2694_v21 = vld [vmem:[%s2952_s9 + $0x38] sm:$0xff]  }
 0x37c   : > { %v1505_v31 = vmul.bf16 %v1503_v22, %v3087_v32  ;;  %v1455_v33 = vld [vmem:[#allocation4 + $0x8] sm:$0x7f]  ;;  %v1483_v35 = vmul.bf16 %v1503_v22, %v3076_v26  ;;  %1502 = vst.msk [vmem:[#allocation5 + $0x8] sm:$0xff] %vm897_vm3, %v1503_v22  ;;  %v2685_v32 = vld [vmem:[%s2952_s9 + $0x68] sm:$0xff]   ;;  %v1564_v27 = vshrl.u32 %v1561_v24, 16  ;;  %v1567_v39 = vshll.u32 %v1561_v24, 16 }
 0x37d   : > { %v1523_v34 = vld [vmem:[#allocation4 + $0x8] sm:$0xfe]  ;;  %v1457_v30 = vmul.bf16 %v1455_v33, %v3031_v48  ;;  %v1448_v36 = vsel %vm1015_vm5, %v1446_v13, %v1447_v25  ;;  %v2686_v26 = vld [vmem:[%s2952_s9 + $0x28] sm:$0xff]   ;;  %2507 = vmatprep.subr.bf16.mxu0 %v2685_v32  ;;  %v2695_v13 = vld [vmem:[%s2957_s5 + $0x78] sm:$0xff]   ;;  %v1430_v62 = vor.u32 %v1429_v55, %v1426_v20  ;;  %vm1499_vm5 = vcmask 1048320  }
 0x37e   : > { %v1525_v49 = vmul.bf16 %v1523_v34, %v3035_v54  ;;  %v1508_v41 = vshrl.u32 %v1505_v31, 16  ;;  %1449 = vrot.lane.b32.xlu0 %v1448_v36, %s2759_s26  ;;  %v1510_v43 = vshll.u32 %v1505_v31, 16  ;;  %v1566_v54 = vrot.slane %v1564_v27, 2  ;;  %v1420_v29 = vld [vmem:[#allocation4 + $0x8] sm:$0x3f]  ;;  %2508 = vmatpush3.bf16.msra.mxu0 %v2686_v26  ;;  %v2696_v31 = vld [vmem:[%s2957_s5 + $0x38] sm:$0xff]  }
 0x37f   : > { %v1467_v48 = vshrl.u32 %v1457_v30, 16  ;;  %v1470_v44 = vshll.u32 %v1457_v30, 16  ;;  %v1569_v12 = vrot.slane %v1567_v39, 3  ;;  %v1489_v28 = vshrl.u32 %v1483_v35, 16  ;;  %2509 = vmatprep.subr.bf16.mxu0 %v2689_v53  ;;  %v1548_v1 = vld [vmem:[#allocation4 + $0x8] sm:$0xfc]  ;;  %2536 = vmatprep.subr.bf16.mxu1 %v2695_v13 }
 0x380   : > { %v1528_v45 = vshrl.u32 %v1525_v49, 16  ;;  %v1531_v46 = vshll.u32 %v1525_v49, 16  ;;  %v1512_v47 = vrot.slane %v1510_v43, 1  ;;  %v1492_v60 = vshll.u32 %v1483_v35, 16  ;;  %2537 = vmatpush3.bf16.msra.mxu1 %v2696_v31  ;;  %v2480_v13 = vld [vmem:[%s831_s10] ss:$0 sm:$0xff] }
 0x381   : > { %v1469_v50 = vrot.slane %v1467_v48, 6  ;;  %v1472_v51 = vrot.slane %v1470_v44, 7  ;;  %v1570_v57 = vor.u32 %v1569_v12, %v1566_v54  ;;  %v1491_v61 = vrot.slane %v1489_v28, 7  ;;  %v2698_v48 = vld [vmem:[%s2952_s9 + $0x88] sm:$0xff]   ;;  %v2699_v44 = vld [vmem:[%s2957_s5 + $0x80] sm:$0xff]  }
 0x382   : > { %v1530_v52 = vrot.slane %v1528_v45, 1  ;;  %v1533_v58 = vrot.slane %v1531_v46, 2  ;;  %v1513_v8 = vor.u32 %v1512_v47, %v1508_v41  ;;  %v1422_v10 = vmul.bf16 %v1420_v29, %v3047_v0  ;;  %2510 = vmatpush3.bf16.msra.mxu0 %v2690_v11  ;;  %v2700_v54 = vld [vmem:[%s2957_s5 + $0x88] sm:$0xff]   ;;  %v2701_v12 = vld [vmem:[%s3392_s24] sm:$0xff]  }
 0x383   : > { %v1473_v9 = vor.u32 %v1472_v51, %v1469_v50  ;;  %v1579_v14 = vsel %vm1198_vm7, %v1570_v57, %v1578_v19  ;;  %v1494_v24 = vor.u32 %v1492_v60, %v1491_v61  ;;  %2511 = vmatprep.subr.bf16.mxu0 %v2693_v7  ;;  %v1487_v19 = vrot.slane %v3182_v15, 7  ;;  %v2702_v46 = vld [vmem:[%s3392_s24 + $0x8] sm:$0xff]  }
 0x384   : > { %v1534_v17 = vor.u32 %v1533_v58, %v1530_v52  ;;  %v1518_v22 = vsel %vm1128_vm9, %v1513_v8, %v1517_v5  ;;  %v1432_v25 = vshrl.u32 %v1422_v10, 16  ;;  %1581 = vst.msk [vmem:[#allocation5 + $0x10] sm:$0xff] %vm897_vm3, %v1579_v14  ;;  %v1435_v16 = vshll.u32 %v1422_v10, 16 }
 0x385   : > { %v1474_v0 = vsel %vm1064_vm8, %v1465_v38, %v1473_v9  ;;  %1519 = vrot.lane.b32.xlu1 %v1518_v22, %s2759_s26  ;;  %v1542_v5 = vor.u32 %v1541_v59, %v3197_v40  ;;  %v1495_v30 = vsel %vm1095_vm6, %v1487_v19, %v1494_v24  ;;  %v1552_v38 = vrot.slane %v1548_v1, 2  ;;  %s3399_s26 = scalar_lea.vmem %s3398_s23, %s2894_s20 }
 0x386   : > { %1475 = vrot.lane.b32.xlu0 %v1474_v0, %s2756_s15  ;;  %v1434_v33 = vrot.slane %v1432_v25, 5  ;;  %v1437_v34 = vrot.slane %v1435_v16, 6  ;;  %2512 = vmatpush3.bf16.msra.mxu0 %v2694_v21  ;;  %v1553_v49 = vrot.slane %v1549_v2, 2  ;;  %vm3393_vm6 = vmmov 0   ;;  %v2460_v24 = vld [vmem:[%s3399_s26] ss:$0 sm:$0xff] }
 0x387   : > { %v1543_v35 = vsel %vm1154_vm10, %v1534_v17, %v1542_v5  ;;  %2566 = vmatprep.subr.bf16.mxu0 %v2751_v4  ;;  %vm2153_vm10 = vcmask 0  }
 0x388   : > { %v1438_v23 = vor.u32 %v1437_v34, %v1434_v33  ;;  %v1554_v40 = vsel %vm1181_vm12, %v1552_v38, %v1553_v49 }
 0x389   : > { %1544 = vrot.lane.b32.xlu1 %v1543_v35, %s2756_s15 }
 0x38a   : > { %1496 = vrot.lane.b32.xlu0 %v1495_v30, %s2761_s30  ;;  %v1439_v15 = vsel %vm991_vm11, %v1430_v62, %v1438_v23 }
 0x38b   : > { %1441 = vst.msk [vmem:[#allocation5] sm:$0xff] %vm897_vm3, %v1439_v15  ;;  %v1584_v45 = vld [vmem:[#allocation5 + $0x10] sm:$0xff] }
 0x38d   : > { %1555 = vrot.lane.b32.xlu1 %v1554_v40, %s2761_s30 }
 0x3f0   : > { %v1450_v32 = vpop.permute.xlu0 %1449 }
 0x3f1   : > { %1453 = vst.msk [vmem:[#allocation5] sm:$0xff] %vm1452_vm2, %v1450_v32 }
 0x3f7   : > { %v1520_v27 = vpop.permute.xlu1 %1519 }
 0x3f8   : > { %v1476_v39 = vpop.permute.xlu0 %1475  ;;  %1522 = vst.msk [vmem:[#allocation5 + $0x8] sm:$0xff] %vm1452_vm2, %v1520_v27 }
 0x3f9   : > { %1479 = vst.msk [vmem:[#allocation5] sm:$0xff] %vm1478_vm4, %v1476_v39 }
 0x3fb   : > { %v1545_v36 = vpop.permute.xlu1 %1544 }
 0x3fc   : > { %v1497_v41 = vpop.permute.xlu0 %1496  ;;  %1547 = vst.msk [vmem:[#allocation5 + $0x8] sm:$0xff] %vm1478_vm4, %v1545_v36 }
 0x3fd   : > { %1500 = vst.msk [vmem:[#allocation5] sm:$0xff] %vm1499_vm5, %v1497_v41  ;;  %v2149_v41 = vld [vmem:[%s2976_s8] sm:$0x1] }
 0x3ff   : > { %v1556_v26 = vpop.permute.xlu1 %1555 }
 0x400   : > { %1558 = vst.msk [vmem:[#allocation5 + $0x8] sm:$0xff] %vm1499_vm5, %v1556_v26 }
 0x404   : > { %v1582_v43 = vld [vmem:[#allocation5] sm:$0xff] }
 0x407   : > { %v1583_v37 = vld [vmem:[#allocation5 + $0x8] sm:$0xff] }
 0x408   : > { %1771 = vmatprep.mubr.bf16.mxu0 %v1583_v37  ;;  %2004 = vmatprep.mubr.bf16.mxu1 %v1583_v37 }
 0x409   : > { %1772 = vmatmul.mubr.bf16.vlgmr.msra.gmra.mrb[8].mxu0 %v1582_v43  ;;  %2005 = vmatmul.mubr.bf16.vlgmr.msra.gmra.mrb[4].mxu1 %v1582_v43 }
 0x40a   : > { %2567 = vmatpush3.bf16.msra.mxu0 %v2697_v42  ;;  %2570 = vmatprep.mubr.msk.bf16.mxu0 %vm3393_vm6, %v2751_v4 }
 0x40b   : > { %2568 = vmatprep.subr.bf16.mxu0 %v2751_v4 }
 0x40e   : > { %2569 = vmatpush3.bf16.msra.mxu0 %v2698_v48 }
 0x40f   : > { %2574 = vmatprep.subr.bf16.mxu0 %v2751_v4 }
 0x411   : > { %2571 = vmatmul.mubr.msk.bf16.vlgmr.msra.gmra.mrb[12].mxu0 %vm897_vm3, %v1584_v45 }
 0x412   : > { %2575 = vmatpush3.bf16.msra.mxu0 %v2699_v44  ;;  %2578 = vmatprep.mubr.msk.bf16.mxu0 %vm3393_vm6, %v2751_v4 }
 0x413   : > { %2576 = vmatprep.subr.bf16.mxu0 %v2751_v4 }
 0x416   : > { %2577 = vmatpush3.bf16.msra.mxu0 %v2700_v54 }
 0x417   : > { %2582 = vmatprep.subr.bf16.mxu0 %v2751_v4 }
 0x419   : > { %2579 = vmatmul.mubr.msk.bf16.vlgmr.msra.gmra.mrb[16].mxu0 %vm897_vm3, %v1584_v45 }
 0x41a   : > { %2583 = vmatpush3.bf16.msra.mxu0 %v2701_v12  ;;  %2586 = vmatprep.mubr.msk.bf16.mxu0 %vm3393_vm6, %v2751_v4 }
 0x41b   : > { %2584 = vmatprep.subr.bf16.mxu0 %v2751_v4  ;;  %v2440_v4 = vld [vmem:[%s3395_s2] ss:$0 sm:$0xff] }
 0x41e   : > { %2585 = vmatpush3.bf16.msra.mxu0 %v2702_v46 }
 0x425   : > { %2587 = vmatmul.mubr.msk.bf16.vlgmr.msra.gmra.mrb[16].mxu0 %vm897_vm3, %v3010_v18  ;;  %vm3397_vm3 = vcmask 130048  }
 0x426   : > { %vm3400_vm7 = vmmov %vm3397_vm3 }
 0x427   : > { %vm3401_vm8 = vmmov %vm3397_vm3 }
 0x428   : > { %vm3402_vm9 = vmmov %vm3397_vm3 }
 0x4dc   : > { %v2513_v28 = vpop.f32.mrb[8].mxu0  ;;  %v2538_v29 = vpop.f32.mrb[4].mxu1 }
 0x4dd   : > { %v2514_v47 = vpop.f32.mrb[9].mxu0  ;;  %v2539_v50 = vpop.f32.mrb[5].mxu1 }
 0x4de   : > { %v2515_v51 = vadd.f32 %v2514_v47, %v2513_v28  ;;  %v2540_v52 = vadd.f32 %v2539_v50, %v2538_v29  ;;  %v2516_v53 = vpop.f32.mrb[10].mxu0  ;;  %v2541_v11 = vpop.f32.mrb[6].mxu1 }
 0x4df   : > { %v2517_v57 = vpop.f32.mrb[11].mxu0  ;;  %v2542_v58 = vpop.f32.mrb[7].mxu1 }
 0x4e0   : > { %v2518_v59 = vadd.f32 %v2517_v57, %v2516_v53  ;;  %v2543_v61 = vadd.f32 %v2542_v58, %v2541_v11  ;;  %v1774_v3 = vadd.f32 %v2515_v51, %v2440_v4  ;;  %v2007_v1 = vadd.f32 %v2540_v52, %v2460_v24 }
 0x4e2   : > { %v1777_v8 = vadd.f32 %v2518_v59, %v2440_v4  ;;  %v2010_v5 = vadd.f32 %v2543_v61, %v2460_v24 }
 0x4e4   : > { %v1814_v18 = vpop.f32.mrb[12].mxu0 }
 0x4e5   : > { %v1815_v6 = vadd.f32 %v1814_v18, %v1774_v3  ;;  %v2572_v7 = vpop.f32.mrb[13].mxu0 }
 0x4e6   : > { %v1817_v9 = vpop.f32.mrb[14].mxu0 }
 0x4e7   : > { %2703 = vtanh.f32 %v1815_v6  ;;  %v1818_v60 = vadd.f32 %v1817_v9, %v1777_v8  ;;  %v2573_v10 = vpop.f32.mrb[15].mxu0 }
 0x4e9   : > { %2705 = vtanh.f32 %v1818_v60 }
 0x4f1   : > { %v2704_v17 = vpop.eup %2703 }
 0x4f2   : > { %v2063_v20 = vmul.f32 %v2704_v17, %v2480_v13 }
 0x4f3   : > { %v2706_v21 = vpop.eup %2705 }
 0x4f4   : > { %v2136_v14 = vsel %vm3397_vm3, %v2063_v20, 0.0  ;;  %v2118_v22 = vmul.f32 1.442695, %v2063_v20  ;;  %v2064_v0 = vmul.f32 %v2706_v21, %v2480_v13 }
 0x4f5   : > { %2137 = vadd.xlane.f32.xlu1 %v2136_v14 }
 0x4f6   : > { %2707 = vpow2.f32 %v2118_v22  ;;  %v2139_v25 = vsel %vm3400_vm7, %v2064_v0, 0.0  ;;  %v2120_v31 = vmul.f32 1.442695, %v2064_v0 }
 0x4f7   : > { %2140 = vadd.xlane.f32.xlu0 %v2139_v25 }
 0x4f8   : > { %2709 = vpow2.f32 %v2120_v31  ;;  %v2111_v2 = vpop.f32.mrb[16].mxu0 }
 0x4f9   : > { %v2590_v55 = vadd.f32 %v2111_v2, %v2007_v1  ;;  %v2588_v16 = vpop.f32.mrb[17].mxu0 }
 0x4fa   : > { %v2114_v19 = vpop.f32.mrb[18].mxu0 }
 0x4fb   : > { %v2591_v33 = vadd.f32 %v2114_v19, %v2010_v5  ;;  %v2589_v34 = vpop.f32.mrb[19].mxu0 }
 0x500   : > { %v2708_v35 = vpop.eup %2707 }
 0x501   : > { %v2122_v30 = vmul.f32 %v2708_v35, %v2590_v55 }
 0x502   : > { %v2710_v38 = vpop.eup %2709 }
 0x503   : > { %2124 = vst.msk [vmem:[%s2970_s14] sm:$0xff] %vm3401_vm8, %v2122_v30  ;;  %v2123_v49 = vmul.f32 %v2710_v38, %v2591_v33 }
 0x505   : > { %2125 = vst.msk [vmem:[%s2970_s14 + $0x8] sm:$0xff] %vm3402_vm9, %v2123_v49 }
 0x506   : > { %2130 = vrot.lane.b32.xlu1 %v3044_v63, %s2757_s6  ;;  %v2150_v63 = vld [vmem:[%s834_s12] sm:$0x1] }
 0x507   : > { %v2151_v26 = vadd.f32 %v2150_v63, %v2149_v41 }
 0x50d   : > { %2128 = vrot.lane.b32.xlu0 %v3038_v56, %s2757_s6 }
 0x582   : > { %v2138_v62 = vpop.xlane.xlu1 %2137 }
 0x584   : > { %v2141_v23 = vpop.xlane.xlu0 %2140 }
 0x585   : > { %v2142_v15 = vadd.f32 %v2141_v23, %v2138_v62 }
 0x586   : > { %v2131_v40 = vpop.permute.xlu1 %2130 }
 0x587   : > { %v2143_v32 = vrot.slane %v2142_v15, 4  ;;  %2135 = vst.msk [vmem:[%s2970_s14 + $0x8] sm:$0xff] %vm1022_vm13, %v2131_v40 }
 0x588   : > { %v2129_v27 = vpop.permute.xlu0 %2128 }
 0x589   : > { %v2144_v39 = vadd.f32 %v2143_v32, %v2142_v15  ;;  %2134 = vst.msk [vmem:[%s2970_s14] sm:$0xff] %vm1022_vm13, %v2129_v27 }
 0x58b   : > { %v2145_v36 = vrot.slane %v2144_v39, 2 }
 0x58d   : > { %v2146_v56 = vadd.f32 %v2145_v36, %v2144_v39 }
 0x58f   : > { %v2147_v42 = vrot.slane %v2146_v56, 1 }
 0x591   : > { %v2148_v37 = vadd.f32 %v2147_v42, %v2146_v56 }
 0x593   : > { %v2152_v43 = vadd.f32 %v2151_v26, %v2148_v37 }
 0x595   : > { %2154 = vst.msk [vmem:[%s2976_s8] sm:$0x1] %vm2153_vm10, %v2152_v43 }
 0x596 PF: > { %s3404_s6 = sld [smem:[#allocation9_spill]]  ;;  %s3405_s27 = sld [smem:[#allocation7_spill]] }
 0x597   : > { %s3406_s28 = sld [smem:[#allocation8_spill]]  ;;  %s3407_s29 = sld [smem:[#allocation10_spill]] }
 0x598   : > { %s3408_s30 = sld [smem:[#allocation11_spill]] }
 0x59c   : > { %s29_s0 = sadd.s32 1, %s3404_s6  }
 0x59d   : > { %p26_p8 = scmp.ge.s32.totalorder %s29_s0, 6  }
 0x59f   :  { %28 = sbr.rel (!%p26_p8) target bundleno = 19 (0x13), region = 179 }

// kernel: glow_forward.4
= control target key start
LH: loop header
LB: loop body
LE: loop exit
PB: predicated region body
PF: predicated region fallthrough
CT: control target
= control target key end

     0   :  { %s4229_s27 = smov 0   ;;  %s4231_s28 = smov 0   ;;  %s5415_s0 = inlined_call_operand.vmem [shape: f32[2,64,16], index: 0, kind: input, shape index: {}]   ;;  %s5416_s1 = inlined_call_operand.vmem [shape: f32[2,1,1], index: 1, kind: input, shape index: {}]   ;;  %s5417_s2 = inlined_call_operand.vmem [shape: bf16[64,2], index: 2, kind: input, shape index: {}]   ;;  %s5418_s3 = inlined_call_operand.vmem [shape: f32[2,1,16], index: 3, kind: input, shape index: {}]   ;;  %s5419_s4 = inlined_call_operand.vmem [shape: f32[2,1,16], index: 4, kind: input, shape index: {}]   ;;  %s5420_s5 = inlined_call_operand.vmem [shape: bf16[2,16,8], index: 5, kind: input, shape index: {}]   ;;  %s5421_s6 = inlined_call_operand.vmem [shape: bf16[2,16,8], index: 6, kind: input, shape index: {}]   ;;  %s5422_s7 = inlined_call_operand.vmem [shape: bf16[2,72,32], index: 7, kind: input, shape index: {}]   ;;  %s5423_s8 = inlined_call_operand.vmem [shape: f32[2,1,32], index: 8, kind: input, shape index: {}]   ;;  %s5424_s9 = inlined_call_operand.vmem [shape: bf16[2,32,32], index: 9, kind: input, shape index: {}]   ;;  %s5425_s10 = inlined_call_operand.vmem [shape: f32[2,1,32], index: 10, kind: input, shape index: {}]   ;;  %s5426_s11 = inlined_call_operand.vmem [shape: bf16[2,288,8], index: 11, kind: input, shape index: {}]   ;;  %s5427_s12 = inlined_call_operand.vmem [shape: f32[2,1,8], index: 12, kind: input, shape index: {}]   ;;  %s5428_s13 = inlined_call_operand.vmem [shape: bf16[2,288,8], index: 13, kind: input, shape index: {}]   ;;  %s5429_s14 = inlined_call_operand.vmem [shape: f32[2,1,8], index: 14, kind: input, shape index: {}]   ;;  %s5430_s15 = inlined_call_operand.vmem [shape: f32[2,1,8], index: 15, kind: input, shape index: {}]   ;;  %s5431_s16 = inlined_call_operand.vmem [shape: f32[2,1,1], index: 16, kind: input, shape index: {}]   ;;  %s5432_s17 = inlined_call_operand.vmem [shape: f32[2,64,16], index: 17, kind: output, shape index: {0}]   ;;  %s5433_s18 = inlined_call_operand.vmem [shape: f32[2,1,1], index: 18, kind: output, shape index: {1}]  }
   0x1   :  { %5457 = sst [smem:[#allocation27_spill]] %s5415_s0  ;;  %s4233_s29 = smov 0  }
   0x2   :  { %5458 = sst [smem:[#allocation28_spill]] %s5416_s1  ;;  %s4235_s30 = smov 0  }
   0x3   :  { %5459 = sst [smem:[#allocation29_spill]] %s5417_s2  ;;  %s4237_s0 = smov 0  }
   0x4   :  { %5460 = sst [smem:[#allocation30_spill]] %s5419_s4 }
   0x5   :  { %5461 = sst [smem:[#allocation31_spill]] %s5420_s5 }
   0x6   :  { %5462 = sst [smem:[#allocation32_spill]] %s5421_s6 }
   0x7   :  { %5463 = sst [smem:[#allocation33_spill]] %s5422_s7 }
   0x8   :  { %5464 = sst [smem:[#allocation34_spill]] %s5424_s9 }
   0x9   :  { %5465 = sst [smem:[#allocation35_spill]] %s5427_s12 }
   0xa   :  { %5466 = sst [smem:[#allocation36_spill]] %s5428_s13 }
   0xb   :  { %5467 = sst [smem:[#allocation37_spill]] %s5429_s14 }
   0xc   :  { %5468 = sst [smem:[#allocation38_spill]] %s5431_s16 }
   0xd   :  { %5469 = sst [smem:[#allocation39_spill]] %s5432_s17 }
   0xe   :  { %5470 = sst [smem:[#allocation40_spill]] %s5433_s18 }
   0xf LB: > { %5471 = sst [smem:[#allocation6_spill]] %s4104_s27  ;;  %s38_s19 = sadd.s32 1, %s4112_s29  ;;  %s4120_s0 = sphi %s4237_s0, %s29_s0   ;;  %s4116_s30 = sphi %s4235_s30, %s5562_s30   ;;  %s4112_s29 = sphi %s4233_s29, %s5561_s29   ;;  %s4108_s28 = sphi %s4231_s28, %s5560_s28   ;;  %s4104_s27 = sphi %s4229_s27, %s5559_s27  }
  0x10   : > { %5472 = sst [smem:[#allocation7_spill]] %s4112_s29  ;;  %s41_s1 = sadd.s32 1, %s4116_s30 }
  0x11   : > { %5473 = sst [smem:[#allocation8_spill]] %s4116_s30  ;;  %p39_p0 = scmp.ge.s32.totalorder %s38_s19, 2 }
  0x12   : > { %5474 = sst [smem:[#allocation9_spill]] %s4120_s0  ;;  %p3628_p1 = scmp.ge.s32.totalorder %s4120_s0, 1 }
  0x13   : > { %p659_p2 = scmp.lt.s32.totalorder %s4120_s0, 5  ;;  %s5564_s19 = smov (%p39_p0, %s38_s19), 0 }
  0x14   : > { %5475 = sst [smem:[#allocation10_spill]] %s5564_s19  ;;  %s5566_s1 = smov (!%p39_p0, %s41_s1), %s4116_s30 }
  0x15   : > { %p660_p3 = pnand %p3628_p1, %p659_p2  ;;  %p43_p4 = scmp.ge.s32.totalorder %s5566_s1, 2 }
  0x17   : > { %s5568_s1 = smov (%p43_p4, %s5566_s1), 0  ;;  %663 = sbr.rel (%p660_p3) target bundleno = 1490 (0x5d2), region = 88 }
  0x18   : > { %5476 = sst [smem:[#allocation11_spill]] %s5568_s1 }
  0x1e   : > { %p773_p5 = scmp.lt.s32.totalorder %s4108_s28, 1  ;;  %p781_p6 = scmp.lt.s32.totalorder %s4104_s27, 1 }
  0x1f   : > { %s5478_s1 = sld [smem:[#allocation27_spill]]  ;;  %s5480_s5 = sld [smem:[#allocation31_spill]] }
  0x20   : > { %s5570_s28 = smov (!%p773_p5, %s4108_s28), 1  ;;  %s5482_s6 = sld [smem:[#allocation32_spill]] }
  0x21   : > { %s4265_s20 = scalar_select %p781_p6, %s4104_s27, 1 }
  0x22   : > { %s3729_s21 = sshll.u32 %s5570_s28, 6  ;;  %s5483_s7 = sld [smem:[#allocation33_spill]] }
  0x23   : > { %s3730_s16 = sshll.u32 %s4265_s20, 3  ;;  %s3942_s26 = smul.u32 36, %s4265_s20 }
  0x24   : > { %s3732_s18 = sshll.u32 %s4265_s20, 4  ;;  %s5484_s9 = sld [smem:[#allocation34_spill]] }
  0x25   : > { %s4275_s19 = scalar_lea.vmem %s5478_s1, %s3729_s21  ;;  %s4289_s2 = scalar_lea.vmem %s5480_s5, %s3730_s16 }
  0x26   : > { %5481 = sst [smem:[#allocation12_spill]] %s4289_s2  ;;  %s4294_s1 = scalar_lea.vmem %s5482_s6, %s3730_s16 }
  0x27   : > { %s3943_s25 = smul.u32 144, %s4265_s20  ;;  %s5487_s23 = sld [smem:[#allocation36_spill]] }
  0x28   : > { %s4309_s22 = scalar_lea.vmem %s5483_s7, %s3942_s26  ;;  %s5488_s29 = sld [smem:[#allocation38_spill]] }
  0x29   : > { %s4332_s7 = scalar_lea.vmem %s5426_s11, %s3943_s25  ;;  %s5489_s17 = sld [smem:[#allocation39_spill]] }
  0x2a   : > { %s4314_s16 = scalar_lea.vmem %s5484_s9, %s3732_s18  ;;  %s5490_s4 = sld [smem:[#allocation40_spill]] }
  0x2b   : > { %s5491_s13 = sld [smem:[#allocation6_spill]] }
  0x2d   : > { %s4337_s9 = scalar_lea.vmem %s5487_s23, %s3943_s25 }
  0x2e   : > { %s834_s12 = scalar_lea.vmem %s5488_s29, %s4265_s20 }
  0x2f   : > { %s4346_s14 = scalar_lea.vmem %s5489_s17, %s3729_s21 }
  0x30   : > { %s4352_s26 = scalar_lea.vmem %s5490_s4, %s5570_s28 }
  0x31   : > { %p3642_p7 = scmp.ne.s32.totalorder %s5491_s13, 0 }
  0x32   : > { %v848_v0 = vld [vmem:[%s4275_s19] sm:$0xff] (!%p3642_p7)  ;;  %vm856_vm0 = vcmask (!%p3642_p7), 130048   ;;  %v849_v1 = vld [vmem:[%s4275_s19 + $0x8] sm:$0xff] (!%p3642_p7)  ;;  %v850_v2 = vld [vmem:[%s4275_s19 + $0x10] sm:$0xff] (!%p3642_p7)  ;;  %vm866_vm1 = vcmask (!%p3642_p7), 0   ;;  %s5492_s29 = sld [smem:[#allocation28_spill]] (!%p3642_p7) }
  0x33   : > { %847 = sbr.rel (%p3642_p7) target bundleno = 59 (0x3b), region = 92  ;;  %857 = vst.msk [vmem:[%s4346_s14] sm:$0xff] (!%p3642_p7), %vm856_vm0, %v848_v0  ;;  %858 = vst.msk [vmem:[%s4346_s14 + $0x8] sm:$0xff] (!%p3642_p7), %vm856_vm0, %v849_v1  ;;  %v851_v3 = vld [vmem:[%s4275_s19 + $0x18] sm:$0xff] (!%p3642_p7)  ;;  %v852_v4 = vld [vmem:[%s4275_s19 + $0x20] sm:$0xff] (!%p3642_p7) }
  0x34   : > { %859 = vst.msk [vmem:[%s4346_s14 + $0x10] sm:$0xff] (!%p3642_p7), %vm856_vm0, %v850_v2  ;;  %v853_v5 = vld [vmem:[%s4275_s19 + $0x28] sm:$0xff] (!%p3642_p7)  ;;  %860 = vst.msk [vmem:[%s4346_s14 + $0x18] sm:$0xff] (!%p3642_p7), %vm856_vm0, %v851_v3  ;;  %v854_v6 = vld [vmem:[%s4275_s19 + $0x30] sm:$0xff] (!%p3642_p7) }
  0x35   : > { %861 = vst.msk [vmem:[%s4346_s14 + $0x20] sm:$0xff] (!%p3642_p7), %vm856_vm0, %v852_v4  ;;  %862 = vst.msk [vmem:[%s4346_s14 + $0x28] sm:$0xff] (!%p3642_p7), %vm856_vm0, %v853_v5  ;;  %v855_v7 = vld [vmem:[%s4275_s19 + $0x38] sm:$0xff] (!%p3642_p7) }
  0x36   : > { %863 = vst.msk [vmem:[%s4346_s14 + $0x30] sm:$0xff] (!%p3642_p7), %vm856_vm0, %v854_v6  ;;  %864 = vst.msk [vmem:[%s4346_s14 + $0x38] sm:$0xff] (!%p3642_p7), %vm856_vm0, %v855_v7 }
  0x38   : > { %s5493_s17 = scalar_lea.vmem (!%p3642_p7), %s5492_s29, %s5570_s28 }
  0x39   : > { %v865_v8 = vld [vmem:[%s5493_s17] sm:$0x1] (!%p3642_p7) }
  0x3a   : > { %867 = vst.msk [vmem:[%s4352_s26] sm:$0x1] %vm866_vm1, %v865_v8 }
  0x3b PF: > { %v4005_v9 = vld [vmem:[%s4294_s1] sm:$0xff]   ;;  %v869_v11 = vld [vmem:[%s4346_s14 + $0x8] sm:$0xff]  ;;  %s5494_s28 = scalar_lea.vmem %s5418_s3, %s4265_s20  ;;  %vm5456_vm2 = vcmask 64512   ;;  %s5495_s23 = sld [smem:[#allocation30_spill]]  ;;  %v4122_v18 = vmov 1   ;;  %vm2020_vm3 = vcmask 261120   ;;  %v1030_v55 = vlaneseq }
  0x3c   : > { %v868_v10 = vld [vmem:[%s4346_s14] sm:$0xff]  ;;  %3851 = vmatprep.subr.bf16.mxu1 %v4005_v9  ;;  %v870_v16 = vld [vmem:[%s4346_s14 + $0x10] sm:$0xff]  ;;  %v871_v17 = vld [vmem:[%s4346_s14 + $0x18] sm:$0xff]  ;;  %3997 = vset.pattern.permute.xlu1 %v4122_v18  ;;  %vm920_vm4 = vcmask 130048   ;;  %v4123_v24 = vmov 0   ;;  %s5497_s0 = sld [smem:[#allocation29_spill]]  ;;  %s5519_s17 = scalar_lea.vmem %s5423_s8, %s4265_s20 }
  0x3d   : > { %v3643_v12 = vld [vmem:[%s5494_s28] ss:$0 sm:$0xff]  ;;  %3852 = vmatpush3.bf16.msra.mxu1 %v4005_v9  ;;  %v873_v22 = vld [vmem:[%s4346_s14 + $0x28] sm:$0xff]  ;;  %1011 = vst.msk [vmem:[#allocation2] sm:$0xff] %vm5456_vm2, %v4123_v24  ;;  %1012 = vst.msk [vmem:[#allocation2 + $0x28] sm:$0xff] %vm5456_vm2, %v4123_v24  ;;  %3996 = vset.pattern.permute.xlu0 %v4122_v18  ;;  %v1031_v59 = vshrl.u32 %v1030_v55, 7  ;;  %s5520_s4 = scalar_lea.vmem %s5425_s10, %s4265_s20 }
  0x3e   : > { %v883_v13 = vadd.f32 %v3643_v12, %v868_v10  ;;  %v884_v14 = vadd.f32 %v3643_v12, %v869_v11  ;;  %v885_v19 = vadd.f32 %v3643_v12, %v870_v16  ;;  %v886_v20 = vadd.f32 %v3643_v12, %v871_v17  ;;  %v872_v21 = vld [vmem:[%s4346_s14 + $0x20] sm:$0xff]  ;;  %v874_v23 = vld [vmem:[%s4346_s14 + $0x30] sm:$0xff]  ;;  %2110 = vst.msk [vmem:[#allocation4] sm:$0xff] %vm2020_vm3, %v4123_v24  ;;  %v875_v29 = vld [vmem:[%s4346_s14 + $0x38] sm:$0xff]  ;;  %s4125_s1 = smov 32   ;;  %s4126_s2 = smov 8  }
  0x3f   : > { %2111 = vst.msk [vmem:[#allocation4 + $0x28] sm:$0xff] %vm2020_vm3, %v4123_v24  ;;  %v887_v27 = vadd.f32 %v3643_v12, %v872_v21  ;;  %v888_v28 = vadd.f32 %v3643_v12, %v873_v22  ;;  %v889_v33 = vadd.f32 %v3643_v12, %v874_v23  ;;  %v890_v34 = vadd.f32 %v3643_v12, %v875_v29  ;;  %s4128_s30 = smov 24   ;;  %s4129_s27 = smov 16  }
  0x40   : > { %v4124_v53 = vmov 839922192   ;;  %vm1184_vm5 = vsmask.f32 4352  ;;  %vm1520_vm6 = vsmask.f32 256 }
  0x41   : > { %s5496_s6 = scalar_lea.vmem %s5495_s23, %s4265_s20  ;;  %v1028_v54 = vunpack.c.l.s4 %v4124_v53  ;;  %vm1138_vm7 = vsmask.f32 3328  ;;  %vm1498_vm8 = vsmask.f32 7424  ;;  %vm1247_vm9 = vcmask 1043456   ;;  %s4130_s13 = smov 40  }
  0x42   : > { %v3644_v15 = vld [vmem:[%s5496_s6] ss:$0 sm:$0xff]  ;;  %s5498_s24 = smov %s5497_s0  ;;  %v1000_v30 = vld [vmem:[%s5497_s0 + $0x8] sm:$0xf]  ;;  %s4127_s0 = smov 56   ;;  %vm1269_vm10 = vcmask 130112  }
  0x43   : > { %v898_v25 = vmul.f32 %v3644_v15, %v883_v13  ;;  %v899_v26 = vmul.f32 %v3644_v15, %v884_v14  ;;  %v900_v31 = vmul.f32 %v3644_v15, %v885_v19  ;;  %v901_v32 = vmul.f32 %v3644_v15, %v886_v20  ;;  %1302 = vperm.xlu1 %3997, %v1000_v30   ;;  %v998_v35 = vld [vmem:[%s5498_s24] sm:$0xf]  ;;  %v1001_v39 = vld [vmem:[%s5498_s24 + $0xc] sm:$0xf]  ;;  %v999_v41 = vld [vmem:[%s5498_s24 + $0x4] sm:$0xf] }
  0x44   : > { %v902_v37 = vmul.f32 %v3644_v15, %v887_v27  ;;  %v903_v38 = vmul.f32 %v3644_v15, %v888_v28  ;;  %1280 = vperm.xlu0 %3996, %v998_v35   ;;  %v904_v43 = vmul.f32 %v3644_v15, %v889_v33  ;;  %v905_v44 = vmul.f32 %v3644_v15, %v890_v34  ;;  %v1003_v45 = vld [vmem:[%s5498_s24 + $0x14] sm:$0xf]  ;;  %v1002_v47 = vld [vmem:[%s5498_s24 + $0x10] sm:$0xf]  ;;  %v1005_v48 = vld [vmem:[%s5498_s24 + $0x1c] sm:$0xf] }
  0x45   : > { %v4414_v36 = vpack.c.bf16 %v899_v26, %v898_v25  ;;  %v4419_v40 = vpack.c.bf16 %v901_v32, %v900_v31  ;;  %v1004_v49 = vld [vmem:[%s5498_s24 + $0x18] sm:$0xf]  ;;  %v1029_v58 = vunpack.c.0.s8 %v1028_v54  ;;  %v1274_v16 = vld [vmem:[#allocation2] sm:$0xf0]  ;;  %s4131_s21 = smov 48   ;;  %s4132_s25 = smov 64  }
  0x46   : > { %v4426_v42 = vpack.c.bf16 %v903_v38, %v902_v37  ;;  %v4435_v46 = vpack.c.bf16 %v905_v44, %v904_v43  ;;  %v4479_v53 = vld [vmem:[#allocation2] sm:$0xf0]  ;;  %vm1488_vm11 = vcmask 195712   ;;  %vm1569_vm12 = vcmask 261312   ;;  %s4133_s28 = smov 96   ;;  %s5534_s18 = sld [smem:[#allocation35_spill]] }
  0x47   : > { %5499 = vst [vmem:[#allocation13_spill] sm:$0xff] %v4414_v36  ;;  %5500 = vst [vmem:[#allocation14_spill] sm:$0xff] %v4419_v40  ;;  %3853 = vmatprep.mubr.msk.bf16.mxu1 %vm920_vm4, %v4414_v36  ;;  %1313 = vperm.xlu1 %3997, %v1001_v39   ;;  %v4448_v61 = vsub.s32 %v1029_v58, %v1031_v59  ;;  %v1493_v59 = vld [vmem:[#allocation2] sm:$0x80]  ;;  %vm1594_vm13 = vcmask 326912   ;;  %vm1673_vm14 = vcmask 392512  }
  0x48   : > { %5501 = vst [vmem:[#allocation15_spill] sm:$0xff] %v4426_v42  ;;  %3854 = vmatmul.mubr.msk.bf16.vlgmr.msra.gmra.mrb[0].mxu1 %vm920_vm4, %v4419_v40  ;;  %1291 = vperm.xlu0 %3996, %v999_v41   ;;  %5502 = vst [vmem:[#allocation16_spill] sm:$0xff] %v4435_v46  ;;  %vm1744_vm15 = vcmask 458112   ;;  %vm1780_vm0 = vcmask 523712   ;;  %vm1851_vm1 = vcmask 589312  }
  0x49   : > { %3857 = vmatprep.mubr.msk.bf16.mxu1 %vm920_vm4, %v4426_v42 }
  0x4b   : > { %3998 = vset.pattern.permute.xlu1 %v4123_v24 }
  0x4c   : > { %1036 = vperm.xlu1 %3998, %v999_v41   ;;  %1335 = vperm.xlu0 %3996, %v1003_v45   ;;  %s5535_s23 = scalar_lea.vmem %s5534_s18, %s4265_s20 }
  0x50   : > { %3858 = vmatmul.mubr.msk.bf16.gmra.mrb[4].mxu1 %vm920_vm4, %v4435_v46  ;;  %3999 = vset.pattern.permute.xlu1 %v4122_v18 }
  0x51   : > { %4000 = vset.pattern.permute.xlu0 %v4123_v24  ;;  %1324 = vperm.xlu1 %3999, %v1002_v47  }
  0x52   : > { %1024 = vperm.xlu0 %4000, %v998_v35  }
  0x55   : > { %4001 = vset.pattern.permute.xlu1 %v4123_v24 }
  0x56   : > { %1072 = vperm.xlu0 %4000, %v1002_v47   ;;  %1048 = vperm.xlu1 %4001, %v1000_v30  }
  0x5a   : > { %4003 = vset.pattern.permute.xlu0 %v4122_v18  ;;  %1060 = vperm.xlu1 %4001, %v1001_v39  }
  0x5b   : > { %1357 = vperm.xlu0 %4003, %v1005_v48  }
  0x5e   : > { %1084 = vperm.xlu1 %4001, %v1003_v45  }
  0x62   : > { %4002 = vset.pattern.permute.xlu1 %v4122_v18 }
  0x63   : > { %1346 = vperm.xlu1 %4002, %v1004_v49  }
  0x67   : > { %4004 = vset.pattern.permute.xlu1 %v4123_v24 }
  0x68   : > { %1096 = vperm.xlu1 %4004, %v1004_v49  }
  0x6c   : > { %1108 = vperm.xlu1 %4004, %v1005_v48  }
  0xc2   : > { %v1303_v50 = vpop.permute.xlu1 %1302 }
  0xc3   : > { %v1281_v57 = vpop.permute.xlu0 %1280  ;;  %v1311_v4 = vrot.slane %v1303_v50, %v4448_v61 }
  0xc4   : > { %v1289_v63 = vrot.slane %v1281_v57, %v4448_v61 }
  0xc6   : > { %v1314_v51 = vpop.permute.xlu1 %1313 }
  0xc7   : > { %v1292_v62 = vpop.permute.xlu0 %1291  ;;  %v1322_v5 = vrot.slane %v1314_v51, %v4448_v61 }
  0xc8   : > { %v1300_v0 = vrot.slane %v1292_v62, %v4448_v61 }
  0xc9   : > { %v3655_v10 = vcombine.low %v1311_v4, %v1322_v5 }
  0xca   : > { %v3654_v2 = vcombine.low %v1289_v63, %v1300_v0 }
  0xcb   : > { %v1037_v52 = vpop.permute.xlu1 %1036  ;;  %v1336_v3 = vpop.permute.xlu0 %1335  ;;  %v1396_v17 = vshrl.u32 %v3655_v10, 16  ;;  %v1399_v19 = vshll.u32 %v3655_v10, 16 }
  0xcc   : > { %v1388_v6 = vshrl.u32 %v3654_v2, 16  ;;  %v1391_v7 = vshll.u32 %v3654_v2, 16  ;;  %v1045_v13 = vrot.slane %v1037_v52, %v4448_v61  ;;  %v1344_v21 = vrot.slane %v1336_v3, %v4448_v61 }
  0xcd   : > { %v1398_v27 = vrot.slane %v1396_v17, 3  ;;  %v1401_v30 = vrot.slane %v1399_v19, 4  ;;  %v4468_v31 = vrot.slane %v1396_v17, 7 }
  0xce   : > { %v1390_v11 = vrot.slane %v1388_v6, 3  ;;  %v1393_v12 = vrot.slane %v1391_v7, 4  ;;  %v1604_v39 = vrot.slane %v1388_v6, 7  ;;  %v1248_v6 = vrot.slane %v4479_v53, 4 }
  0xcf   : > { %v4473_v45 = vor.u32 %v1401_v30, %v1398_v27  ;;  %v1607_v47 = vor.u32 %v4468_v31, %v1399_v19 }
  0xd0   : > { %v1325_v56 = vpop.permute.xlu1 %1324  ;;  %v4458_v18 = vor.u32 %v1393_v12, %v1390_v11  ;;  %v4493_v2 = vor.u32 %v1604_v39, %v1391_v7 }
  0xd1   : > { %v1025_v9 = vpop.permute.xlu0 %1024  ;;  %v1333_v20 = vrot.slane %v1325_v56, %v4448_v61  ;;  %v4504_v11 = vsel %vm1520_vm6, %v1604_v39, %v1607_v47 }
  0xd2   : > { %v1033_v14 = vrot.slane %v1025_v9, %v4448_v61  ;;  %v1427_v25 = vmul.bf16 %v4458_v18, %v1274_v16 }
  0xd3   : > { %v3656_v32 = vcombine.low %v1333_v20, %v1344_v21 }
  0xd4   : > { %v4462_v22 = vcombine.low %v1033_v14, %v1045_v13  ;;  %v1433_v34 = vshrl.u32 %v1427_v25, 16  ;;  %v1436_v44 = vshll.u32 %v1427_v25, 16  ;;  %v4515_v14 = vsel %vm1184_vm5, %v4458_v18, %v4473_v45 }
  0xd5   : > { %v1049_v60 = vpop.permute.xlu1 %1048  ;;  %v1073_v23 = vpop.permute.xlu0 %1072  ;;  %v1405_v48 = vshrl.u32 %v3656_v32, 16  ;;  %v1408_v49 = vshll.u32 %v3656_v32, 16 }
  0xd6   : > { %v1140_v26 = vshrl.u32 %v4462_v22, 16  ;;  %v1057_v28 = vrot.slane %v1049_v60, %v4448_v61  ;;  %v1143_v33 = vshll.u32 %v4462_v22, 16  ;;  %v1081_v50 = vrot.slane %v1073_v23, %v4448_v61 }
  0xd7   : > { %v4481_v54 = vrot.slane %v1433_v34, 4  ;;  %v4491_v0 = vrot.slane %v1436_v44, 5  ;;  %v1407_v3 = vrot.slane %v1405_v48, 3  ;;  %v1410_v4 = vrot.slane %v1408_v49, 4 }
  0xd8   : > { %v1142_v35 = vrot.slane %v1140_v26, 4  ;;  %v1145_v37 = vrot.slane %v1143_v33, 5  ;;  %v4489_v63 = vrot.slane %v1143_v33, 1 }
  0xd9   : > { %v1061_v1 = vpop.permute.xlu1 %1060  ;;  %v4524_v23 = vor.u32 %v1410_v4, %v1407_v3  ;;  %v5517_v40 = vor.u32 %v4491_v0, %v4481_v54 }
  0xda   : > { %v1069_v29 = vrot.slane %v1061_v1, %v4448_v61  ;;  %v1358_v38 = vpop.permute.xlu0 %1357  ;;  %v4483_v55 = vor.u32 %v1145_v37, %v1142_v35  ;;  %v1017_v1 = vld [vmem:[#allocation2] sm:$0xf8]  ;;  %v1515_v10 = vmul.bf16 %v4489_v63, %v1493_v59 }
  0xdb   : > { %v1366_v52 = vrot.slane %v1358_v38, %v4448_v61 }
  0xdc   : > { %v3651_v41 = vcombine.low %v1057_v28, %v1069_v29  ;;  %v4531_v32 = vshrl.u32 %v1515_v10, 16 }
  0xdd   : > { %v4454_v8 = vpop.permute.xlu1 %1084 }
  0xde   : > { %v1093_v56 = vrot.slane %v4454_v8, %v4448_v61  ;;  %v1148_v60 = vshrl.u32 %v3651_v41, 16  ;;  %v1151_v62 = vshll.u32 %v3651_v41, 16  ;;  %v4498_v8 = vrot.slane %v1405_v48, 7 }
  0xdf   : > { %v1500_v41 = vor.u32 %v4489_v63, %v1140_v26 }
  0xe0   : > { %v4506_v7 = vcombine.low %v1081_v50, %v1093_v56  ;;  %v1150_v16 = vrot.slane %v1148_v60, 4  ;;  %v1153_v17 = vrot.slane %v1151_v62, 5  ;;  %v1610_v28 = vor.u32 %v4498_v8, %v1408_v49 }
  0xe1   : > { %v1501_v29 = vrot.slane %v1151_v62, 1 }
  0xe2   : > { %v1347_v15 = vpop.permute.xlu1 %1346  ;;  %v1160_v33 = vshll.u32 %v4506_v7, 16  ;;  %v4537_v38 = vor.u32 %v1153_v17, %v1150_v16  ;;  %v4558_v26 = vsel %vm1520_vm6, %v4468_v31, %v1610_v28 }
  0xe3   : > { %v1355_v51 = vrot.slane %v1347_v15, %v4448_v61  ;;  %v1179_v15 = vmul.bf16 %v4483_v55, %v1017_v1  ;;  %v1503_v39 = vor.u32 %v1501_v29, %v1148_v60  ;;  %v4573_v3 = vsel %vm1498_vm8, %v1500_v41, %v1501_v29 }
  0xe4   : > { %v1162_v47 = vrot.slane %v1160_v33, 5  ;;  %v4578_v31 = vsel %vm1138_vm7, %v4483_v55, %v4537_v38 }
  0xe5   : > { %v1186_v37 = vshrl.u32 %v1179_v15, 16 }
  0xe7   : > { %v1097_v24 = vpop.permute.xlu1 %1096 }
  0xe8   : > { %v1105_v57 = vrot.slane %v1097_v24, %v4448_v61  ;;  %v5441_v24 = vshrl.u32 %v4506_v7, 16 }
  0xea   : > { %v1159_v44 = vrot.slane %v5441_v24, 4 }
  0xeb   : > { %v1109_v43 = vpop.permute.xlu1 %1108 }
  0xec   : > { %v1117_v58 = vrot.slane %v1109_v43, %v4448_v61  ;;  %v3657_v61 = vcombine.low %v1355_v51, %v1366_v52  ;;  %v1189_v43 = vshll.u32 %v1179_v15, 16  ;;  %v4549_v51 = vsel %vm1184_vm5, %v4473_v45, %v4524_v23 }
  0xed   : > { %v4566_v45 = vrot.slane %v1186_v37, 3  ;;  %v1682_v37 = vld [vmem:[#allocation2 + $0x28] sm:$0xf] }
  0xee   : > { %v4508_v12 = vcombine.low %v1105_v57, %v1117_v58  ;;  %v1417_v25 = vshll.u32 %v3657_v61, 16  ;;  %v1414_v30 = vshrl.u32 %v3657_v61, 16  ;;  %v1504_v57 = vrot.slane %v1160_v33, 1 }
  0xef   : > { %v4580_v4 = vrot.slane %v1189_v43, 4  ;;  %v4582_v61 = vor.u32 %v1162_v47, %v1159_v44 }
  0xf0   : > { %v5439_v34 = vshrl.u32 %v4508_v12, 16  ;;  %v5440_v35 = vshll.u32 %v4508_v12, 16  ;;  %v1416_v48 = vrot.slane %v1414_v30, 3  ;;  %v1419_v49 = vrot.slane %v1417_v25, 4 }
  0xf1   : > { %v4551_v52 = vrot.slane %v1414_v30, 7  ;;  %v4585_v10 = vsel %vm1498_vm8, %v1503_v39, %v1504_v57 }
  0xf2   : > { %v1168_v58 = vrot.slane %v5439_v34, 4  ;;  %v1171_v59 = vrot.slane %v5440_v35, 5  ;;  %v4587_v15 = vor.u32 %v1419_v49, %v1416_v48 }
  0xf4   : > { %v4606_v39 = vor.u32 %v1171_v59, %v1168_v58 }
  0xf6   : > { %v4623_v21 = vmul.bf16 %v1682_v37, %v4606_v39 }
 0x11b   : > { %v4495_v5 = vpop.f32.mrb[0].mxu1 }
 0x11c   : > { %5503 = vst [vmem:[#allocation17_spill] sm:$0xff] %v4495_v5  ;;  %v4500_v9 = vpop.f32.mrb[1].mxu1 }
 0x11d   : > { %5504 = vst [vmem:[#allocation18_spill] sm:$0xff] %v4500_v9  ;;  %v4510_v13 = vpop.f32.mrb[2].mxu1 }
 0x11e   : > { %5505 = vst [vmem:[#allocation19_spill] sm:$0xff] %v4510_v13  ;;  %v1007_v19 = vpack.c.bf16 %v4510_v13, %v4495_v5  ;;  %v4520_v20 = vpop.f32.mrb[3].mxu1 }
 0x11f   : > { %5506 = vst [vmem:[#allocation20_spill] sm:$0xff] %v4520_v20  ;;  %v1006_v27 = vpack.c.bf16 %v4520_v20, %v4500_v9  ;;  %v4006_v9 = vld [vmem:[%s4309_s22] sm:$0xff]  }
 0x120   : > { %1014 = vst.msk [vmem:[#allocation2 + $0x10] sm:$0xff] %vm5456_vm2, %v1007_v19  ;;  %v1603_v19 = vld [vmem:[#allocation2 + $0x28] sm:$0x1]  ;;  %3861 = vmatprep.subr.bf16.mxu1 %v4006_v9 }
 0x121   : > { %1013 = vst.msk [vmem:[#allocation2 + $0x8] sm:$0xff] %vm5456_vm2, %v1006_v27  ;;  %v1613_v27 = vor.u32 %v4551_v52, %v1417_v25  ;;  %v1624_v58 = vmul.bf16 %v4551_v52, %v1603_v19  ;;  %3862 = vmatpush3.bf16.msra.mxu1 %v4006_v9 }
 0x123   : > { %v4544_v50 = vpop.f32.mrb[4].mxu1 }
 0x124   : > { %5507 = vst [vmem:[#allocation21_spill] sm:$0xff] %v4544_v50  ;;  %v4553_v56 = vpop.f32.mrb[5].mxu1 }
 0x125   : > { %5508 = vst [vmem:[#allocation22_spill] sm:$0xff] %v4553_v56  ;;  %v4564_v60 = vpop.f32.mrb[6].mxu1 }
 0x126   : > { %5509 = vst [vmem:[#allocation23_spill] sm:$0xff] %v4564_v60  ;;  %v1009_v62 = vpack.c.bf16 %v4564_v60, %v4544_v50  ;;  %v4570_v1 = vpop.f32.mrb[7].mxu1 }
 0x127   : > { %5510 = vst [vmem:[#allocation24_spill] sm:$0xff] %v4570_v1  ;;  %v1008_v16 = vpack.c.bf16 %v4570_v1, %v4553_v56  ;;  %v4591_v17 = vld [vmem:[#allocation2 + $0x10] sm:$0xff] }
 0x128   : > { %1016 = vst.msk [vmem:[#allocation2 + $0x20] sm:$0xff] %vm5456_vm2, %v1009_v62  ;;  %1584 = vrot.lane.b32.xlu1 %v4591_v17, %s4125_s1  ;;  %v4597_v28 = vld [vmem:[#allocation2 + $0x8] sm:$0xff]  ;;  %v4600_v29 = vrot.slane %v4591_v17, 4  ;;  %v1517_v30 = vmul.bf16 %v4591_v17, %v4585_v10  ;;  %v1429_v33 = vmul.bf16 %v4591_v17, %v4549_v51 }
 0x129   : > { %1015 = vst.msk [vmem:[#allocation2 + $0x18] sm:$0xff] %vm5456_vm2, %v1008_v16  ;;  %1582 = vrot.lane.b32.xlu0 %v4597_v28, %s4125_s1  ;;  %v1249_v25 = vrot.slane %v4597_v28, 4  ;;  %v1749_v41 = vld [vmem:[#allocation2 + $0x8] sm:$0xf0]  ;;  %v1516_v43 = vmul.bf16 %v4597_v28, %v4573_v3  ;;  %v1428_v44 = vmul.bf16 %v4597_v28, %v4515_v14  ;;  %v1620_v53 = vmul.bf16 %v4493_v2, %v4597_v28 }
 0x12a   : > { %v1534_v47 = vshrl.u32 %v1517_v30, 16  ;;  %v1450_v48 = vshrl.u32 %v1429_v33, 16  ;;  %v1453_v49 = vshll.u32 %v1429_v33, 16  ;;  %v1759_v22 = vrot.slane %v1749_v41, 4 }
 0x12b   : > { %v1252_v59 = vsel %vm1247_vm9, %v1249_v25, %v4600_v29  ;;  %v1250_v62 = vsel %vm1247_vm9, %v1248_v6, %v1249_v25  ;;  %v1526_v16 = vshrl.u32 %v1516_v43, 16  ;;  %v1441_v33 = vshrl.u32 %v1428_v44, 16 }
 0x12c   : > { %1259 = vrot.lane.b32.xlu1 %v1252_v59, %s4126_s2  ;;  %v4626_v34 = vrot.slane %v1534_v47, 7  ;;  %v1444_v35 = vshll.u32 %v1428_v44, 16  ;;  %v1537_v19 = vshll.u32 %v1517_v30, 16  ;;  %v1452_v24 = vrot.slane %v1450_v48, 4 }
 0x12d   : > { %1257 = vrot.lane.b32.xlu0 %v1250_v62, %s4126_s2  ;;  %v4633_v6 = vmul.bf16 %v4504_v11, %v4591_v17  ;;  %v1528_v37 = vrot.slane %v1526_v16, 7  ;;  %v1443_v25 = vrot.slane %v1441_v33, 4  ;;  %v1455_v59 = vrot.slane %v1453_v49, 5 }
 0x12e   : > { %v1446_v50 = vrot.slane %v1444_v35, 5  ;;  %v4638_v41 = vsel %vm1138_vm7, %v4537_v38, %v4582_v61  ;;  %v5511_v44 = vshrl.u32 %v4506_v7, 16  ;;  %v5512_v47 = vshll.u32 %v4508_v12, 16  ;;  %v1678_v7 = vld [vmem:[#allocation2 + $0x8] sm:$0xf8] }
 0x12f   : > { %v4644_v62 = vld [vmem:[#allocation2 + $0x20] sm:$0xff]  ;;  %v1539_v60 = vor.u32 %v1537_v19, %v4626_v34  ;;  %v4649_v16 = vsel %vm1520_vm6, %v4498_v8, %v1613_v27  ;;  %v1761_v35 = vsel %vm1247_vm9, %v1759_v22, %v4600_v29  ;;  %v1529_v38 = vshll.u32 %v1516_v43, 16 }
 0x130   : > { %v1506_v30 = vor.u32 %v1504_v57, %v5511_v44  ;;  %v1507_v48 = vrot.slane %v5512_v47, 1  ;;  %1588 = vrot.lane.b32.xlu1 %v4644_v62, %s4125_s1  ;;  %v1724_v57 = vshrl.u32 %v4623_v21, 16  ;;  %v5513_v49 = vshrl.u32 %v4508_v12, 16  ;;  %v4661_v19 = vld [vmem:[#allocation2 + $0x18] sm:$0xff]  ;;  %v1241_v12 = vld [vmem:[#allocation2 + $0x20] sm:$0xf] }
 0x131   : > { %1768 = vrot.lane.b32.xlu0 %v1761_v35, %s4127_s0  ;;  %v1628_v8 = vshll.u32 %v1620_v53, 16  ;;  %v4663_v27 = vshll.u32 %v1624_v58, 16  ;;  %v4668_v22 = vsel %vm1184_vm5, %v4524_v23, %v4587_v15  ;;  %v1447_v43 = vor.u32 %v1446_v50, %v1443_v25 }
 0x132   : > { %v4658_v33 = vor.u32 %v1507_v48, %v5513_v49  ;;  %v4670_v44 = vor.u32 %v1455_v59, %v1452_v24  ;;  %v1531_v47 = vor.u32 %v1529_v38, %v1528_v37  ;;  %v1633_v49 = vshll.u32 %v4633_v6, 16 }
 0x133   : > { %v1540_v46 = vsel %vm1520_vm6, %v1528_v37, %v1539_v60  ;;  %v1683_v35 = vmul.bf16 %v1678_v7, %v4483_v55  ;;  %v4676_v42 = vsel %vm1498_vm8, %v1506_v30, %v1507_v48  ;;  %v4681_v58 = vsel %vm1138_vm7, %v4582_v61, %v4606_v39 }
 0x134   : > { %5514 = vst [vmem:[#allocation25_spill] sm:$0xff] %v4658_v33  ;;  %5515 = vst [vmem:[#allocation26_spill] sm:$0xff] %v4676_v42  ;;  %1559 = vrot.lane.b32.xlu1 %v1540_v46, %s4128_s30  ;;  %v4685_v23 = vrot.slane %v4661_v19, 4  ;;  %v1684_v24 = vmul.bf16 %v4591_v17, %v4578_v31  ;;  %v4689_v50 = vrot.slane %v1724_v57, 3  ;;  %v1255_v37 = vrot.slane %v1241_v12, 4 }
 0x135   : > { %1586 = vrot.lane.b32.xlu0 %v4661_v19, %s4125_s1  ;;  %v1626_v25 = vshrl.u32 %v1620_v53, 16  ;;  %v1630_v61 = vrot.slane %v1628_v8, 1  ;;  %v4696_v59 = vmul.bf16 %v4558_v26, %v4661_v19  ;;  %v1785_v46 = vld [vmem:[#allocation2 + $0x8] sm:$0xf0]  ;;  %v1457_v30 = vsel %vm1138_vm7, %v1447_v43, %v4670_v44 }
 0x136   : > { %v5516_v48 = vrot.slane %v4531_v32, 7  ;;  %v1635_v7 = vrot.slane %v1633_v49, 1  ;;  %v1519_v57 = vmul.bf16 %v4644_v62, %v4658_v33  ;;  %v1689_v60 = vshrl.u32 %v1683_v35, 16 }
 0x137   : > { %v1692_v12 = vshll.u32 %v1683_v35, 16  ;;  %v1697_v53 = vshrl.u32 %v1684_v24, 16  ;;  %v1700_v8 = vshll.u32 %v1684_v24, 16  ;;  %v1448_v36 = vsel %vm1138_vm7, %v5517_v40, %v1447_v43 }
 0x138   : > { %v1532_v38 = vsel %vm1520_vm6, %v5516_v48, %v1531_v47  ;;  %1478 = vrot.lane.b32.xlu1 %v1457_v30, %s4129_s27  ;;  %v4713_v32 = vsel %vm1247_vm9, %v4600_v29, %v4685_v23  ;;  %v1637_v47 = vshrl.u32 %v4633_v6, 16  ;;  %v1790_v49 = vmul.bf16 %v1785_v46, %v4458_v18 }
 0x139   : > { %1476 = vrot.lane.b32.xlu0 %v1448_v36, %s4129_s27  ;;  %v1631_v35 = vor.u32 %v1630_v61, %v1626_v25  ;;  %v1641_v24 = vshll.u32 %v4696_v59, 16  ;;  %v1791_v30 = vmul.bf16 %v4591_v17, %v4515_v14  ;;  %v1623_v40 = vmul.bf16 %v4649_v16, %v4644_v62 }
 0x13a   : > { %v1256_v54 = vsel %vm1247_vm9, %v4685_v23, %v1255_v37  ;;  %v4727_v0 = vmul.bf16 %v4661_v19, %v4676_v42  ;;  %v1550_v29 = vshrl.u32 %v1519_v57, 16  ;;  %v1686_v36 = vmul.bf16 %v4644_v62, %v4681_v58 }
 0x13b   : > { %v1691_v6 = vrot.slane %v1689_v60, 3  ;;  %v1694_v43 = vrot.slane %v1692_v12, 4  ;;  %v1699_v25 = vrot.slane %v1697_v53, 3  ;;  %v1702_v61 = vrot.slane %v1700_v8, 4 }
 0x13c   : > { %1770 = vrot.lane.b32.xlu1 %v4713_v32, %s4127_s0  ;;  %v1796_v46 = vshrl.u32 %v1790_v49, 16  ;;  %v1799_v48 = vshll.u32 %v1790_v49, 16  ;;  %v1804_v1 = vshrl.u32 %v1791_v30, 16  ;;  %v1807_v37 = vshll.u32 %v1791_v30, 16 }
 0x13d   : > { %1557 = vrot.lane.b32.xlu0 %v1532_v38, %s4128_s30  ;;  %v1636_v13 = vsel %vm1498_vm8, %v1631_v35, %v1635_v7  ;;  %v1639_v56 = vor.u32 %v1637_v47, %v1635_v7  ;;  %v4735_v5 = vrot.slane %v1641_v24, 1  ;;  %v1649_v20 = vshll.u32 %v1623_v40, 16 }
 0x13e   : > { %v1542_v60 = vshrl.u32 %v4727_v0, 16  ;;  %v1552_v12 = vrot.slane %v1550_v29, 7  ;;  %v1715_v53 = vshrl.u32 %v1686_v36, 16  ;;  %v1718_v8 = vshll.u32 %v1686_v36, 16 }
 0x13f   : > { %v1695_v33 = vor.u32 %v1694_v43, %v1691_v6  ;;  %v4739_v42 = vor.u32 %v1702_v61, %v1699_v25  ;;  %v1553_v49 = vshll.u32 %v1519_v57, 16  ;;  %v1685_v30 = vmul.bf16 %v4661_v19, %v4638_v41  ;;  %v4007_v61 = vld [vmem:[%s4309_s22 + $0x8] sm:$0xff]  }
 0x140   : > { %1263 = vrot.lane.b32.xlu1 %v1256_v54, %s4126_s2  ;;  %v1798_v38 = vrot.slane %v1796_v46, 4  ;;  %v1801_v7 = vrot.slane %v1799_v48, 5  ;;  %v1806_v47 = vrot.slane %v1804_v1, 4  ;;  %v1809_v35 = vrot.slane %v1807_v37, 5  ;;  %3863 = vmatprep.subr.bf16.mxu1 %v4007_v61 }
 0x141   : > { %1661 = vrot.lane.b32.xlu0 %v1636_v13, %s4130_s13  ;;  %v4745_v24 = vrot.slane %v1649_v20, 1  ;;  %v1717_v29 = vrot.slane %v1715_v53, 3  ;;  %v1720_v36 = vrot.slane %v1718_v8, 4  ;;  %v5518_v57 = vshll.u32 %v4623_v21, 16  ;;  %v1789_v8 = vld [vmem:[#allocation2 + $0x28] sm:$0x1f]  ;;  %3864 = vmatpush3.bf16.msra.mxu1 %v4007_v61 }
 0x142   : > { %v1644_v54 = vsel %vm1498_vm8, %v1639_v56, %v4735_v5  ;;  %v4751_v43 = vrot.slane %v1542_v60, 7  ;;  %v1555_v25 = vor.u32 %v1553_v49, %v1552_v12  ;;  %v1430_v1 = vmul.bf16 %v4661_v19, %v4668_v22 }
 0x143   : > { %v1729_v6 = vrot.slane %v5518_v57, 4  ;;  %v1653_v46 = vshrl.u32 %v1623_v40, 16  ;;  %v1706_v13 = vshrl.u32 %v1685_v30, 16  ;;  %v1709_v20 = vshll.u32 %v1685_v30, 16  ;;  %v4008_v57 = vld [vmem:[%s4309_s22 + $0x10] sm:$0xff]  }
 0x144   : > { %v1792_v48 = vmul.bf16 %v4661_v19, %v4549_v51  ;;  %1663 = vrot.lane.b32.xlu1 %v1644_v54, %s4130_s13  ;;  %v1704_v9 = vsel %vm1184_vm5, %v1695_v33, %v4739_v42  ;;  %v1802_v21 = vor.u32 %v1801_v7, %v1798_v38  ;;  %v4761_v56 = vor.u32 %v1809_v35, %v1806_v47  ;;  %v1278_v35 = vld [vmem:[#allocation2 + $0x20] sm:$0x1f] }
 0x145   : > { %v1659_v37 = vrot.slane %v4663_v27, 1  ;;  %1732 = vrot.lane.b32.xlu0 %v1704_v9, %s4131_s21  ;;  %v1655_v40 = vor.u32 %v1653_v46, %v4745_v24  ;;  %v4766_v60 = vor.u32 %v1720_v36, %v1717_v29  ;;  %v1730_v12 = vor.u32 %v1729_v6, %v4689_v50  ;;  %v1021_v36 = vld [vmem:[#allocation2 + $0x20] sm:$0xf]  ;;  %3865 = vmatprep.subr.bf16.mxu1 %v4008_v57 }
 0x146   : > { %v1764_v53 = vrot.slane %v4644_v62, 4  ;;  %v1459_v33 = vshrl.u32 %v1430_v1, 16  ;;  %v1462_v49 = vshll.u32 %v1430_v1, 16  ;;  %v1556_v27 = vsel %vm1520_vm6, %v4751_v43, %v1555_v25  ;;  %3866 = vmatpush3.bf16.msra.mxu1 %v4008_v57 }
 0x147   : > { %v1708_v30 = vrot.slane %v1706_v13, 3  ;;  %v1711_v38 = vrot.slane %v1709_v20, 4  ;;  %v1813_v7 = vshrl.u32 %v1792_v48, 16  ;;  %v1811_v47 = vsel %vm1138_vm7, %v1802_v21, %v4761_v56 }
 0x148   : > { %1563 = vrot.lane.b32.xlu1 %v1556_v27, %s4128_s30  ;;  %v4776_v50 = vmul.bf16 %v1789_v8, %v4587_v15  ;;  %v1192_v29 = vor.u32 %v4580_v4, %v4566_v45  ;;  %v1660_v6 = vsel %vm1498_vm8, %v1655_v40, %v1659_v37  ;;  %v1731_v54 = vsel %vm1184_vm5, %v4766_v60, %v1730_v12  ;;  %v4009_v37 = vld [vmem:[%s4309_s22 + $0x18] sm:$0xff]  }
 0x149   : > { %1839 = vrot.lane.b32.xlu0 %v1811_v47, %s4132_s25  ;;  %v1765_v25 = vsel %vm1247_vm9, %v4685_v23, %v1764_v53  ;;  %v1816_v1 = vshll.u32 %v1792_v48, 16  ;;  %v1461_v61 = vrot.slane %v1459_v33, 4  ;;  %v1464_v46 = vrot.slane %v1462_v49, 5  ;;  %3867 = vmatprep.subr.bf16.mxu1 %v4009_v37 }
 0x14a   : > { %v1181_v45 = vmul.bf16 %v4591_v17, %v4638_v41  ;;  %v1180_v4 = vmul.bf16 %v4597_v28, %v4578_v31  ;;  %v4793_v13 = vor.u32 %v1711_v38, %v1708_v30  ;;  %v1815_v20 = vrot.slane %v1813_v7, 4  ;;  %3868 = vmatpush3.bf16.msra.mxu1 %v4009_v37  ;;  %v4010_v37 = vld [vmem:[%s4309_s22 + $0x20] ss:$0 sps:$4 sm:$0xff]  }
 0x14b   : > { %v1431_v9 = vmul.bf16 %v4587_v15, %v1278_v35  ;;  %v1183_v21 = vmul.bf16 %v4606_v39, %v1021_v36  ;;  %v1182_v17 = vmul.bf16 %v4661_v19, %v4681_v58  ;;  %v1818_v28 = vrot.slane %v1816_v1, 5  ;;  %3941 = vmatprep.subr.msk.bf16.mxu1 %vm1247_vm9, %v4010_v37 }
 0x14c   : > { %1667 = vrot.lane.b32.xlu1 %v1660_v6, %s4130_s13  ;;  %v1203_v23 = vshrl.u32 %v1181_v45, 16  ;;  %v1206_v48 = vshll.u32 %v1181_v45, 16  ;;  %v1194_v40 = vshrl.u32 %v1180_v4, 16  ;;  %v1197_v12 = vshll.u32 %v1180_v4, 16 }
 0x14d   : > { %1261 = vrot.lane.b32.xlu0 %v4713_v32, %s4126_s2  ;;  %v1221_v8 = vshrl.u32 %v1183_v21, 16  ;;  %v1224_v33 = vshll.u32 %v1183_v21, 16  ;;  %v1465_v49 = vor.u32 %v1464_v46, %v1461_v61  ;;  %v1468_v7 = vshrl.u32 %v1431_v9, 16 }
 0x14e   : > { %v1205_v27 = vrot.slane %v1203_v23, 3  ;;  %v1208_v30 = vrot.slane %v1206_v48, 4  ;;  %v1196_v38 = vrot.slane %v1194_v40, 3  ;;  %v1471_v47 = vshll.u32 %v1431_v9, 16 }
 0x14f   : > { %v1199_v35 = vrot.slane %v1197_v12, 4  ;;  %v1223_v36 = vrot.slane %v1221_v8, 3  ;;  %v1226_v57 = vrot.slane %v1224_v33, 4  ;;  %v1212_v32 = vshrl.u32 %v1182_v17, 16 }
 0x150   : > { %1738 = vrot.lane.b32.xlu1 %v1731_v54, %s4131_s21  ;;  %v1209_v19 = vor.u32 %v1208_v30, %v1205_v27  ;;  %v1215_v6 = vshll.u32 %v1182_v17, 16  ;;  %v1713_v1 = vsel %vm1184_vm5, %v4739_v42, %v4793_v13  ;;  %v1545_v61 = vshll.u32 %v4727_v0, 16  ;;  %v1753_v27 = vld [vmem:[#allocation2 + $0x28] sm:$0xf] }
 0x151   : > { %1772 = vrot.lane.b32.xlu0 %v1765_v25, %s4127_s0  ;;  %v1793_v46 = vmul.bf16 %v4644_v62, %v4668_v22  ;;  %v1200_v45 = vor.u32 %v1199_v35, %v1196_v38  ;;  %v1819_v4 = vor.u32 %v1818_v28, %v1815_v20  ;;  %v1227_v9 = vor.u32 %v1226_v57, %v1223_v36 }
 0x152   : > { %v1214_v21 = vrot.slane %v1212_v32, 3  ;;  %v1217_v54 = vrot.slane %v1215_v6, 4  ;;  %v1470_v23 = vrot.slane %v1468_v7, 4  ;;  %v1473_v48 = vrot.slane %v1471_v47, 5 }
 0x153   : > { %v1210_v40 = vsel %vm1184_vm5, %v1200_v45, %v1209_v19  ;;  %v1201_v25 = vsel %vm1184_vm5, %v1192_v29, %v1200_v45  ;;  %v1466_v42 = vsel %vm1138_vm7, %v4670_v44, %v1465_v49  ;;  %v1547_v0 = vor.u32 %v1545_v61, %v4751_v43 }
 0x154   : > { %1734 = vrot.lane.b32.xlu1 %v1713_v1, %s4131_s21  ;;  %1234 = vst.msk [vmem:[#allocation3 + $0x8] sm:$0xff] %vm5456_vm2, %v1210_v40  ;;  %1233 = vst.msk [vmem:[#allocation3] sm:$0xff] %vm5456_vm2, %v1201_v25  ;;  %v1218_v20 = vor.u32 %v1217_v54, %v1214_v21  ;;  %v1918_v17 = vsel %vm1247_vm9, %v4010_v37, 0  ;;  %v1831_v29 = vshrl.u32 %v4776_v50, 16  ;;  %v1645_v28 = vshrl.u32 %v4696_v59, 16 }
 0x155   : > { %1480 = vrot.lane.b32.xlu0 %v1466_v42, %s4129_s27  ;;  %3870 = vmatpush3.bf16.msra.mxu1 %v1918_v17  ;;  %v1834_v44 = vshll.u32 %v4776_v50, 16  ;;  %v1820_v8 = vsel %vm1138_vm7, %v4761_v56, %v1819_v4  ;;  %v1474_v33 = vor.u32 %v1473_v48, %v1470_v23  ;;  %v1822_v30 = vshrl.u32 %v1793_v46, 16 }
 0x156   : > { %v1228_v43 = vsel %vm1184_vm5, %v1218_v20, %v1227_v9  ;;  %v1219_v12 = vsel %vm1184_vm5, %v1209_v19, %v1218_v20  ;;  %v1825_v38 = vshll.u32 %v1793_v46, 16  ;;  %v1548_v59 = vsel %vm1520_vm6, %v4626_v34, %v1547_v0 }
 0x157   : > { %1236 = vst.msk [vmem:[#allocation3 + $0x18] sm:$0xff] %vm5456_vm2, %v1228_v43  ;;  %1235 = vst.msk [vmem:[#allocation3 + $0x10] sm:$0xff] %vm5456_vm2, %v1219_v12  ;;  %v1647_v50 = vor.u32 %v1645_v28, %v4735_v5  ;;  %v1766_v7 = vrot.slane %v1753_v27, 4  ;;  %v1833_v47 = vrot.slane %v1831_v29, 4  ;;  %v1475_v56 = vsel %vm1138_vm7, %v1465_v49, %v1474_v33 }
 0x158   : > { %1841 = vrot.lane.b32.xlu1 %v1820_v8, %s4132_s25  ;;  %v1824_v35 = vrot.slane %v1822_v30, 4  ;;  %v1827_v36 = vrot.slane %v1825_v38, 5  ;;  %v1836_v19 = vrot.slane %v1834_v44, 5  ;;  %v1722_v49 = vsel %vm1184_vm5, %v4793_v13, %v4766_v60 }
 0x159   : > { %1561 = vrot.lane.b32.xlu0 %v1548_v59, %s4128_s30  ;;  %v1652_v57 = vsel %vm1498_vm8, %v1647_v50, %v4745_v24  ;;  %v1767_v5 = vsel %vm1247_vm9, %v1764_v53, %v1766_v7  ;;  %vm1903_vm2 = vcmask 588800  }
 0x15a   : > { %v1828_v34 = vor.u32 %v1827_v36, %v1824_v35  ;;  %v1837_v32 = vor.u32 %v1836_v19, %v1833_v47  ;;  %v4011_v35 = vld [vmem:[%s4314_s16] sm:$0xff]   ;;  %v4012_v36 = vld [vmem:[%s4314_s16 + $0x8] sm:$0xff]  }
 0x15b   : > { %3879 = vmatprep.subr.bf16.mxu0 %v4011_v35  ;;  %v3658_v19 = vld [vmem:[%s5519_s17] ss:$0 sm:$0xff] }
 0x15c   : > { %1482 = vrot.lane.b32.xlu1 %v1475_v56, %s4129_s27  ;;  %v1838_v6 = vsel %vm1138_vm7, %v1828_v34, %v1837_v32  ;;  %v1829_v24 = vsel %vm1138_vm7, %v1819_v4, %v1828_v34  ;;  %3880 = vmatpush3.bf16.msra.mxu0 %v4011_v35 }
 0x15d   : > { %1665 = vrot.lane.b32.xlu0 %v1652_v57, %s4130_s13  ;;  %3881 = vmatprep.subr.bf16.mxu0 %v4012_v36  ;;  %s5544_s13 = sld [smem:[#allocation37_spill]] }
 0x160   : > { %1774 = vrot.lane.b32.xlu1 %v1767_v5, %s4127_s0  ;;  %3882 = vmatpush3.bf16.msra.mxu0 %v4012_v36  ;;  %s5536_s0 = scalar_lea.vmem %s5430_s15, %s4265_s20 }
 0x161   : > { %1736 = vrot.lane.b32.xlu0 %v1722_v49, %s4131_s21 }
 0x163   : > { %s5545_s21 = scalar_lea.vmem %s5544_s13, %s4265_s20 }
 0x164   : > { %1845 = vrot.lane.b32.xlu1 %v1838_v6, %s4132_s25 }
 0x165   : > { %1843 = vrot.lane.b32.xlu0 %v1829_v24, %s4132_s25 }
 0x19a   : > { %v1585_v62 = vpop.permute.xlu1 %1584 }
 0x19b   : > { %v1583_v53 = vpop.permute.xlu0 %1582 }
 0x19e   : > { %v1260_v1 = vpop.permute.xlu1 %1259 }
 0x19f   : > { %1271 = vst.msk [vmem:[#allocation3 + $0x8] sm:$0xff] %vm1269_vm10, %v1260_v1  ;;  %v1258_v61 = vpop.permute.xlu0 %1257 }
 0x1a0   : > { %1270 = vst.msk [vmem:[#allocation3] sm:$0xff] %vm1269_vm10, %v1258_v61 }
 0x1a2   : > { %v1589_v60 = vpop.permute.xlu1 %1588 }
 0x1a3   : > { %v1769_v13 = vpop.permute.xlu0 %1768 }
 0x1a6   : > { %v1560_v46 = vpop.permute.xlu1 %1559 }
 0x1a7   : > { %v1587_v45 = vpop.permute.xlu0 %1586 }
 0x1aa   : > { %v1479_v9 = vpop.permute.xlu1 %1478 }
 0x1ab   : > { %1490 = vst.msk [vmem:[#allocation3 + $0x8] sm:$0xff] %vm1488_vm11, %v1479_v9  ;;  %v1477_v4 = vpop.permute.xlu0 %1476 }
 0x1ac   : > { %1571 = vst.msk [vmem:[#allocation3 + $0x8] sm:$0xff] %vm1569_vm12, %v1560_v46 }
 0x1ad   : > { %1489 = vst.msk [vmem:[#allocation3] sm:$0xff] %vm1488_vm11, %v1477_v4 }
 0x1ae   : > { %1596 = vst.msk [vmem:[#allocation3 + $0x8] sm:$0xff] %vm1594_vm13, %v1585_v62  ;;  %v1771_v21 = vpop.permute.xlu1 %1770 }
 0x1af   : > { %v1558_v54 = vpop.permute.xlu0 %1557 }
 0x1b0   : > { %1570 = vst.msk [vmem:[#allocation3] sm:$0xff] %vm1569_vm12, %v1558_v54 }
 0x1b1   : > { %1595 = vst.msk [vmem:[#allocation3] sm:$0xff] %vm1594_vm13, %v1583_v53 }
 0x1b2   : > { %v1264_v37 = vpop.permute.xlu1 %1263 }
 0x1b3   : > { %1273 = vst.msk [vmem:[#allocation3 + $0x18] sm:$0xff] %vm1269_vm10, %v1264_v37  ;;  %v1662_v23 = vpop.permute.xlu0 %1661 }
 0x1b4   : > { %1674 = vst.msk [vmem:[#allocation3] sm:$0xff] %vm1673_vm14, %v1662_v23 }
 0x1b6   : > { %v1664_v48 = vpop.permute.xlu1 %1663 }
 0x1b7   : > { %1675 = vst.msk [vmem:[#allocation3 + $0x8] sm:$0xff] %vm1673_vm14, %v1664_v48  ;;  %v1733_v40 = vpop.permute.xlu0 %1732 }
 0x1b8   : > { %1745 = vst.msk [vmem:[#allocation3] sm:$0xff] %vm1744_vm15, %v1733_v40 }
 0x1b9   : > { %1781 = vst.msk [vmem:[#allocation3] sm:$0xff] %vm1780_vm0, %v1769_v13 }
 0x1ba   : > { %v1564_v25 = vpop.permute.xlu1 %1563 }
 0x1bb   : > { %v1840_v42 = vpop.permute.xlu0 %1839 }
 0x1bc   : > { %1852 = vst.msk [vmem:[#allocation3] sm:$0xff] %vm1851_vm1, %v1840_v42 }
 0x1be   : > { %v1668_v0 = vpop.permute.xlu1 %1667 }
 0x1bf   : > { %v1262_v20 = vpop.permute.xlu0 %1261 }
 0x1c0   : > { %1272 = vst.msk [vmem:[#allocation3 + $0x10] sm:$0xff] %vm1269_vm10, %v1262_v20 }
 0x1c2   : > { %v1739_v17 = vpop.permute.xlu1 %1738 }
 0x1c3   : > { %v1773_v29 = vpop.permute.xlu0 %1772  ;;  %v1856_v28 = vld [vmem:[#allocation3] sm:$0xff] }
 0x1c4   : > { %3871 = vmatprep.mubr.msk.bf16.mxu1 %vm1903_vm2, %v1856_v28  ;;  %v4014_v28 = vld [vmem:[%s4332_s7 + $0x88] sm:$0xff]  }
 0x1c6   : > { %v1735_v44 = vpop.permute.xlu1 %1734 }
 0x1c7   : > { %1746 = vst.msk [vmem:[#allocation3 + $0x8] sm:$0xff] %vm1744_vm15, %v1735_v44  ;;  %v1481_v43 = vpop.permute.xlu0 %1480  ;;  %v4015_v44 = vld [vmem:[%s4332_s7 + $0x40] sm:$0xff]  }
 0x1c8   : > { %1782 = vst.msk [vmem:[#allocation3 + $0x8] sm:$0xff] %vm1780_vm0, %v1771_v21  ;;  %3754 = vmatprep.subr.bf16.mxu0 %v4015_v44 }
 0x1c9   : > { %1491 = vst.msk [vmem:[#allocation3 + $0x10] sm:$0xff] %vm1488_vm11, %v1481_v43  ;;  %v4016_v43 = vld [vmem:[%s4337_s9 + $0x40] sm:$0xff]  }
 0x1ca   : > { %v1842_v12 = vpop.permute.xlu1 %1841 }
 0x1cb   : > { %1853 = vst.msk [vmem:[#allocation3 + $0x8] sm:$0xff] %vm1851_vm1, %v1842_v12  ;;  %v1562_v8 = vpop.permute.xlu0 %1561  ;;  %v4017_v12 = vld [vmem:[%s4332_s7] sm:$0xff]  }
 0x1cc   : > { %1572 = vst.msk [vmem:[#allocation3 + $0x10] sm:$0xff] %vm1569_vm12, %v1562_v8  ;;  %v4019_v8 = vld [vmem:[%s4332_s7 + $0x48] sm:$0xff]  }
 0x1cd   : > { %1597 = vst.msk [vmem:[#allocation3 + $0x10] sm:$0xff] %vm1594_vm13, %v1587_v45 }
 0x1ce   : > { %v1483_v33 = vpop.permute.xlu1 %1482 }
 0x1cf   : > { %1492 = vst.msk [vmem:[#allocation3 + $0x18] sm:$0xff] %vm1488_vm11, %v1483_v33  ;;  %v1666_v27 = vpop.permute.xlu0 %1665  ;;  %v4021_v33 = vld [vmem:[%s4332_s7 + $0x8] sm:$0xff]  }
 0x1d0   : > { %1573 = vst.msk [vmem:[#allocation3 + $0x18] sm:$0xff] %vm1569_vm12, %v1564_v25 }
 0x1d1   : > { %1676 = vst.msk [vmem:[#allocation3 + $0x10] sm:$0xff] %vm1673_vm14, %v1666_v27  ;;  %v4913_v27 = vld [vmem:[%s5520_s4] ss:$0 sm:$0xff] }
 0x1d2   : > { %1598 = vst.msk [vmem:[#allocation3 + $0x18] sm:$0xff] %vm1594_vm13, %v1589_v60  ;;  %v1775_v30 = vpop.permute.xlu1 %1774  ;;  %v1857_v38 = vld [vmem:[#allocation3 + $0x8] sm:$0xff] }
 0x1d3   : > { %1677 = vst.msk [vmem:[#allocation3 + $0x18] sm:$0xff] %vm1673_vm14, %v1668_v0  ;;  %3872 = vmatmul.mubr.msk.bf16.vlgmr.msra.gmra.mrb[8].mxu1 %vm1903_vm2, %v1857_v38  ;;  %v1737_v59 = vpop.permute.xlu0 %1736 }
 0x1d4   : > { %1748 = vst.msk [vmem:[#allocation3 + $0x18] sm:$0xff] %vm1744_vm15, %v1739_v17  ;;  %1747 = vst.msk [vmem:[#allocation3 + $0x10] sm:$0xff] %vm1744_vm15, %v1737_v59 }
 0x1d5   : > { %1784 = vst.msk [vmem:[#allocation3 + $0x18] sm:$0xff] %vm1780_vm0, %v1775_v30  ;;  %1783 = vst.msk [vmem:[#allocation3 + $0x10] sm:$0xff] %vm1780_vm0, %v1773_v29  ;;  %v4013_v29 = vld [vmem:[%s4332_s7 + $0x80] sm:$0xff]   ;;  %v2214_v30 = vld [vmem:[#allocation4] sm:$0xf0] }
 0x1d6   : > { %v1846_v50 = vpop.permute.xlu1 %1845  ;;  %3891 = vmatprep.subr.bf16.mxu1 %v4013_v29 }
 0x1d7   : > { %1855 = vst.msk [vmem:[#allocation3 + $0x18] sm:$0xff] %vm1851_vm1, %v1846_v50  ;;  %v1844_v7 = vpop.permute.xlu0 %1843  ;;  %3892 = vmatpush3.bf16.msra.mxu1 %v4013_v29 }
 0x1d8   : > { %1854 = vst.msk [vmem:[#allocation3 + $0x10] sm:$0xff] %vm1851_vm1, %v1844_v7  ;;  %3893 = vmatprep.subr.bf16.mxu1 %v4014_v28  ;;  %v2219_v7 = vmul.bf16 %v2214_v30, %v4458_v18 }
 0x1db   : > { %3894 = vmatpush3.bf16.msra.mxu1 %v4014_v28 }
 0x1dc   : > { %3800 = vmatprep.subr.bf16.mxu1 %v4016_v43 }
 0x1de   : > { %v1859_v56 = vld [vmem:[#allocation3 + $0x18] sm:$0xff] }
 0x1df   : > { %v1858_v47 = vld [vmem:[#allocation3 + $0x10] sm:$0xff] }
 0x1e0   : > { %3875 = vmatprep.mubr.msk.bf16.mxu1 %vm1903_vm2, %v1858_v47 }
 0x1e1   : > { %3876 = vmatmul.mubr.msk.bf16.gmra.mrb[12].mxu1 %vm1903_vm2, %v1859_v56  ;;  %vm2209_vm2 = vcmask 523520  }
 0x2a6   : > { %v3873_v57 = vpop.f32.mrb[8].mxu1 }
 0x2a7   : > { %v1963_v5 = vadd.f32 %v3873_v57, %v3658_v19  ;;  %v1954_v34 = vpop.f32.mrb[9].mxu1 }
 0x2a8   : > { %v1955_v32 = vadd.f32 %v3658_v19, %v1954_v34  ;;  %v3874_v49 = vpop.f32.mrb[10].mxu1  ;;  %v2527_v34 = vld [vmem:[#allocation4 + $0x28] sm:$0x1f] }
 0x2a9   : > { %v1966_v6 = vadd.f32 %v3874_v49, %v3658_v19  ;;  %v1957_v24 = vpop.f32.mrb[11].mxu1  ;;  %v1987_v53 = vmax.f32 %v1963_v5, 0.0  ;;  %v2116_v5 = vld [vmem:[#allocation4] sm:$0xf8] }
 0x2aa   : > { %v1958_v62 = vadd.f32 %v3658_v19, %v1957_v24  ;;  %v1985_v61 = vmax.f32 %v1955_v32, 0.0 }
 0x2ab   : > { %v1988_v1 = vmax.f32 %v1966_v6, 0.0  ;;  %v2225_v6 = vshrl.u32 %v2219_v7, 16 }
 0x2ac   : > { %v1986_v60 = vmax.f32 %v1958_v62, 0.0 }
 0x2ad   : > { %v1994_v13 = vpack.c.bf16 %v1988_v1, %v1987_v53  ;;  %v2228_v53 = vshll.u32 %v2219_v7, 16 }
 0x2ae   : > { %v1993_v46 = vpack.c.bf16 %v1986_v60, %v1985_v61  ;;  %v2121_v60 = vmul.bf16 %v2116_v5, %v4483_v55 }
 0x2b0   : > { %3883 = vmatprep.mubr.msk.bf16.mxu0 %vm2020_vm3, %v1993_v46 }
 0x2b1   : > { %3884 = vmatmul.mubr.msk.bf16.vlgmr.msra.gmra.mrb[0].mxu0 %vm2020_vm3, %v1994_v13  ;;  %v4923_v13 = vmul.bf16 %v2527_v34, %v4587_v15 }
 0x2b2   : > { %3755 = vmatpush3.bf16.msra.mxu0 %v4017_v12 }
 0x2b3   : > { %3756 = vmatprep.subr.bf16.mxu0 %v4019_v8 }
 0x2b4   : > { %v3877_v45 = vpop.f32.mrb[12].mxu1 }
 0x2b5   : > { %v1979_v9 = vadd.f32 %v3877_v45, %v3658_v19  ;;  %v1970_v4 = vpop.f32.mrb[13].mxu1  ;;  %v4023_v45 = vld [vmem:[%s4332_s7 + $0x50] sm:$0xff]  }
 0x2b6   : > { %v1971_v21 = vadd.f32 %v3658_v19, %v1970_v4  ;;  %v3878_v54 = vpop.f32.mrb[14].mxu1  ;;  %3757 = vmatpush3.bf16.msra.mxu0 %v4021_v33  ;;  %v4929_v4 = vrot.slane %v2225_v6, 4  ;;  %v2572_v33 = vshll.u32 %v4923_v13, 16 }
 0x2b7   : > { %v1982_v37 = vadd.f32 %v3878_v54, %v3658_v19  ;;  %v1973_v23 = vpop.f32.mrb[15].mxu1  ;;  %v1991_v40 = vmax.f32 %v1979_v9, 0.0  ;;  %v4025_v9 = vld [vmem:[%s4332_s7 + $0x10] sm:$0xff]   ;;  %3758 = vmatprep.subr.bf16.mxu0 %v4023_v45  ;;  %v2127_v54 = vshrl.u32 %v2121_v60, 16 }
 0x2b8   : > { %v1974_v48 = vadd.f32 %v3658_v19, %v1973_v23  ;;  %v1989_v42 = vmax.f32 %v1971_v21, 0.0  ;;  %v2285_v19 = vld [vmem:[#allocation4] sm:$0x80]  ;;  %v4931_v21 = vrot.slane %v2228_v53, 5  ;;  %v2569_v23 = vshrl.u32 %v4923_v13, 16 }
 0x2b9   : > { %v1992_v25 = vmax.f32 %v1982_v37, 0.0  ;;  %v2290_v1 = vmul.bf16 %v2285_v19, %v4489_v63  ;;  %v2130_v37 = vshll.u32 %v2121_v60, 16  ;;  %v4946_v43 = vrot.slane %v2127_v54, 3 }
 0x2ba   : > { %v1990_v0 = vmax.f32 %v1974_v48, 0.0  ;;  %3759 = vmatpush3.bf16.msra.mxu0 %v4025_v9  ;;  %v4936_v48 = vld [vmem:[#allocation4 + $0x28] sm:$0x1]  ;;  %v4950_v8 = vrot.slane %v2569_v23, 4 }
 0x2bb   : > { %v1996_v20 = vpack.c.bf16 %v1992_v25, %v1991_v40  ;;  %v4933_v63 = vshrl.u32 %v2290_v1, 16  ;;  %v4027_v40 = vld [vmem:[%s4332_s7 + $0x58] sm:$0xff]   ;;  %v2365_v44 = vmul.bf16 %v4936_v48, %v4551_v52  ;;  %v4948_v12 = vrot.slane %v2130_v37, 4 }
 0x2bc   : > { %v1995_v17 = vpack.c.bf16 %v1990_v0, %v1989_v42  ;;  %v4029_v25 = vld [vmem:[%s4332_s7 + $0x18] sm:$0xff]   ;;  %v2178_v42 = vld [vmem:[#allocation4] sm:$0xf0]  ;;  %3760 = vmatprep.subr.bf16.mxu0 %v4027_v40 }
 0x2be   : > { %3887 = vmatprep.mubr.msk.bf16.mxu0 %vm2020_vm3, %v1995_v17  ;;  %v2298_v17 = vrot.slane %v4933_v63, 7  ;;  %3761 = vmatpush3.bf16.msra.mxu0 %v4029_v25 }
 0x2bf   : > { %3888 = vmatmul.mubr.msk.bf16.gmra.mrb[4].mxu0 %vm2020_vm3, %v1996_v20  ;;  %v2231_v20 = vor.u32 %v4931_v21, %v4929_v4 }
 0x384   : > { %v3885_v38 = vpop.f32.mrb[0].mxu0 }
 0x385   : > { %v2076_v59 = vadd.f32 %v3885_v38, %v4913_v27  ;;  %v2067_v50 = vpop.f32.mrb[1].mxu0 }
 0x386   : > { %v2068_v47 = vadd.f32 %v4913_v27, %v2067_v50  ;;  %v3886_v56 = vpop.f32.mrb[2].mxu0  ;;  %v2188_v50 = vrot.slane %v2178_v42, 4 }
 0x387   : > { %v2079_v35 = vadd.f32 %v3886_v56, %v4913_v27  ;;  %v2070_v36 = vpop.f32.mrb[3].mxu0  ;;  %v2100_v32 = vmax.f32 %v2076_v59, 0.0 }
 0x388   : > { %v2071_v57 = vadd.f32 %v4913_v27, %v2070_v36  ;;  %v2098_v24 = vmax.f32 %v2068_v47, 0.0 }
 0x389   : > { %v2101_v49 = vmax.f32 %v2079_v35, 0.0 }
 0x38a   : > { %v2099_v62 = vmax.f32 %v2071_v57, 0.0 }
 0x38b   : > { %v2107_v61 = vpack.c.bf16 %v2101_v49, %v2100_v32 }
 0x38c   : > { %v2106_v46 = vpack.c.bf16 %v2099_v62, %v2098_v24 }
 0x38d   : > { %2113 = vst.msk [vmem:[#allocation4 + $0x10] sm:$0xff] %vm2020_vm3, %v2107_v61  ;;  %v4031_v61 = vld [vmem:[%s4332_s7 + $0x60] sm:$0xff]  }
 0x38e   : > { %2112 = vst.msk [vmem:[#allocation4 + $0x8] sm:$0xff] %vm2020_vm3, %v2106_v46  ;;  %3762 = vmatprep.subr.bf16.mxu0 %v4031_v61 }
 0x392   : > { %v3889_v0 = vpop.f32.mrb[4].mxu0 }
 0x393   : > { %v2092_v29 = vadd.f32 %v3889_v0, %v4913_v27  ;;  %v2083_v28 = vpop.f32.mrb[5].mxu0 }
 0x394   : > { %v4953_v30 = vld [vmem:[#allocation4 + $0x10] sm:$0xff]  ;;  %v2084_v38 = vadd.f32 %v4913_v27, %v2083_v28  ;;  %v3890_v59 = vpop.f32.mrb[6].mxu0 }
 0x395   : > { %v2529_v7 = vmul.bf16 %v4953_v30, %v4515_v14  ;;  %v2523_v47 = vld [vmem:[#allocation4 + $0x8] sm:$0xf0]  ;;  %v2104_v56 = vmax.f32 %v2092_v29, 0.0  ;;  %v2095_v35 = vadd.f32 %v3890_v59, %v4913_v27  ;;  %v2086_v36 = vpop.f32.mrb[7].mxu0  ;;  %v4962_v57 = vrot.slane %v4953_v30, 4  ;;  %2353 = vst.msk [vmem:[#allocation5 + $0x20] sm:$0xff] %vm2020_vm3, %v4953_v30 }
 0x396   : > { %v4959_v19 = vld [vmem:[#allocation4 + $0x8] sm:$0xff]  ;;  %v2528_v5 = vmul.bf16 %v2523_v47, %v4458_v18  ;;  %v2102_v34 = vmax.f32 %v2084_v38, 0.0  ;;  %v2087_v32 = vadd.f32 %v4913_v27, %v2086_v36  ;;  %v4033_v18 = vld [vmem:[%s4332_s7 + $0x20] sm:$0xff]   ;;  %v4987_v38 = vmul.bf16 %v4953_v30, %v4504_v11 }
 0x397   : > { %v2189_v49 = vrot.slane %v4959_v19, 4  ;;  %v2488_v6 = vld [vmem:[#allocation4 + $0x8] sm:$0xf0]  ;;  %2352 = vst.msk [vmem:[#allocation5 + $0x8] sm:$0xff] %vm2020_vm3, %v4959_v19  ;;  %v2542_v24 = vshrl.u32 %v2529_v7, 16  ;;  %v2545_v62 = vshll.u32 %v2529_v7, 16  ;;  %3763 = vmatpush3.bf16.msra.mxu0 %v4033_v18  ;;  %v2361_v28 = vmul.bf16 %v4959_v19, %v4493_v2 }
 0x398   : > { %v2105_v53 = vmax.f32 %v2095_v35, 0.0  ;;  %v2498_v1 = vrot.slane %v2488_v6, 4  ;;  %v2534_v60 = vshrl.u32 %v2528_v5, 16  ;;  %v2537_v46 = vshll.u32 %v2528_v5, 16  ;;  %v2418_v40 = vld [vmem:[#allocation4 + $0x8] sm:$0xf8] }
 0x399   : > { %v2103_v45 = vmax.f32 %v2087_v32, 0.0  ;;  %v2190_v9 = vsel %vm1247_vm9, %v2188_v50, %v2189_v49  ;;  %v2544_v54 = vrot.slane %v2542_v24, 4  ;;  %v2547_v37 = vrot.slane %v2545_v62, 5  ;;  %v4037_v5 = vld [vmem:[%s4332_s7 + $0x28] sm:$0xff]  }
 0x39a   : > { %v2109_v27 = vpack.c.bf16 %v2105_v53, %v2104_v56  ;;  %2197 = vrot.lane.b32.xlu1 %v2190_v9, %s4125_s1  ;;  %v2500_v23 = vsel %vm1247_vm9, %v2498_v1, %v4962_v57  ;;  %v4977_v25 = vrot.slane %v2534_v60, 4  ;;  %v2539_v42 = vrot.slane %v2537_v46, 5  ;;  %v4035_v56 = vld [vmem:[%s4332_s7 + $0x68] sm:$0xff]   ;;  %v4039_v46 = vld [vmem:[%s4332_s7 + $0x70] sm:$0xff]  }
 0x39b   : > { %v2108_v0 = vpack.c.bf16 %v2103_v45, %v2102_v34  ;;  %2507 = vrot.lane.b32.xlu0 %v2500_v23, %s4133_s28  ;;  %v2192_v29 = vsel %vm1247_vm9, %v2189_v49, %v4962_v57  ;;  %v4991_v59 = vmul.bf16 %v4959_v19, %v4573_v3  ;;  %v2292_v50 = vmul.bf16 %v4953_v30, %v4585_v10  ;;  %v4041_v23 = vld [vmem:[%s4332_s7 + $0x30] sm:$0xff]  }
 0x39c   : > { %2115 = vst.msk [vmem:[#allocation4 + $0x20] sm:$0xff] %vm2020_vm3, %v2109_v27  ;;  %v2423_v7 = vmul.bf16 %v2418_v40, %v4483_v55  ;;  %v2424_v47 = vmul.bf16 %v4953_v30, %v4578_v31  ;;  %v2220_v2 = vmul.bf16 %v4959_v19, %v4515_v14  ;;  %v2540_v11 = vor.u32 %v2539_v42, %v4977_v25 }
 0x39d   : > { %2114 = vst.msk [vmem:[#allocation4 + $0x18] sm:$0xff] %vm2020_vm3, %v2108_v0  ;;  %v2367_v3 = vshrl.u32 %v2361_v28, 16  ;;  %v2369_v35 = vshll.u32 %v2361_v28, 16  ;;  %v2374_v36 = vshll.u32 %v4987_v38, 16  ;;  %v2300_v10 = vshrl.u32 %v4991_v59, 16  ;;  %3764 = vmatprep.subr.bf16.mxu0 %v4035_v56 }
 0x39e   : > { %2199 = vrot.lane.b32.xlu1 %v2192_v29, %s4125_s1  ;;  %v2308_v55 = vshrl.u32 %v2292_v50, 16  ;;  %v2311_v34 = vshll.u32 %v2292_v50, 16  ;;  %v2429_v32 = vshrl.u32 %v2423_v7, 16  ;;  %v2432_v49 = vshll.u32 %v2423_v7, 16  ;;  %3765 = vmatpush3.bf16.msra.mxu0 %v4037_v5 }
 0x39f   : > { %v2371_v14 = vrot.slane %v2369_v35, 1  ;;  %v5007_v6 = vrot.slane %v2374_v36, 1  ;;  %v2302_v24 = vrot.slane %v2300_v10, 7  ;;  %v2437_v62 = vshrl.u32 %v2424_v47, 16  ;;  %3766 = vmatprep.subr.bf16.mxu0 %v4039_v46  ;;  %v2422_v35 = vld [vmem:[#allocation4 + $0x28] sm:$0xf] }
 0x3a0   : > { %v5009_v53 = vrot.slane %v2308_v55, 7  ;;  %v2431_v1 = vrot.slane %v2429_v32, 3  ;;  %v2434_v61 = vrot.slane %v2432_v49, 4  ;;  %v2440_v60 = vshll.u32 %v2424_v47, 16 }
 0x3a1   : > { %v2372_v45 = vor.u32 %v2371_v14, %v2367_v3  ;;  %v2439_v9 = vrot.slane %v2437_v62, 3  ;;  %v2233_v18 = vshrl.u32 %v2220_v2, 16  ;;  %v2236_v27 = vshll.u32 %v2220_v2, 16  ;;  %v4043_v14 = vld [vmem:[%s4332_s7 + $0x78] sm:$0xff]  }
 0x3a2   : > { %v2313_v25 = vor.u32 %v2311_v34, %v5009_v53  ;;  %v2435_v42 = vor.u32 %v2434_v61, %v2431_v1  ;;  %v2442_v0 = vrot.slane %v2440_v60, 4  ;;  %v2548_v29 = vor.u32 %v2547_v37, %v2544_v54  ;;  %3767 = vmatpush3.bf16.msra.mxu0 %v4041_v23  ;;  %v4045_v62 = vld [vmem:[%s4332_s7 + $0x38] sm:$0xff]   ;;  %s5529_s7 = sld [smem:[#allocation12_spill]] }
 0x3a3   : > { %v5013_v40 = vld [vmem:[#allocation4 + $0x20] sm:$0xff]  ;;  %v2377_v7 = vsel %vm1498_vm8, %v2372_v45, %v5007_v6  ;;  %v2235_v47 = vrot.slane %v2233_v18, 4  ;;  %v2238_v56 = vrot.slane %v2236_v27, 5  ;;  %v5040_v34 = vrot.slane %v2572_v33, 5  ;;  %3768 = vmatprep.subr.bf16.mxu0 %v4043_v14 }
 0x3a4   : > { %v2531_v28 = vmul.bf16 %v5013_v40, %v4668_v22  ;;  %v5018_v50 = vld [vmem:[#allocation4 + $0x18] sm:$0xff]  ;;  %2355 = vst.msk [vmem:[#allocation5 + $0x50] sm:$0xff] %vm2020_vm3, %v5013_v40  ;;  %2402 = vrot.lane.b32.xlu0 %v2377_v7, %s4125_s1  ;;  %v2314_v54 = vsel %vm1520_vm6, %v2302_v24, %v2313_v25  ;;  %v5028_v37 = vor.u32 %v2442_v0, %v2439_v9  ;;  %v2303_v49 = vshll.u32 %v4991_v59, 16  ;;  %v2218_v14 = vld [vmem:[#allocation4 + $0x20] sm:$0x1f] }
 0x3a5   : > { %v2530_v2 = vmul.bf16 %v5018_v50, %v4549_v51  ;;  %v2549_v3 = vsel %vm1138_vm7, %v2540_v11, %v2548_v29  ;;  %2354 = vst.msk [vmem:[#allocation5 + $0x38] sm:$0xff] %vm2020_vm3, %v5018_v50  ;;  %2333 = vrot.lane.b32.xlu1 %v2314_v54, %s4133_s28  ;;  %v2239_v5 = vor.u32 %v2238_v56, %v2235_v47  ;;  %v5036_v55 = vrot.slane %v5018_v50, 4 }
 0x3a6   : > { %v2560_v36 = vshrl.u32 %v2531_v28, 16  ;;  %v2563_v10 = vshll.u32 %v2531_v28, 16  ;;  %2581 = vst.msk [vmem:[#allocation5 + $0x10] sm:$0xff] %vm2020_vm3, %v2549_v3  ;;  %v2444_v61 = vsel %vm1184_vm5, %v2435_v42, %v5028_v37  ;;  %v5052_v46 = vmul.bf16 %v2422_v35, %v4606_v39  ;;  %3769 = vmatpush3.bf16.msra.mxu0 %v4045_v62 }
 0x3a7   : > { %v2551_v32 = vshrl.u32 %v2530_v2, 16  ;;  %v2554_v11 = vshll.u32 %v2530_v2, 16  ;;  %v2240_v60 = vsel %vm1138_vm7, %v2231_v20, %v2239_v5  ;;  %v5058_v59 = vsel %vm1247_vm9, %v4962_v57, %v5036_v55 }
 0x3a8   : > { %v2562_v1 = vrot.slane %v2560_v36, 4  ;;  %2472 = vrot.lane.b32.xlu0 %v2444_v61, %s4132_s25  ;;  %v2305_v45 = vor.u32 %v2303_v49, %v2302_v24  ;;  %v2565_v9 = vrot.slane %v2563_v10, 5  ;;  %v2221_v4 = vmul.bf16 %v4953_v30, %v4549_v51 }
 0x3a9   : > { %v2553_v13 = vrot.slane %v2551_v32, 4  ;;  %v2556_v33 = vrot.slane %v2554_v11, 5  ;;  %2268 = vrot.lane.b32.xlu1 %v2240_v60, %s4132_s25  ;;  %v5065_v21 = vmul.bf16 %v5018_v50, %v4558_v26  ;;  %v2425_v20 = vmul.bf16 %v5018_v50, %v4638_v41  ;;  %v2182_v32 = vld [vmem:[#allocation4 + $0x20] sm:$0xf]  ;;  %v4018_v60 = vld [vmem:[%s4337_s9] sm:$0xff]  }
 0x3aa   : > { %v2575_v57 = vor.u32 %v5040_v34, %v4950_v8  ;;  %v2503_v24 = vrot.slane %v5013_v40, 4  ;;  %v5075_v27 = vshll.u32 %v2365_v44, 16  ;;  %v2242_v51 = vshrl.u32 %v2221_v4, 16 }
 0x3ab   : > { %v2557_v18 = vor.u32 %v2556_v33, %v2553_v13  ;;  %v2245_v23 = vshll.u32 %v2221_v4, 16  ;;  %v2382_v26 = vshll.u32 %v5065_v21, 16  ;;  %v2464_v25 = vshrl.u32 %v5052_v46, 16  ;;  %v4020_v4 = vld [vmem:[%s4337_s9 + $0x48] sm:$0xff]  }
 0x3ac   : > { %2509 = vrot.lane.b32.xlu0 %v5058_v59, %s4133_s28  ;;  %v2306_v8 = vsel %vm1520_vm6, %v2298_v17, %v2305_v45  ;;  %v2446_v0 = vshrl.u32 %v2425_v20, 16  ;;  %v2449_v28 = vshll.u32 %v2425_v20, 16  ;;  %v2244_v48 = vrot.slane %v2242_v51, 4  ;;  %v5521_v45 = vld [vmem:[#allocation26_spill] sm:$0xff] }
 0x3ad   : > { %v5079_v42 = vld [vmem:[#allocation5 + $0x10] sm:$0xff]  ;;  %v2558_v52 = vsel %vm1138_vm7, %v2548_v29, %v2557_v18  ;;  %2331 = vrot.lane.b32.xlu1 %v2306_v8, %s4133_s28  ;;  %v2247_v44 = vrot.slane %v2245_v23, 5  ;;  %v2378_v7 = vshrl.u32 %v4987_v38, 16  ;;  %v2566_v47 = vor.u32 %v2565_v9, %v2562_v1 }
 0x3ae   : > { %3895 = vmatprep.mubr.msk.bf16.mxu1 %vm2020_vm3, %v5079_v42  ;;  %2582 = vst.msk [vmem:[#allocation5 + $0x28] sm:$0xff] %vm2020_vm3, %v2558_v52  ;;  %v2504_v63 = vsel %vm1247_vm9, %v5036_v55, %v2503_v24  ;;  %v2384_v17 = vrot.slane %v2382_v26, 1  ;;  %v2448_v56 = vrot.slane %v2446_v0, 3  ;;  %v2364_v29 = vmul.bf16 %v5013_v40, %v4649_v16 }
 0x3af   : > { %v5098_v2 = vor.u32 %v2247_v44, %v2244_v48  ;;  %v2451_v54 = vrot.slane %v2449_v28, 4  ;;  %v2567_v3 = vsel %vm1138_vm7, %v2557_v18, %v2566_v47  ;;  %v2222_v38 = vmul.bf16 %v5018_v50, %v4668_v22  ;;  %v4022_v48 = vld [vmem:[%s4337_s9 + $0x8] sm:$0xff]  }
 0x3b0   : > { %2511 = vrot.lane.b32.xlu0 %v2504_v63, %s4133_s28  ;;  %v2380_v35 = vor.u32 %v2378_v7, %v5007_v6  ;;  %2583 = vst.msk [vmem:[#allocation5 + $0x40] sm:$0xff] %vm2020_vm3, %v2567_v3  ;;  %v2390_v36 = vshll.u32 %v2364_v29, 16  ;;  %v2426_v10 = vmul.bf16 %v5013_v40, %v4681_v58  ;;  %v2467_v16 = vshll.u32 %v5052_v46, 16 }
 0x3b1   : > { %v2249_v34 = vsel %vm1138_vm7, %v2239_v5, %v5098_v2  ;;  %v2251_v11 = vshrl.u32 %v2222_v38, 16  ;;  %v2254_v22 = vshll.u32 %v2222_v38, 16  ;;  %v2576_v49 = vsel %vm1138_vm7, %v2566_v47, %v2575_v57 }
 0x3b2   : > { %2270 = vrot.lane.b32.xlu1 %v2249_v34, %s4132_s25  ;;  %v2385_v6 = vsel %vm1498_vm8, %v2380_v35, %v2384_v17  ;;  %v2386_v62 = vshrl.u32 %v5065_v21, 16  ;;  %v2455_v1 = vshrl.u32 %v2426_v10, 16  ;;  %v2458_v61 = vshll.u32 %v2426_v10, 16  ;;  %2584 = vst.msk [vmem:[#allocation5 + $0x58] sm:$0xff] %vm2020_vm3, %v2576_v49  ;;  %v5522_v35 = vld [vmem:[#allocation25_spill] sm:$0xff] }
 0x3b3   : > { %v2452_v13 = vor.u32 %v2451_v54, %v2448_v56  ;;  %v2253_v5 = vrot.slane %v2251_v11, 4  ;;  %v2256_v33 = vrot.slane %v2254_v22, 5  ;;  %v2293_v9 = vmul.bf16 %v5018_v50, %v5521_v45 }
 0x3b4   : > { %2404 = vrot.lane.b32.xlu0 %v2385_v6, %s4125_s1  ;;  %v2195_v57 = vrot.slane %v2182_v32, 4  ;;  %v2457_v18 = vrot.slane %v2455_v1, 3  ;;  %v2460_v21 = vrot.slane %v2458_v61, 4  ;;  %v2223_v51 = vmul.bf16 %v2218_v14, %v4587_v15  ;;  %v2120_v32 = vld [vmem:[#allocation4 + $0x20] sm:$0xf] }
 0x3b5   : > { %v5121_v20 = vld [vmem:[#allocation5 + $0x28] sm:$0xff]  ;;  %v2388_v23 = vor.u32 %v2386_v62, %v2384_v17  ;;  %v2392_v26 = vrot.slane %v2390_v36, 1  ;;  %v2316_v8 = vshrl.u32 %v2293_v9, 16  ;;  %v5128_v0 = vor.u32 %v2256_v33, %v2253_v5  ;;  %v4030_v33 = vld [vmem:[%s4337_s9 + $0x18] sm:$0xff]  }
 0x3b6   : > { %3896 = vmatmul.mubr.msk.bf16.vlgmr.msra.gmra.mrb[16].mxu1 %vm2020_vm3, %v5121_v20  ;;  %2201 = vrot.lane.b32.xlu1 %v5058_v59, %s4125_s1  ;;  %v5130_v28 = vor.u32 %v2460_v21, %v2457_v18  ;;  %v2400_v52 = vrot.slane %v5075_v27, 1  ;;  %v2133_v15 = vor.u32 %v4948_v12, %v4946_v43  ;;  %v2453_v44 = vsel %vm1184_vm5, %v5028_v37, %v2452_v13  ;;  %v4024_v59 = vld [vmem:[%s4337_s9 + $0x50] sm:$0xff]   ;;  %v4036_v12 = vld [vmem:[%s4337_s9 + $0x68] sm:$0xff]  }
 0x3b7   : > { %3801 = vmatpush3.bf16.msra.mxu1 %v4018_v60  ;;  %v5138_v7 = vld [vmem:[#allocation5 + $0x40] sm:$0xff]  ;;  %v2394_v47 = vshrl.u32 %v2364_v29, 16  ;;  %v2260_v63 = vshrl.u32 %v2223_v51, 16  ;;  %v2263_v17 = vshll.u32 %v2223_v51, 16  ;;  %v2196_v56 = vsel %vm1247_vm9, %v5036_v55, %v2195_v57 }
 0x3b8   : > { %3802 = vmatprep.subr.bf16.mxu1 %v4020_v4  ;;  %2474 = vrot.lane.b32.xlu0 %v2453_v44, %s4132_s25  ;;  %v5146_v54 = vrot.slane %v2316_v8, 7  ;;  %v5150_v37 = vrot.slane %v2464_v25, 3  ;;  %v5152_v29 = vrot.slane %v2467_v16, 4  ;;  %v2393_v3 = vsel %vm1498_vm8, %v2388_v23, %v2392_v26  ;;  %v4026_v16 = vld [vmem:[%s4337_s9 + $0x10] sm:$0xff]  }
 0x3b9   : > { %3899 = vmatprep.mubr.msk.bf16.mxu1 %vm2020_vm3, %v5138_v7  ;;  %v2396_v38 = vor.u32 %v2394_v47, %v2392_v26  ;;  %v5157_v36 = vmul.bf16 %v5013_v40, %v5522_v35  ;;  %v2122_v55 = vmul.bf16 %v4959_v19, %v4578_v31  ;;  %v2258_v46 = vsel %vm1138_vm7, %v5098_v2, %v5128_v0  ;;  %v4028_v19 = vld [vmem:[%s4337_s9 + $0x58] sm:$0xff]   ;;  %v4038_v35 = vld [vmem:[%s4337_s9 + $0x28] sm:$0xff]  }
 0x3ba   : > { %2203 = vrot.lane.b32.xlu1 %v2196_v56, %s4125_s1  ;;  %v2462_v25 = vsel %vm1184_vm5, %v2452_v13, %v5130_v28  ;;  %v2319_v10 = vshll.u32 %v2293_v9, 16  ;;  %v2123_v34 = vmul.bf16 %v4953_v30, %v4638_v41  ;;  %v2262_v11 = vrot.slane %v2260_v63, 4  ;;  %v5172_v2 = vld [vmem:[#allocation5 + $0x58] sm:$0xff]  ;;  %v5526_v40 = vld [vmem:[#allocation22_spill] sm:$0xff] }
 0x3bb   : > { %3803 = vmatpush3.bf16.msra.mxu1 %v4022_v48  ;;  %v2265_v22 = vrot.slane %v2263_v17, 5  ;;  %v2135_v49 = vshrl.u32 %v2122_v55, 16  ;;  %v2138_v31 = vshll.u32 %v2122_v55, 16  ;;  %v2124_v1 = vmul.bf16 %v5018_v50, %v4681_v58  ;;  %v4032_v50 = vld [vmem:[%s4337_s9 + $0x60] sm:$0xff]  }
 0x3bc   : > { %3804 = vmatprep.subr.bf16.mxu1 %v4024_v59  ;;  %2406 = vrot.lane.b32.xlu0 %v2393_v3, %s4125_s1  ;;  %v2321_v14 = vor.u32 %v2319_v10, %v5146_v54  ;;  %v2144_v6 = vshrl.u32 %v2123_v34, 16  ;;  %v2147_v62 = vshll.u32 %v2123_v34, 16  ;;  %v2324_v41 = vshrl.u32 %v5157_v36, 16  ;;  %v2492_v59 = vld [vmem:[#allocation4 + $0x28] sm:$0xf]  ;;  %v5523_v10 = vld [vmem:[#allocation18_spill] sm:$0xff] }
 0x3bd   : > { %v2137_v30 = vrot.slane %v2135_v49, 3  ;;  %v2140_v61 = vrot.slane %v2138_v31, 4  ;;  %v2125_v60 = vmul.bf16 %v2120_v32, %v4606_v39  ;;  %v2153_v45 = vshrl.u32 %v2124_v1, 16  ;;  %v5525_v34 = vld [vmem:[#allocation17_spill] sm:$0xff]  ;;  %v5528_v32 = vld [vmem:[#allocation24_spill] sm:$0xff] }
 0x3be   : > { %3900 = vmatmul.mubr.msk.bf16.gmra.mrb[20].mxu1 %vm2020_vm3, %v5172_v2  ;;  %2272 = vrot.lane.b32.xlu1 %v2258_v46, %s4132_s25  ;;  %v2146_v13 = vrot.slane %v2144_v6, 3  ;;  %v2149_v5 = vrot.slane %v2147_v62, 4  ;;  %v2156_v9 = vshll.u32 %v2124_v1, 16  ;;  %v2266_v4 = vor.u32 %v2265_v22, %v2262_v11  ;;  %v4042_v46 = vld [vmem:[%s4337_s9 + $0x30] sm:$0xff]  }
 0x3bf   : > { %3805 = vmatpush3.bf16.msra.mxu1 %v4026_v16  ;;  %v2141_v58 = vor.u32 %v2140_v61, %v2137_v30  ;;  %v2162_v57 = vshrl.u32 %v2125_v60, 16  ;;  %v2165_v18 = vshll.u32 %v2125_v60, 16  ;;  %v2322_v39 = vsel %vm1520_vm6, %v5009_v53, %v2321_v14  ;;  %v4034_v53 = vld [vmem:[%s4337_s9 + $0x20] sm:$0xff]   ;;  %v4046_v16 = vld [vmem:[%s4337_s9 + $0x38] sm:$0xff]  }
 0x3c0   : > { %3806 = vmatprep.subr.bf16.mxu1 %v4028_v19  ;;  %2476 = vrot.lane.b32.xlu0 %v2462_v25, %s4132_s25  ;;  %v2150_v21 = vor.u32 %v2149_v5, %v2146_v13  ;;  %v2155_v51 = vrot.slane %v2153_v45, 3  ;;  %v2158_v23 = vrot.slane %v2156_v9, 4  ;;  %v2326_v26 = vrot.slane %v2324_v41, 7  ;;  %v4048_v13 = vld [vmem:[%s4337_s9 + $0x88] sm:$0xff]   ;;  %v4049_v9 = vld [vmem:[%s5529_s7] sm:$0xff]  }
 0x3c1   : > { %v2142_v8 = vsel %vm1184_vm5, %v2133_v15, %v2141_v58  ;;  %v2164_v48 = vrot.slane %v2162_v57, 3  ;;  %v2167_v44 = vrot.slane %v2165_v18, 4  ;;  %v2401_v17 = vsel %vm1498_vm8, %v2396_v38, %v2400_v52 }
 0x3c2   : > { %2335 = vrot.lane.b32.xlu1 %v2322_v39, %s4133_s28  ;;  %2174 = vst.msk [vmem:[#allocation5] sm:$0xff] %vm2020_vm3, %v2142_v8  ;;  %v2151_v47 = vsel %vm1184_vm5, %v2141_v58, %v2150_v21  ;;  %v2159_v63 = vor.u32 %v2158_v23, %v2155_v51  ;;  %v2327_v43 = vshll.u32 %v5157_v36, 16  ;;  %v2267_v27 = vsel %vm1138_vm7, %v5128_v0, %v2266_v4 }
 0x3c3   : > { %3807 = vmatpush3.bf16.msra.mxu1 %v4030_v33  ;;  %2175 = vst.msk [vmem:[#allocation5 + $0x18] sm:$0xff] %vm2020_vm3, %v2151_v47  ;;  %v2168_v15 = vor.u32 %v2167_v44, %v2164_v48  ;;  %v2470_v52 = vor.u32 %v5152_v29, %v5150_v37  ;;  %v2505_v0 = vrot.slane %v2492_v59, 4  ;;  %v4040_v37 = vld [vmem:[%s4337_s9 + $0x70] sm:$0xff]   ;;  %v4047_v29 = vld [vmem:[%s4337_s9 + $0x80] sm:$0xff]  }
 0x3c4   : > { %3808 = vmatprep.subr.bf16.mxu1 %v4032_v50  ;;  %2408 = vrot.lane.b32.xlu0 %v2401_v17, %s4125_s1  ;;  %v2160_v56 = vsel %vm1184_vm5, %v2150_v21, %v2159_v63  ;;  %v2329_v3 = vor.u32 %v2327_v43, %v2326_v26  ;;  %v5530_v17 = vld [vmem:[#allocation13_spill] sm:$0xff]  ;;  %v5531_v43 = vld [vmem:[#allocation14_spill] sm:$0xff] }
 0x3c5   : > { %2176 = vst.msk [vmem:[#allocation5 + $0x30] sm:$0xff] %vm2020_vm3, %v2160_v56  ;;  %v2169_v38 = vsel %vm1184_vm5, %v2159_v63, %v2168_v15  ;;  %v2471_v36 = vsel %vm1184_vm5, %v5130_v28, %v2470_v52  ;;  %3903 = vmatprep.subr.bf16.mxu0 %v4047_v29  ;;  %v2506_v25 = vsel %vm1247_vm9, %v2503_v24, %v2505_v0  ;;  %v4044_v28 = vld [vmem:[%s4337_s9 + $0x78] sm:$0xff]   ;;  %v5527_v24 = vld [vmem:[#allocation19_spill] sm:$0xff]  ;;  %vm2280_vm5 = vcmask 785920  }
 0x3c6   : > { %2274 = vrot.lane.b32.xlu1 %v2267_v27, %s4132_s25  ;;  %2177 = vst.msk [vmem:[#allocation5 + $0x48] sm:$0xff] %vm2020_vm3, %v2169_v38  ;;  %v2330_v55 = vsel %vm1520_vm6, %v5146_v54, %v2329_v3  ;;  %v5524_v54 = vld [vmem:[#allocation20_spill] sm:$0xff]  ;;  %vm2343_vm6 = vcmask 1048320  }
 0x3c7   : > { %3809 = vmatpush3.bf16.msra.mxu1 %v4034_v53 }
 0x3c8   : > { %3810 = vmatprep.subr.bf16.mxu1 %v4036_v12  ;;  %2478 = vrot.lane.b32.xlu0 %v2471_v36, %s4132_s25  ;;  %v5532_v12 = vld [vmem:[#allocation15_spill] sm:$0xff] }
 0x3ca   : > { %2337 = vrot.lane.b32.xlu1 %v2330_v55, %s4133_s28 }
 0x3cb   : > { %3811 = vmatpush3.bf16.msra.mxu1 %v4038_v35  ;;  %v5292_v35 = vld [vmem:[%s5535_s23] ss:$0 sm:$0xff] }
 0x3cc   : > { %3812 = vmatprep.subr.bf16.mxu1 %v4040_v37  ;;  %2513 = vrot.lane.b32.xlu0 %v2506_v25, %s4133_s28 }
 0x3ce   : > { %3305 = vrot.lane.b32.xlu1 %v5523_v10, %s4126_s2 }
 0x3cf   : > { %3813 = vmatpush3.bf16.msra.mxu1 %v4042_v46 }
 0x3d0   : > { %3814 = vmatprep.subr.bf16.mxu1 %v4044_v28  ;;  %3307 = vrot.lane.b32.xlu0 %v5524_v54, %s4126_s2 }
 0x3d2   : > { %3309 = vrot.lane.b32.xlu1 %v5525_v34, %s4126_s2 }
 0x3d3   : > { %3815 = vmatpush3.bf16.msra.mxu1 %v4046_v16 }
 0x3d4   : > { %3313 = vrot.lane.b32.xlu0 %v5526_v40, %s4126_s2 }
 0x3d6   : > { %3311 = vrot.lane.b32.xlu1 %v5527_v24, %s4126_s2 }
 0x3da   : > { %3315 = vrot.lane.b32.xlu1 %v5528_v32, %s4126_s2 }
 0x40c   : > { %v2198_v11 = vpop.permute.xlu1 %2197 }
 0x40d   : > { %2210 = vst.msk [vmem:[#allocation5] sm:$0xff] %vm2209_vm2, %v2198_v11  ;;  %v2508_v49 = vpop.permute.xlu0 %2507 }
 0x410   : > { %v2200_v22 = vpop.permute.xlu1 %2199 }
 0x411   : > { %2211 = vst.msk [vmem:[#allocation5 + $0x18] sm:$0xff] %vm2209_vm2, %v2200_v22 }
 0x416   : > { %v2403_v31 = vpop.permute.xlu0 %2402 }
 0x417   : > { %2414 = vst.msk [vmem:[#allocation5 + $0x8] sm:$0xff] %vm2209_vm2, %v2403_v31  ;;  %v2334_v19 = vpop.permute.xlu1 %2333 }
 0x41a   : > { %v2473_v14 = vpop.permute.xlu0 %2472 }
 0x41b   : > { %2484 = vst.msk [vmem:[#allocation5 + $0x8] sm:$0xff] %vm2280_vm5, %v2473_v14  ;;  %v2269_v6 = vpop.permute.xlu1 %2268 }
 0x41c   : > { %2519 = vst.msk [vmem:[#allocation5 + $0x8] sm:$0xff] %vm2343_vm6, %v2508_v49 }
 0x41d   : > { %2281 = vst.msk [vmem:[#allocation5] sm:$0xff] %vm2280_vm5, %v2269_v6 }
 0x41e   : > { %v2510_v62 = vpop.permute.xlu0 %2509 }
 0x41f   : > { %v2332_v1 = vpop.permute.xlu1 %2331 }
 0x420   : > { %2344 = vst.msk [vmem:[#allocation5] sm:$0xff] %vm2343_vm6, %v2332_v1 }
 0x422   : > { %v2512_v41 = vpop.permute.xlu0 %2511 }
 0x423   : > { %v2586_v30 = vld [vmem:[#allocation5 + $0x8] sm:$0xff] }
 0x424   : > { %v2271_v61 = vpop.permute.xlu1 %2270  ;;  %2792 = vmatprep.mubr.bf16.mxu0 %v2586_v30  ;;  %3073 = vmatprep.mubr.bf16.mxu1 %v2586_v30 }
 0x425   : > { %2282 = vst.msk [vmem:[#allocation5 + $0x18] sm:$0xff] %vm2280_vm5, %v2271_v61 }
 0x426   : > { %2345 = vst.msk [vmem:[#allocation5 + $0x18] sm:$0xff] %vm2343_vm6, %v2334_v19  ;;  %v2405_v60 = vpop.permute.xlu0 %2404 }
 0x427   : > { %2415 = vst.msk [vmem:[#allocation5 + $0x20] sm:$0xff] %vm2209_vm2, %v2405_v60  ;;  %v2585_v5 = vld [vmem:[#allocation5] sm:$0xff] }
 0x428   : > { %v2202_v33 = vpop.permute.xlu1 %2201  ;;  %2793 = vmatmul.mubr.bf16.vlgmr.msra.gmra.mrb[8].mxu0 %v2585_v5  ;;  %3074 = vmatmul.mubr.bf16.vlgmr.msra.gmra.mrb[24].mxu1 %v2585_v5 }
 0x429   : > { %2212 = vst.msk [vmem:[#allocation5 + $0x30] sm:$0xff] %vm2209_vm2, %v2202_v33  ;;  %3904 = vmatpush3.bf16.msra.mxu0 %v4047_v29 }
 0x42a   : > { %v2475_v45 = vpop.permute.xlu0 %2474  ;;  %3905 = vmatprep.subr.bf16.mxu0 %v4048_v13 }
 0x42b   : > { %2485 = vst.msk [vmem:[#allocation5 + $0x20] sm:$0xff] %vm2280_vm5, %v2475_v45 }
 0x42c   : > { %2520 = vst.msk [vmem:[#allocation5 + $0x20] sm:$0xff] %vm2343_vm6, %v2510_v62  ;;  %v2204_v4 = vpop.permute.xlu1 %2203 }
 0x42d   : > { %2213 = vst.msk [vmem:[#allocation5 + $0x48] sm:$0xff] %vm2209_vm2, %v2204_v4  ;;  %3906 = vmatpush3.bf16.msra.mxu0 %v4048_v13  ;;  %v2588_v21 = vld [vmem:[#allocation5 + $0x18] sm:$0xff] }
 0x42e   : > { %v2407_v58 = vpop.permute.xlu0 %2406  ;;  %3915 = vmatprep.subr.bf16.mxu0 %v4049_v9 }
 0x42f   : > { %2416 = vst.msk [vmem:[#allocation5 + $0x38] sm:$0xff] %vm2209_vm2, %v2407_v58 }
 0x430   : > { %v2273_v50 = vpop.permute.xlu1 %2272 }
 0x431   : > { %2283 = vst.msk [vmem:[#allocation5 + $0x30] sm:$0xff] %vm2280_vm5, %v2273_v50 }
 0x432   : > { %v2477_v57 = vpop.permute.xlu0 %2476 }
 0x433   : > { %2486 = vst.msk [vmem:[#allocation5 + $0x38] sm:$0xff] %vm2280_vm5, %v2477_v57  ;;  %v2589_v18 = vld [vmem:[#allocation5 + $0x20] sm:$0xff] }
 0x434   : > { %2521 = vst.msk [vmem:[#allocation5 + $0x38] sm:$0xff] %vm2343_vm6, %v2512_v41  ;;  %2800 = vmatprep.mubr.bf16.mxu0 %v2589_v18  ;;  %3081 = vmatprep.mubr.bf16.mxu1 %v2589_v18  ;;  %v2336_v39 = vpop.permute.xlu1 %2335  ;;  %v5307_v41 = vld [vmem:[%s5536_s0] ss:$0 sm:$0xff] }
 0x435   : > { %2346 = vst.msk [vmem:[#allocation5 + $0x30] sm:$0xff] %vm2343_vm6, %v2336_v39  ;;  %2801 = vmatmul.mubr.bf16.gmra.mrb[12].mxu0 %v2588_v21  ;;  %3082 = vmatmul.mubr.bf16.gmra.mrb[28].mxu1 %v2588_v21 }
 0x436   : > { %v2409_v51 = vpop.permute.xlu0 %2408 }
 0x437   : > { %2417 = vst.msk [vmem:[#allocation5 + $0x50] sm:$0xff] %vm2209_vm2, %v2409_v51 }
 0x438   : > { %v2275_v23 = vpop.permute.xlu1 %2274 }
 0x439   : > { %2284 = vst.msk [vmem:[#allocation5 + $0x48] sm:$0xff] %vm2280_vm5, %v2275_v23 }
 0x43a   : > { %v2479_v26 = vpop.permute.xlu0 %2478 }
 0x43b   : > { %2487 = vst.msk [vmem:[#allocation5 + $0x50] sm:$0xff] %vm2280_vm5, %v2479_v26  ;;  %v2592_v8 = vld [vmem:[#allocation5 + $0x38] sm:$0xff] }
 0x43c   : > { %2808 = vmatprep.mubr.bf16.mxu0 %v2592_v8  ;;  %3089 = vmatprep.mubr.bf16.mxu1 %v2592_v8  ;;  %v2338_v48 = vpop.permute.xlu1 %2337  ;;  %v2591_v44 = vld [vmem:[#allocation5 + $0x30] sm:$0xff] }
 0x43d   : > { %2347 = vst.msk [vmem:[#allocation5 + $0x48] sm:$0xff] %vm2343_vm6, %v2338_v48  ;;  %2809 = vmatmul.mubr.bf16.gmra.mrb[16].mxu0 %v2591_v44  ;;  %3090 = vmatmul.mubr.bf16.gmra.mrb[32].mxu1 %v2591_v44 }
 0x43e   : > { %v2514_v47 = vpop.permute.xlu0 %2513 }
 0x43f   : > { %2522 = vst.msk [vmem:[#allocation5 + $0x50] sm:$0xff] %vm2343_vm6, %v2514_v47 }
 0x444   : > { %v2594_v63 = vld [vmem:[#allocation5 + $0x48] sm:$0xff] }
 0x446   : > { %v2595_v53 = vld [vmem:[#allocation5 + $0x50] sm:$0xff] }
 0x447   : > { %2816 = vmatprep.mubr.bf16.mxu0 %v2595_v53  ;;  %3097 = vmatprep.mubr.bf16.mxu1 %v2595_v53 }
 0x448   : > { %2817 = vmatmul.mubr.bf16.gmra.mrb[20].mxu0 %v2594_v63  ;;  %3098 = vmatmul.mubr.bf16.gmra.mrb[36].mxu1 %v2594_v63 }
 0x449   : > { %3907 = vmatprep.mubr.msk.bf16.mxu0 %vm2020_vm3, %v5079_v42  ;;  %v5533_v42 = vld [vmem:[#allocation16_spill] sm:$0xff] }
 0x450   : > { %3908 = vmatmul.mubr.msk.bf16.vlgmr.msra.gmra.mrb[24].mxu0 %vm2020_vm3, %v5121_v20 }
 0x451   : > { %3911 = vmatprep.mubr.msk.bf16.mxu0 %vm2020_vm3, %v5138_v7  ;;  %3916 = vmatpush3.bf16.msra.mxu0 %v4049_v9 }
 0x458   : > { %3912 = vmatmul.mubr.msk.bf16.gmra.mrb[28].mxu0 %vm2020_vm3, %v5172_v2  ;;  %vm5537_vm3 = vcmask 64512  }
 0x459   : > { %3917 = vmatprep.mubr.msk.bf16.mxu0 %vm920_vm4, %v5530_v17  ;;  %vm5539_vm7 = vmmov %vm5537_vm3 }
 0x45a   : > { %vm5540_vm8 = vmmov %vm5537_vm3 }
 0x45b   : > { %vm5541_vm9 = vmmov %vm5537_vm3 }
 0x45c   : > { %vm5542_vm11 = vmmov %vm5537_vm3 }
 0x45d   : > { %vm5543_vm12 = vmmov %vm5537_vm3 }
 0x45e   : > { %vm5546_vm13 = vmmov %vm5537_vm3 }
 0x45f   : > { %vm5547_vm14 = vmmov %vm5537_vm3 }
 0x460   : > { %3918 = vmatmul.mubr.msk.bf16.vlgmr.msra.gmra.mrb[24].mxu0 %vm920_vm4, %v5531_v43  ;;  %vm5548_vm15 = vmmov %vm5537_vm3 }
 0x461   : > { %3921 = vmatprep.mubr.msk.bf16.mxu0 %vm920_vm4, %v5532_v12  ;;  %vm5549_vm0 = vmmov %vm5537_vm3 }
 0x462   : > { %vm5550_vm1 = vmmov %vm5549_vm0 }
 0x463   : > { %vm5551_vm2 = vmmov %vm5549_vm0 }
 0x464   : > { %vm5552_vm5 = vmmov %vm5549_vm0 }
 0x465   : > { %vm5553_vm6 = vmmov %vm5549_vm0 }
 0x468   : > { %3922 = vmatmul.mubr.msk.bf16.gmra.mrb[28].mxu0 %vm920_vm4, %v5533_v42  ;;  %vm5538_vm4 = vmmov %vm5537_vm3 }
 0x489   : > { %v3897_v20 = vpop.f32.mrb[16].mxu1 }
 0x48a   : > { %v2859_v15 = vpop.f32.mrb[17].mxu1 }
 0x48b   : > { %v3898_v7 = vpop.f32.mrb[18].mxu1 }
 0x48c   : > { %v2862_v59 = vpop.f32.mrb[19].mxu1 }
 0x491   : > { %v5281_v56 = vpop.f32.mrb[20].mxu1 }
 0x492   : > { %v2875_v27 = vpop.f32.mrb[21].mxu1 }
 0x493   : > { %v5283_v2 = vpop.f32.mrb[22].mxu1 }
 0x494   : > { %v5285_v52 = vpop.f32.mrb[23].mxu1 }
 0x4fb   : > { %v3770_v3 = vpop.f32.mrb[8].mxu0  ;;  %v3816_v38 = vpop.f32.mrb[24].mxu1 }
 0x4fc   : > { %v3771_v36 = vpop.f32.mrb[9].mxu0  ;;  %v3817_v0 = vpop.f32.mrb[25].mxu1 }
 0x4fd   : > { %v3772_v37 = vadd.f32 %v3771_v36, %v3770_v3  ;;  %v5294_v29 = vadd.f32 %v3817_v0, %v3816_v38  ;;  %v3773_v55 = vpop.f32.mrb[10].mxu0  ;;  %v3819_v46 = vpop.f32.mrb[26].mxu1 }
 0x4fe   : > { %v3774_v25 = vpop.f32.mrb[11].mxu0  ;;  %v3820_v28 = vpop.f32.mrb[27].mxu1 }
 0x4ff   : > { %v2795_v10 = vadd.f32 %v3772_v37, %v5292_v35  ;;  %v3775_v16 = vadd.f32 %v3774_v25, %v3773_v55  ;;  %v5297_v54 = vadd.f32 %v3820_v28, %v3819_v46 }
 0x501   : > { %v2860_v34 = vadd.f32 %v2859_v15, %v2795_v10  ;;  %v2798_v40 = vadd.f32 %v3775_v16, %v5292_v35 }
 0x503   : > { %4050 = vtanh.f32 %v2860_v34  ;;  %v2863_v24 = vadd.f32 %v2862_v59, %v2798_v40 }
 0x505   : > { %4052 = vtanh.f32 %v2863_v24 }
 0x508   : > { %v3776_v32 = vpop.f32.mrb[12].mxu0  ;;  %v3822_v11 = vpop.f32.mrb[28].mxu1 }
 0x509   : > { %v3777_v22 = vpop.f32.mrb[13].mxu0  ;;  %v3823_v49 = vpop.f32.mrb[29].mxu1 }
 0x50a   : > { %v3778_v31 = vadd.f32 %v3777_v22, %v3776_v32  ;;  %v5300_v19 = vadd.f32 %v3823_v49, %v3822_v11  ;;  %v3779_v14 = vpop.f32.mrb[14].mxu0  ;;  %v3825_v6 = vpop.f32.mrb[30].mxu1 }
 0x50b   : > { %v3780_v62 = vpop.f32.mrb[15].mxu0  ;;  %v3826_v1 = vpop.f32.mrb[31].mxu1 }
 0x50c   : > { %v2803_v30 = vadd.f32 %v3778_v31, %v5292_v35  ;;  %v3781_v61 = vadd.f32 %v3780_v62, %v3779_v14  ;;  %v5310_v60 = vadd.f32 %v3826_v1, %v3825_v6 }
 0x50d   : > { %v4051_v13 = vpop.eup %4050 }
 0x50e   : > { %v2868_v5 = vadd.f32 %v3897_v20, %v2803_v30  ;;  %v2806_v33 = vadd.f32 %v3781_v61, %v5292_v35  ;;  %v3186_v45 = vmul.f32 %v4051_v13, %v5307_v41  ;;  %v3306_v61 = vpop.permute.xlu1 %3305 }
 0x50f   : > { %v4053_v9 = vpop.eup %4052 }
 0x510   : > { %4054 = vtanh.f32 %v2868_v5  ;;  %v2871_v4 = vadd.f32 %v3898_v7, %v2806_v33  ;;  %v3782_v58 = vpop.f32.mrb[16].mxu0  ;;  %v3828_v50 = vpop.f32.mrb[32].mxu1  ;;  %v3337_v57 = vsel %vm5537_vm3, %v3186_v45, 0.0  ;;  %v3187_v21 = vmul.f32 %v4053_v9, %v5307_v41  ;;  %vm5555_vm3 = vmmov %vm5549_vm0 }
 0x511   : > { %v3783_v18 = vpop.f32.mrb[17].mxu0  ;;  %v3829_v39 = vpop.f32.mrb[33].mxu1  ;;  %3338 = vadd.xlane.f32.xlu0 %v3337_v57 }
 0x512   : > { %4056 = vtanh.f32 %v2871_v4  ;;  %v3784_v51 = vadd.f32 %v3783_v18, %v3782_v58  ;;  %v5316_v23 = vadd.f32 %v3829_v39, %v3828_v50  ;;  %v3785_v26 = vpop.f32.mrb[18].mxu0  ;;  %v3831_v8 = vpop.f32.mrb[34].mxu1  ;;  %v3340_v47 = vsel %vm5538_vm4, %v3187_v21, 0.0 }
 0x513   : > { %v3786_v48 = vpop.f32.mrb[19].mxu0  ;;  %v3832_v44 = vpop.f32.mrb[35].mxu1  ;;  %3341 = vadd.xlane.f32.xlu1 %v3340_v47  ;;  %v3267_v30 = vmul.f32 1.442695, %v3187_v21  ;;  %vm3378_vm4 = vcmask 0  }
 0x514   : > { %v2811_v53 = vadd.f32 %v3784_v51, %v5292_v35  ;;  %v3787_v63 = vadd.f32 %v3786_v48, %v3785_v26  ;;  %v5320_v17 = vadd.f32 %v3832_v44, %v3831_v8  ;;  %v3310_v26 = vpop.permute.xlu1 %3309 }
 0x516   : > { %v2876_v43 = vadd.f32 %v2875_v27, %v2811_v53  ;;  %v2814_v12 = vadd.f32 %v3787_v63, %v5292_v35 }
 0x518   : > { %4058 = vtanh.f32 %v2876_v43  ;;  %v2879_v42 = vadd.f32 %v5285_v52, %v2814_v12 }
 0x51a   : > { %v4055_v20 = vpop.eup %4054  ;;  %4060 = vtanh.f32 %v2879_v42 }
 0x51b   : > { %v3788_v15 = vpop.f32.mrb[20].mxu0  ;;  %v3834_v7 = vpop.f32.mrb[36].mxu1  ;;  %v3188_v59 = vmul.f32 %v4055_v20, %v5307_v41 }
 0x51c   : > { %v4057_v3 = vpop.eup %4056  ;;  %v3789_v38 = vpop.f32.mrb[21].mxu0 }
 0x51d   : > { %v3835_v36 = vpop.f32.mrb[37].mxu1  ;;  %v3790_v0 = vadd.f32 %v3789_v38, %v3788_v15  ;;  %v3791_v55 = vpop.f32.mrb[22].mxu0  ;;  %v3343_v27 = vsel %vm5539_vm7, %v3188_v59, 0.0  ;;  %v3189_v52 = vmul.f32 %v4057_v3, %v5307_v41  ;;  %v3269_v62 = vmul.f32 1.442695, %v3188_v59 }
 0x51e   : > { %v5325_v37 = vadd.f32 %v3835_v36, %v3834_v7  ;;  %v3837_v46 = vpop.f32.mrb[38].mxu1  ;;  %3344 = vadd.xlane.f32.xlu0 %v3343_v27  ;;  %v3792_v25 = vpop.f32.mrb[23].mxu0 }
 0x51f   : > { %v3838_v28 = vpop.f32.mrb[39].mxu1  ;;  %v2819_v10 = vadd.f32 %v3790_v0, %v5292_v35  ;;  %v3793_v16 = vadd.f32 %v3792_v25, %v3791_v55  ;;  %v3346_v32 = vsel %vm5540_vm8, %v3189_v52, 0.0  ;;  %v3271_v1 = vmul.f32 1.442695, %v3189_v52  ;;  %v3312_v59 = vpop.permute.xlu1 %3311 }
 0x520   : > { %v5330_v34 = vadd.f32 %v3838_v28, %v3837_v46  ;;  %v3308_v38 = vpop.permute.xlu0 %3307 }
 0x521   : > { %v2884_v40 = vadd.f32 %v5281_v56, %v2819_v10  ;;  %v2822_v24 = vadd.f32 %v3793_v16, %v5292_v35  ;;  %v3265_v35 = vmul.f32 1.442695, %v3186_v45  ;;  %v3698_v45 = vld [vmem:[%s5545_s21] ss:$0 sm:$0xff] }
 0x522   : > { %v4059_v11 = vpop.eup %4058  ;;  %3347 = vadd.xlane.f32.xlu0 %v3346_v32  ;;  %v3084_v50 = vadd.f32 %v5300_v19, %v3698_v45  ;;  %v3076_v51 = vadd.f32 %v5294_v29, %v3698_v45  ;;  %v3079_v53 = vadd.f32 %v5297_v54, %v3698_v45  ;;  %v3100_v3 = vadd.f32 %v5325_v37, %v3698_v45 }
 0x523   : > { %4062 = vtanh.f32 %v2884_v40  ;;  %v2887_v22 = vadd.f32 %v5283_v2, %v2822_v24  ;;  %v3190_v49 = vmul.f32 %v4059_v11, %v5307_v41  ;;  %v3092_v0 = vadd.f32 %v5316_v23, %v3698_v45 }
 0x524   : > { %v4061_v31 = vpop.eup %4060  ;;  %v3103_v25 = vadd.f32 %v5330_v34, %v3698_v45  ;;  %v3095_v10 = vadd.f32 %v5320_v17, %v3698_v45  ;;  %v3314_v34 = vpop.permute.xlu0 %3313  ;;  %v5554_v17 = vld [vmem:[#allocation23_spill] sm:$0xff] }
 0x525   : > { %4064 = vtanh.f32 %v2887_v22  ;;  %v3349_v14 = vsel %vm5541_vm9, %v3190_v49, 0.0  ;;  %v3191_v6 = vmul.f32 %v4061_v31, %v5307_v41  ;;  %v3273_v33 = vmul.f32 1.442695, %v3190_v49 }
 0x526   : > { %3350 = vadd.xlane.f32.xlu1 %v3349_v14  ;;  %4066 = vpow2.f32 %v3269_v62  ;;  %v3316_v14 = vpop.permute.xlu1 %3315 }
 0x527   : > { %v3352_v56 = vsel %vm5542_vm11, %v3191_v6, 0.0  ;;  %4068 = vpow2.f32 %v3265_v35  ;;  %v3275_v57 = vmul.f32 1.442695, %v3191_v6  ;;  %v5556_v6 = vld [vmem:[#allocation21_spill] sm:$0xff] }
 0x528   : > { %3353 = vadd.xlane.f32.xlu0 %v3352_v56  ;;  %4070 = vpow2.f32 %v3271_v1 }
 0x529   : > { %4072 = vpow2.f32 %v3267_v30 }
 0x52d   : > { %v4063_v2 = vpop.eup %4062 }
 0x52e   : > { %v3192_v13 = vmul.f32 %v4063_v2, %v5307_v41 }
 0x52f   : > { %v4065_v5 = vpop.eup %4064 }
 0x530   : > { %v3277_v9 = vmul.f32 1.442695, %v3192_v13  ;;  %v3355_v4 = vsel %vm5543_vm12, %v3192_v13, 0.0  ;;  %v3193_v58 = vmul.f32 %v4065_v5, %v5307_v41  ;;  %v3087_v41 = vadd.f32 %v5310_v60, %v3698_v45  ;;  %v4067_v44 = vpop.eup %4066 }
 0x531   : > { %3356 = vadd.xlane.f32.xlu1 %v3355_v4  ;;  %v4069_v63 = vpop.eup %4068 }
 0x532   : > { %4074 = vpow2.f32 %v3277_v9  ;;  %v3279_v18 = vmul.f32 1.442695, %v3193_v58  ;;  %v3358_v39 = vsel %vm5546_vm13, %v3193_v58, 0.0  ;;  %v4071_v42 = vpop.eup %4070 }
 0x533   : > { %4076 = vpow2.f32 %v3273_v33  ;;  %v3919_v21 = vpop.f32.mrb[24].mxu0  ;;  %3359 = vadd.xlane.f32.xlu0 %v3358_v39  ;;  %v4073_v60 = vpop.eup %4072 }
 0x534   : > { %v3925_v8 = vadd.f32 %v3919_v21, %v3084_v50  ;;  %4078 = vpow2.f32 %v3279_v18  ;;  %v3234_v48 = vpop.f32.mrb[25].mxu0 }
 0x535   : > { %v3926_v19 = vadd.f32 %v3234_v48, %v3076_v51  ;;  %v3920_v47 = vpop.f32.mrb[26].mxu0  ;;  %4080 = vpow2.f32 %v3275_v57 }
 0x536   : > { %v3283_v43 = vmul.f32 %v4067_v44, %v3925_v8  ;;  %v3927_v29 = vadd.f32 %v3920_v47, %v3087_v41  ;;  %v3237_v12 = vpop.f32.mrb[27].mxu0  ;;  %v3375_v8 = vld [vmem:[%s834_s12] sm:$0x1] }
 0x537   : > { %v3281_v20 = vmul.f32 %v4069_v63, %v3926_v19  ;;  %v3928_v15 = vadd.f32 %v3237_v12, %v3079_v53 }
 0x538   : > { %3291 = vst.msk [vmem:[%s4346_s14 + $0x10] sm:$0xff] %vm5547_vm14, %v3283_v43  ;;  %v3284_v7 = vmul.f32 %v4071_v42, %v3927_v29 }
 0x539   : > { %3331 = vst.msk [vmem:[%s4346_s14 + $0x10] sm:$0xff] %vm1269_vm10, %v3310_v26  ;;  %v3282_v54 = vmul.f32 %v4073_v60, %v3928_v15  ;;  %v3374_v26 = vld [vmem:[%s4352_s26] sm:$0x1] }
 0x53a   : > { %3289 = vst.msk [vmem:[%s4346_s14] sm:$0xff] %vm5548_vm15, %v3281_v20  ;;  %v3376_v41 = vadd.f32 %v3375_v8, %v3374_v26 }
 0x53b   : > { %3329 = vst.msk [vmem:[%s4346_s14] sm:$0xff] %vm1269_vm10, %v3306_v61  ;;  %v3923_v36 = vpop.f32.mrb[28].mxu0 }
 0x53c   : > { %3292 = vst.msk [vmem:[%s4346_s14 + $0x18] sm:$0xff] %vm5549_vm0, %v3284_v7  ;;  %v4075_v55 = vpop.eup %4074  ;;  %v3929_v46 = vadd.f32 %v3923_v36, %v3100_v3  ;;  %v3250_v27 = vpop.f32.mrb[29].mxu0 }
 0x53d   : > { %3332 = vst.msk [vmem:[%s4346_s14 + $0x18] sm:$0xff] %vm1269_vm10, %v3312_v59  ;;  %v4077_v28 = vpop.eup %4076  ;;  %v3930_v37 = vadd.f32 %v3250_v27, %v3092_v0  ;;  %v3924_v52 = vpop.f32.mrb[30].mxu0 }
 0x53e   : > { %3290 = vst.msk [vmem:[%s4346_s14 + $0x8] sm:$0xff] %vm5550_vm1, %v3282_v54  ;;  %v4079_v16 = vpop.eup %4078  ;;  %v3287_v40 = vmul.f32 %v4075_v55, %v3929_v46  ;;  %v3931_v23 = vadd.f32 %v3924_v52, %v3103_v25  ;;  %v3253_v24 = vpop.f32.mrb[31].mxu0 }
 0x53f   : > { %3330 = vst.msk [vmem:[%s4346_s14 + $0x8] sm:$0xff] %vm1269_vm10, %v3308_v38  ;;  %v3285_v32 = vmul.f32 %v4077_v28, %v3930_v37  ;;  %v3932_v11 = vadd.f32 %v3253_v24, %v3095_v10  ;;  %v4081_v22 = vpop.eup %4080 }
 0x540   : > { %3295 = vst.msk [vmem:[%s4346_s14 + $0x30] sm:$0xff] %vm5551_vm2, %v3287_v40  ;;  %v3288_v49 = vmul.f32 %v4079_v16, %v3931_v23 }
 0x541   : > { %3293 = vst.msk [vmem:[%s4346_s14 + $0x20] sm:$0xff] %vm5552_vm5, %v3285_v32  ;;  %v3286_v31 = vmul.f32 %v4081_v22, %v3932_v11 }
 0x542   : > { %3333 = vst.msk [vmem:[%s4346_s14 + $0x20] sm:$0xff] %vm1269_vm10, %v3314_v34  ;;  %3319 = vrot.lane.b32.xlu1 %v5554_v17, %s4126_s2 }
 0x543   : > { %3296 = vst.msk [vmem:[%s4346_s14 + $0x38] sm:$0xff] %vm5553_vm6, %v3288_v49 }
 0x544   : > { %3294 = vst.msk [vmem:[%s4346_s14 + $0x28] sm:$0xff] %vm5555_vm3, %v3286_v31 }
 0x545   : > { %3334 = vst.msk [vmem:[%s4346_s14 + $0x28] sm:$0xff] %vm1269_vm10, %v3316_v14 }
 0x549   : > { %3317 = vrot.lane.b32.xlu0 %v5556_v6, %s4126_s2 }
 0x59e   : > { %v3339_v62 = vpop.xlane.xlu0 %3338 }
 0x5a0   : > { %v3342_v35 = vpop.xlane.xlu1 %3341 }
 0x5a1   : > { %v3361_v1 = vadd.f32 %v3342_v35, %v3339_v62 }
 0x5ab   : > { %v3345_v56 = vpop.xlane.xlu0 %3344 }
 0x5ac   : > { %v3362_v2 = vadd.f32 %v3361_v1, %v3345_v56 }
 0x5af   : > { %v3348_v30 = vpop.xlane.xlu0 %3347 }
 0x5b0   : > { %v3363_v13 = vadd.f32 %v3362_v2, %v3348_v30 }
 0x5b3   : > { %v3351_v61 = vpop.xlane.xlu1 %3350 }
 0x5b4   : > { %v3364_v5 = vadd.f32 %v3363_v13, %v3351_v61 }
 0x5b5   : > { %v3354_v33 = vpop.xlane.xlu0 %3353 }
 0x5b6   : > { %v3365_v9 = vadd.f32 %v3364_v5, %v3354_v33 }
 0x5be   : > { %v3357_v4 = vpop.xlane.xlu1 %3356 }
 0x5bf   : > { %v3366_v45 = vadd.f32 %v3365_v9, %v3357_v4 }
 0x5c0   : > { %v3360_v58 = vpop.xlane.xlu0 %3359 }
 0x5c1   : > { %v3367_v50 = vadd.f32 %v3366_v45, %v3360_v58 }
 0x5c2   : > { %v3320_v57 = vpop.permute.xlu1 %3319 }
 0x5c3   : > { %v3368_v18 = vrot.slane %v3367_v50, 4  ;;  %3336 = vst.msk [vmem:[%s4346_s14 + $0x38] sm:$0xff] %vm1269_vm10, %v3320_v57 }
 0x5c4   : > { %v3318_v39 = vpop.permute.xlu0 %3317 }
 0x5c5   : > { %v3369_v21 = vadd.f32 %v3368_v18, %v3367_v50  ;;  %3335 = vst.msk [vmem:[%s4346_s14 + $0x30] sm:$0xff] %vm1269_vm10, %v3318_v39 }
 0x5c7   : > { %v3370_v51 = vrot.slane %v3369_v21, 2 }
 0x5c9   : > { %v3371_v48 = vadd.f32 %v3370_v51, %v3369_v21 }
 0x5cb   : > { %v3372_v44 = vrot.slane %v3371_v48, 1 }
 0x5cd   : > { %v3373_v19 = vadd.f32 %v3372_v44, %v3371_v48 }
 0x5cf   : > { %v3377_v47 = vadd.f32 %v3376_v41, %v3373_v19 }
 0x5d1   : > { %3379 = vst.msk [vmem:[%s4352_s26] sm:$0x1] %vm3378_vm4, %v3377_v47 }
 0x5d2 PF: > { %s5558_s29 = sld [smem:[#allocation9_spill]]  ;;  %s5559_s27 = sld [smem:[#allocation7_spill]] }
 0x5d3   : > { %s5560_s28 = sld [smem:[#allocation8_spill]]  ;;  %s5562_s30 = sld [smem:[#allocation11_spill]] }
 0x5d8   : > { %s29_s0 = sadd.s32 1, %s5558_s29   ;;  %s5561_s29 = sld [smem:[#allocation10_spill]] }
 0x5d9   : > { %p26_p8 = scmp.ge.s32.totalorder %s29_s0, 6  }
 0x5db   :  { %28 = sbr.rel (!%p26_p8) target bundleno = 15 (0xf), region = 179 }

</bundles_post_ra>
